<compile_context>
chip_gen: v7x
topology: tpu7x:2x2x1
jax: 0.10.0
libtpu: 0.0.40
codegen_flags: <defaults>
</compile_context>

<pallas_src>
import jax
import jax.numpy as jnp
import numpy as np
from jax.experimental import pallas as pl
from jax.experimental.pallas import tpu as pltpu

EPS = 1e-5
_VMEM = pl.BlockSpec(memory_space=pltpu.MemorySpace.VMEM)


def _rup(x, m):
    return ((x + m - 1) // m) * m


# --------------------------------------------------------------------------
# Pallas kernels
# --------------------------------------------------------------------------
def _make_fused_stack_kernel(K, N, Hg, Wg, L, Lp, hv1, wv1, hv2, wv2,
                             off, pad_lanes, tail, cin_p, cout_p):
    """Fused (Conv3x3 -> BN(train) -> ReLU) x2 on a (C, N*Hg*Wg) lane grid.

    Lane grid: lane(n,h,w) = n*Hg*Wg + h*Wg + w.  A 3x3 "valid" conv output at
    lane l reads input lanes l + kh*Wg + kw, so each layer is one matmul over
    an in-kernel im2col buffer built from 9 shifted slices.  The layer-1
    result is staged (masked to its valid region) at lane offset `pad_lanes`;
    layer 2 reads shifted slices at pad_lanes - off + kh*Wg + kw, where
    off = Wg+1 repositions the data so the zeroed prefix/tail and the masked
    invalid lanes act as the "same"-padding zero border.
    """
    taps = [(kh, kw) for kh in range(K) for kw in range(K)]
    inv1 = 1.0 / (N * hv1 * wv1)
    inv2 = 1.0 / (N * hv2 * wv2)

    def kernel(x_ref, w1_ref, w2_ref, bn_ref, o_ref, col_ref, stage_ref):
        # Validity masks generated in-kernel (no mask DMA).
        lane = jax.lax.broadcasted_iota(jnp.int32, (1, Lp), 1)
        in_row = lane % Wg                      # column within the image row
        in_img = lane % (Hg * Wg)               # position within the image
        in_data = lane < L
        m1 = in_data & (in_row < wv1) & (in_img < hv1 * Wg)
        m2 = in_data & (in_row < wv2) & (in_img < hv2 * Wg)

        # ---- layer 1: in-kernel im2col (bf16) -> single MXU dot ----
        for t, (kh, kw) in enumerate(taps):
            col_ref[pl.ds(t * cin_p, cin_p), :] = x_ref[:, pl.ds(kh * Wg + kw, Lp)]
        y1 = jnp.dot(w1_ref[...], col_ref[pl.ds(0, K * K * cin_p), :],
                     preferred_element_type=jnp.float32)
        # Train-mode BatchNorm over the valid lanes (single-pass stats, f32).
        y1v = jnp.where(m1, y1, 0.0)
        mean1 = jnp.sum(y1v, axis=1, keepdims=True) * inv1
        var1 = jnp.sum(y1v * y1v, axis=1, keepdims=True) * inv1 - mean1 * mean1
        y1 = bn_ref[0] * (y1 - mean1) * jax.lax.rsqrt(var1 + EPS) + bn_ref[1]
        y1 = jnp.where(m1, jnp.maximum(y1, 0.0), 0.0)

        # Stage the masked intermediate: zero ONLY the prefix and the tail;
        # the interior is fully overwritten (masked lanes supply the border).
        stage_ref[:, pl.ds(0, pad_lanes)] = jnp.zeros((cout_p, pad_lanes), jnp.bfloat16)
        stage_ref[:, pl.ds(pad_lanes + Lp, tail)] = jnp.zeros((cout_p, tail), jnp.bfloat16)
        stage_ref[:, pl.ds(pad_lanes, Lp)] = y1.astype(jnp.bfloat16)

        # ---- layer 2: same structure, reading the staged intermediate ----
        for t, (kh, kw) in enumerate(taps):
            start = pad_lanes - off + kh * Wg + kw
            col_ref[pl.ds(t * cout_p, cout_p), :] = stage_ref[:, pl.ds(start, Lp)]
        y2 = jnp.dot(w2_ref[...], col_ref[pl.ds(0, K * K * cout_p), :],
                     preferred_element_type=jnp.float32)
        y2v = jnp.where(m2, y2, 0.0)
        mean2 = jnp.sum(y2v, axis=1, keepdims=True) * inv2
        var2 = jnp.sum(y2v * y2v, axis=1, keepdims=True) * inv2 - mean2 * mean2
        y2 = bn_ref[2] * (y2 - mean2) * jax.lax.rsqrt(var2 + EPS) + bn_ref[3]
        o_ref[...] = jnp.maximum(y2, 0.0)

    return kernel


def _dense_bias_kernel(w_ref, x_ref, b_ref, o_ref):
    # o = W @ X + b, lane-dense (pixels on lanes), bf16 operands, f32 result.
    # Used for ConvTranspose2d (4 taps stacked on sublanes) and the 1x1 head.
    o_ref[...] = (jnp.dot(w_ref[...], x_ref[...],
                          preferred_element_type=jnp.float32) + b_ref[...])


# --------------------------------------------------------------------------
# Layout helpers (channel-major (C, N, H, W) activations, cheap XLA glue)
# --------------------------------------------------------------------------
def maxpool_2x2(x):                       # (C, N, H, W)
    c, n, h, w = x.shape
    return jnp.max(x.reshape(c, n, h // 2, 2, w // 2, 2), axis=(3, 5))


def center_crop(x, th, tw):               # crops the last two dims
    h, w = x.shape[-2:]
    top = int(round((h - th) / 2.0))
    left = int(round((w - tw) / 2.0))
    return x[..., top:top + th, left:left + tw]


def _pack_conv_weight(w_hwio, cin_p, cout_p):
    K, _, cin, cout = w_hwio.shape
    w = jnp.transpose(w_hwio, (3, 0, 1, 2))                    # (Cout, K, K, Cin)
    w = jnp.pad(w, ((0, cout_p - cout), (0, 0), (0, 0), (0, cin_p - cin)))
    return w.reshape(cout_p, K * K * cin_p).astype(jnp.bfloat16)


# --------------------------------------------------------------------------
# Module wrappers
# --------------------------------------------------------------------------
def stacked_conv_bn_relu(x, w1, w2, g1, b1, g2, b2, padding):
    """One fused StackedConvReLU block on channel-major (C, N, H, W) input.

    Conv biases are intentionally absent: a per-channel constant added before
    train-mode BatchNorm is exactly cancelled by the mean subtraction.
    """
    K, _, cin, cout = w1.shape
    if padding:
        x = jnp.pad(x, ((0, 0), (0, 0), (padding, padding), (padding, padding)))
    c, n, hg, wg = x.shape
    L = n * hg * wg
    Lp = _rup(L, 128)                        # lane-dense stores
    dmax = (K - 1) * wg + (K - 1)            # largest lane shift of any tap
    tail = _rup(dmax, 128)
    hv1, wv1 = hg - (K - 1), wg - (K - 1)    # valid layer-1 output size
    if padding:                              # layer 2 is "same"-padded
        off, hv2, wv2 = wg + 1, hv1, wv1
    else:                                    # layer 2 is "valid"
        off, hv2, wv2 = 0, hv1 - (K - 1), wv1 - (K - 1)
    pad_lanes = max(128, _rup(wg + 1, 128))  # stays >= off even at large widths
    cin_p, cout_p = _rup(cin, 16), _rup(cout, 16)
    cmax = max(cin_p, cout_p)

    # Lane-layout input (bf16) with zero channel / lane / shift-tail padding.
    x_cl = x.reshape(c, L)
    x_cl = jnp.pad(x_cl, ((0, cin_p - c), (0, Lp - L + tail))).astype(jnp.bfloat16)
    w1_m = _pack_conv_weight(w1, cin_p, cout_p)     # (Cout_p, K*K*Cin_p)
    w2_m = _pack_conv_weight(w2, cout_p, cout_p)
    # Merged BN parameters: [gamma1, beta1, gamma2, beta2].
    bn = jnp.stack([jnp.pad(p, (0, cout_p - cout)) for p in (g1, b1, g2, b2)])
    bn = bn.reshape(4, cout_p, 1).astype(jnp.float32)

    kernel = _make_fused_stack_kernel(
        K=K, N=n, Hg=hg, Wg=wg, L=L, Lp=Lp, hv1=hv1, wv1=wv1, hv2=hv2, wv2=wv2,
        off=off, pad_lanes=pad_lanes, tail=tail, cin_p=cin_p, cout_p=cout_p)

    out = pl.pallas_call(
        kernel,
        out_shape=jax.ShapeDtypeStruct((cout_p, Lp), jnp.float32),
        in_specs=[_VMEM] * 4,
        out_specs=_VMEM,
        scratch_shapes=[pltpu.VMEM((K * K * cmax, Lp), jnp.bfloat16),      # im2col
                        pltpu.VMEM((cout_p, pad_lanes + Lp + tail), jnp.bfloat16)],
    )(x_cl, w1_m, w2_m, bn)
    return out[:cout, :L].reshape(cout, n, hg, wg)[:, :, :hv2, :wv2]


def conv_transpose_2x2(x, wt, bias):
    """PyTorch ConvTranspose2d(cin, cout, 2, stride=2) + bias, on (C,N,H,W).

    Stride == kernel => no overlap: one lane-dense bf16 matmul with the 4 taps
    stacked on the output-channel (sublane) axis, then a cheap 2x2 interleave
    that never transposes N against C.
    """
    cin, n, h, w = x.shape
    cout = wt.shape[1]
    L, Lp = n * h * w, _rup(n * h * w, 128)
    cin_p = _rup(cin, 16)
    rows, rows_p = 4 * cout, _rup(4 * cout, 16)
    x_cl = jnp.pad(x.reshape(cin, L),
                   ((0, cin_p - cin), (0, Lp - L))).astype(jnp.bfloat16)
    w_m = jnp.transpose(wt, (2, 3, 1, 0)).reshape(rows, cin)      # rows = (i,j,co)
    w_m = jnp.pad(w_m, ((0, rows_p - rows), (0, cin_p - cin))).astype(jnp.bfloat16)
    b_col = jnp.pad(jnp.tile(bias, 4), (0, rows_p - rows))
    b_col = b_col.reshape(rows_p, 1).astype(jnp.float32)
    y = pl.pallas_call(
        _dense_bias_kernel,
        out_shape=jax.ShapeDtypeStruct((rows_p, Lp), jnp.float32),
        in_specs=[_VMEM] * 3,
        out_specs=_VMEM,
    )(w_m, x_cl, b_col)
    y = y[:rows, :L].reshape(2, 2, cout, n, h, w)     # (i, j, co, n, h, w)
    y = jnp.transpose(y, (2, 3, 4, 0, 5, 1))          # (co, n, h, i, w, j)
    return y.reshape(cout, n, 2 * h, 2 * w)


def conv1x1(x, w, bias):
    """1x1 Conv2d (UNet head) on (C,N,H,W): lane-dense bf16 matmul + f32 bias."""
    cin, n, h, w_sp = x.shape
    cout = w.shape[0]
    L, Lp = n * h * w_sp, _rup(n * h * w_sp, 128)
    cin_p, cout_p = _rup(cin, 16), _rup(cout, 16)
    x_cl = jnp.pad(x.reshape(cin, L),
                   ((0, cin_p - cin), (0, Lp - L))).astype(jnp.bfloat16)
    w_m = jnp.pad(w, ((0, cout_p - cout), (0, cin_p - cin))).astype(jnp.bfloat16)
    b_col = jnp.pad(bias, (0, cout_p - cout)).reshape(cout_p, 1).astype(jnp.float32)
    y = pl.pallas_call(
        _dense_bias_kernel,
        out_shape=jax.ShapeDtypeStruct((cout_p, Lp), jnp.float32),
        in_specs=[_VMEM] * 3,
        out_specs=_VMEM,
    )(w_m, x_cl, b_col)
    return y[:cout, :L].reshape(cout, n, h, w_sp)


def unet_forward(x_nchw, params):
    x = jnp.transpose(x_nchw, (1, 0, 2, 3))   # single NCHW -> CNHW transpose
    feats = []
    for i, blk in enumerate(params["encoder"]):
        if i > 0:
            x = maxpool_2x2(x)                # MaxPool2d(2) pre-activation
        x = stacked_conv_bn_relu(x, blk["w1"], blk["w2"], blk["g1"], blk["b1"],
                                 blk["g2"], blk["b2"], padding=0)
        feats.insert(0, x)
    feats = feats[1:]
    for i, blk in enumerate(params["decoder"]):
        x = conv_transpose_2x2(x, blk["wt"], blk["bt"])    # Up pre-activation
        skip = center_crop(feats[i], x.shape[-2], x.shape[-1])
        x = jnp.concatenate([x, skip], axis=0)             # channel = sublane axis
        x = stacked_conv_bn_relu(x, blk["w1"], blk["w2"], blk["g1"], blk["b1"],
                                 blk["g2"], blk["b2"], padding=1)
    y = conv1x1(x, params["head_w"], params["head_b"])
    return jnp.transpose(y, (1, 0, 2, 3))     # back to NCHW once at the end


# --------------------------------------------------------------------------
# Independent pure-JAX reference (lax conv, f32, NCHW) for validation
# --------------------------------------------------------------------------
def _ref_conv_bn_relu(x_nchw, w_hwio, g, b, padding):
    x = jnp.transpose(x_nchw, (0, 2, 3, 1))
    y = jax.lax.conv_general_dilated(
        x, w_hwio, window_strides=(1, 1),
        padding=[(padding, padding), (padding, padding)],
        dimension_numbers=("NHWC", "HWIO", "NHWC"))
    mean = jnp.mean(y, axis=(0, 1, 2), keepdims=True)
    var = jnp.mean((y - mean) ** 2, axis=(0, 1, 2), keepdims=True)
    y = jnp.maximum(g * (y - mean) * jax.lax.rsqrt(var + EPS) + b, 0.0)
    return jnp.transpose(y, (0, 3, 1, 2))


def _ref_stacked(x, blk, padding):
    x = _ref_conv_bn_relu(x, blk["w1"], blk["g1"], blk["b1"], padding)
    return _ref_conv_bn_relu(x, blk["w2"], blk["g2"], blk["b2"], padding)


def _ref_maxpool(x):                       # (N, C, H, W)
    n, c, h, w = x.shape
    return jnp.max(x.reshape(n, c, h // 2, 2, w // 2, 2), axis=(3, 5))


def unet_reference(x, params):
    feats = []
    for i, blk in enumerate(params["encoder"]):
        if i > 0:
            x = _ref_maxpool(x)
        x = _ref_stacked(x, blk, padding=0)
        feats.insert(0, x)
    feats = feats[1:]
    for i, blk in enumerate(params["decoder"]):
        y = jnp.einsum("nchw,cdij->ndhiwj", x, blk["wt"])
        n, co, h, _, w, _ = y.shape
        x = y.reshape(n, co, 2 * h, 2 * w) + blk["bt"].reshape(1, -1, 1, 1)
        skip = center_crop(feats[i], x.shape[-2], x.shape[-1])
        x = jnp.concatenate([x, skip], axis=1)
        x = _ref_stacked(x, blk, padding=1)
    return (jnp.einsum("nchw,oc->nohw", x, params["head_w"])
            + params["head_b"].reshape(1, -1, 1, 1))


# --------------------------------------------------------------------------
if __name__ == "__main__":
    N, IN_CH, H, W = 2, 4, 16, 16
    ENC = [8, 16]            # channels double per level -> valid UNet skip concat
    OUT_CH = 3
    K = 3

    key = jax.random.PRNGKey(0)
    keys = iter(jax.random.split(key, 64))

    def nrm(shape, scale=0.1):
        return scale * jax.random.normal(next(keys), shape, jnp.float32)

    params = {"encoder": [], "decoder": []}
    cin = IN_CH
    for cout in ENC:
        params["encoder"].append({
            # conv biases omitted: cancelled exactly by train-mode BatchNorm
            "w1": nrm((K, K, cin, cout)),
            "w2": nrm((K, K, cout, cout)),
            "g1": jnp.ones((cout,), jnp.float32), "b1": jnp.zeros((cout,), jnp.float32),
            "g2": jnp.ones((cout,), jnp.float32), "b2": jnp.zeros((cout,), jnp.float32),
        })
        cin = cout
    for idx in range(len(ENC) - 1, 0, -1):
        c_in, c_out = ENC[idx], ENC[idx - 1]
        params["decoder"].append({
            "wt": nrm((c_in, c_out, 2, 2)),        # ConvTranspose2d weight (keeps bias)
            "bt": nrm((c_out,)),
            "w1": nrm((K, K, c_in, c_out)),        # stack conv1: in = 2*c_out = c_in
            "w2": nrm((K, K, c_out, c_out)),
            "g1": jnp.ones((c_out,), jnp.float32), "b1": jnp.zeros((c_out,), jnp.float32),
            "g2": jnp.ones((c_out,), jnp.float32), "b2": jnp.zeros((c_out,), jnp.float32),
        })
    params["head_w"] = nrm((OUT_CH, ENC[0]))
    params["head_b"] = nrm((OUT_CH,))

    x = jax.random.normal(next(keys), (N, IN_CH, H, W), jnp.float32)

    out = jax.block_until_ready(jax.jit(unet_forward)(x, params))
    # 16 ->(2 valid 3x3) 12 -> pool 6 ->(2 valid 3x3) 2 -> up 4 ->(pad=1) 4 -> head 4
    assert out.shape == (N, OUT_CH, 4, 4), out.shape

    ref = unet_reference(x, params)
    # bf16 MXU operands vs. f32 reference -> slightly looser tolerance.
    np.testing.assert_allclose(np.asarray(out), np.asarray(ref),
                               rtol=5e-2, atol=5e-2)
    print("KERNEL_OK")
</pallas_src>

<mosaic_0001>
module attributes {stable_mosaic.version = 11 : i64} {
  func.func @kernel(%arg0: memref<16x640xbf16, #tpu.memory_space<vmem>>, %arg1: memref<16x144xbf16, #tpu.memory_space<vmem>>, %arg2: memref<16x144xbf16, #tpu.memory_space<vmem>>, %arg3: memref<4x16x1xf32, #tpu.memory_space<vmem>>, %arg4: memref<16x512xf32, #tpu.memory_space<vmem>>, %arg5: memref<144x512xbf16, #tpu.memory_space<vmem>>, %arg6: memref<16x768xbf16, #tpu.memory_space<vmem>>) attributes {dimension_semantics = [], scalar_prefetch = 0 : i64, scratch_operands = 2 : i64, tpu.core_type = #tpu.core_type<tc>} {
    %0 = tpu.iota {dimensions = array<i32: 1>} : vector<1x512xi32>
    %c16_i32 = arith.constant 16 : i32
    %c0_i32 = arith.constant 0 : i32
    %1 = arith.cmpi eq, %c16_i32, %c0_i32 : i32
    %c1_i32 = arith.constant 1 : i32
    %2 = arith.select %1, %c1_i32, %c16_i32 : i32
    %3 = vector.broadcast %2 : i32 to vector<1x512xi32>
    %4 = arith.remsi %0, %3 : vector<1x512xi32>
    %c0_i32_0 = arith.constant 0 : i32
    %5 = vector.broadcast %c0_i32_0 : i32 to vector<1x512xi32>
    %6 = arith.cmpi ne, %4, %5 : vector<1x512xi32>
    %c0_i32_1 = arith.constant 0 : i32
    %7 = vector.broadcast %c0_i32_1 : i32 to vector<1x512xi32>
    %8 = arith.cmpi slt, %4, %7 : vector<1x512xi32>
    %c0_i32_2 = arith.constant 0 : i32
    %9 = arith.cmpi slt, %2, %c0_i32_2 : i32
    %10 = vector.broadcast %9 : i1 to vector<1x512xi1>
    %11 = vector.broadcast %10 : vector<1x512xi1> to vector<1x512xi1>
    %12 = arith.xori %8, %11 : vector<1x512xi1>
    %13 = arith.andi %12, %6 : vector<1x512xi1>
    %14 = vector.broadcast %2 : i32 to vector<1x512xi32>
    %15 = arith.addi %4, %14 : vector<1x512xi32>
    %16 = arith.select %13, %15, %4 : vector<1x512xi1>, vector<1x512xi32>
    %c256_i32 = arith.constant 256 : i32
    %c0_i32_3 = arith.constant 0 : i32
    %17 = arith.cmpi eq, %c256_i32, %c0_i32_3 : i32
    %c1_i32_4 = arith.constant 1 : i32
    %18 = arith.select %17, %c1_i32_4, %c256_i32 : i32
    %19 = vector.broadcast %18 : i32 to vector<1x512xi32>
    %20 = arith.remsi %0, %19 : vector<1x512xi32>
    %c0_i32_5 = arith.constant 0 : i32
    %21 = vector.broadcast %c0_i32_5 : i32 to vector<1x512xi32>
    %22 = arith.cmpi ne, %20, %21 : vector<1x512xi32>
    %c0_i32_6 = arith.constant 0 : i32
    %23 = vector.broadcast %c0_i32_6 : i32 to vector<1x512xi32>
    %24 = arith.cmpi slt, %20, %23 : vector<1x512xi32>
    %c0_i32_7 = arith.constant 0 : i32
    %25 = arith.cmpi slt, %18, %c0_i32_7 : i32
    %26 = vector.broadcast %25 : i1 to vector<1x512xi1>
    %27 = vector.broadcast %26 : vector<1x512xi1> to vector<1x512xi1>
    %28 = arith.xori %24, %27 : vector<1x512xi1>
    %29 = arith.andi %28, %22 : vector<1x512xi1>
    %30 = vector.broadcast %18 : i32 to vector<1x512xi32>
    %31 = arith.addi %20, %30 : vector<1x512xi32>
    %32 = arith.select %29, %31, %20 : vector<1x512xi1>, vector<1x512xi32>
    %c512_i32 = arith.constant 512 : i32
    %33 = vector.broadcast %c512_i32 : i32 to vector<1x512xi32>
    %34 = arith.cmpi slt, %0, %33 : vector<1x512xi32>
    %c14_i32 = arith.constant 14 : i32
    %35 = vector.broadcast %c14_i32 : i32 to vector<1x512xi32>
    %36 = arith.cmpi slt, %16, %35 : vector<1x512xi32>
    %37 = arith.andi %34, %36 : vector<1x512xi1>
    %c224_i32 = arith.constant 224 : i32
    %38 = vector.broadcast %c224_i32 : i32 to vector<1x512xi32>
    %39 = arith.cmpi slt, %32, %38 : vector<1x512xi32>
    %40 = arith.andi %37, %39 : vector<1x512xi1>
    %c12_i32 = arith.constant 12 : i32
    %41 = vector.broadcast %c12_i32 : i32 to vector<1x512xi32>
    %42 = arith.cmpi slt, %16, %41 : vector<1x512xi32>
    %43 = arith.andi %34, %42 : vector<1x512xi1>
    %c192_i32 = arith.constant 192 : i32
    %44 = vector.broadcast %c192_i32 : i32 to vector<1x512xi32>
    %45 = arith.cmpi slt, %32, %44 : vector<1x512xi32>
    %46 = arith.andi %43, %45 : vector<1x512xi1>
    %c0 = arith.constant 0 : index
    %c0_8 = arith.constant 0 : index
    %47 = vector.load %arg0[%c0, %c0_8] : memref<16x640xbf16, #tpu.memory_space<vmem>>, vector<16x512xbf16>
    %c0_9 = arith.constant 0 : index
    %c0_10 = arith.constant 0 : index
    %48 = vector.load %arg5[%c0_9, %c0_10] : memref<144x512xbf16, #tpu.memory_space<vmem>>, vector<16x512xbf16>
    tpu.vector_store %arg5[%c0_9, %c0_10], %47 {strides = array<i32>} : memref<144x512xbf16, #tpu.memory_space<vmem>>, vector<16x512xbf16>,
    %c0_11 = arith.constant 0 : index
    %c1 = arith.constant 1 : index
    %49 = vector.load %arg0[%c0_11, %c1] : memref<16x640xbf16, #tpu.memory_space<vmem>>, vector<16x512xbf16>
    %c16 = arith.constant 16 : index
    %c0_12 = arith.constant 0 : index
    %50 = vector.load %arg5[%c16, %c0_12] : memref<144x512xbf16, #tpu.memory_space<vmem>>, vector<16x512xbf16>
    tpu.vector_store %arg5[%c16, %c0_12], %49 {strides = array<i32>} : memref<144x512xbf16, #tpu.memory_space<vmem>>, vector<16x512xbf16>,
    %c0_13 = arith.constant 0 : index
    %c2 = arith.constant 2 : index
    %51 = vector.load %arg0[%c0_13, %c2] : memref<16x640xbf16, #tpu.memory_space<vmem>>, vector<16x512xbf16>
    %c32 = arith.constant 32 : index
    %c0_14 = arith.constant 0 : index
    %52 = vector.load %arg5[%c32, %c0_14] : memref<144x512xbf16, #tpu.memory_space<vmem>>, vector<16x512xbf16>
    tpu.vector_store %arg5[%c32, %c0_14], %51 {strides = array<i32>} : memref<144x512xbf16, #tpu.memory_space<vmem>>, vector<16x512xbf16>,
    %c0_15 = arith.constant 0 : index
    %c16_16 = arith.constant 16 : index
    %53 = vector.load %arg0[%c0_15, %c16_16] : memref<16x640xbf16, #tpu.memory_space<vmem>>, vector<16x512xbf16>
    %c48 = arith.constant 48 : index
    %c0_17 = arith.constant 0 : index
    %54 = vector.load %arg5[%c48, %c0_17] : memref<144x512xbf16, #tpu.memory_space<vmem>>, vector<16x512xbf16>
    tpu.vector_store %arg5[%c48, %c0_17], %53 {strides = array<i32>} : memref<144x512xbf16, #tpu.memory_space<vmem>>, vector<16x512xbf16>,
    %c0_18 = arith.constant 0 : index
    %c17 = arith.constant 17 : index
    %55 = vector.load %arg0[%c0_18, %c17] : memref<16x640xbf16, #tpu.memory_space<vmem>>, vector<16x512xbf16>
    %c64 = arith.constant 64 : index
    %c0_19 = arith.constant 0 : index
    %56 = vector.load %arg5[%c64, %c0_19] : memref<144x512xbf16, #tpu.memory_space<vmem>>, vector<16x512xbf16>
    tpu.vector_store %arg5[%c64, %c0_19], %55 {strides = array<i32>} : memref<144x512xbf16, #tpu.memory_space<vmem>>, vector<16x512xbf16>,
    %c0_20 = arith.constant 0 : index
    %c18 = arith.constant 18 : index
    %57 = vector.load %arg0[%c0_20, %c18] : memref<16x640xbf16, #tpu.memory_space<vmem>>, vector<16x512xbf16>
    %c80 = arith.constant 80 : index
    %c0_21 = arith.constant 0 : index
    %58 = vector.load %arg5[%c80, %c0_21] : memref<144x512xbf16, #tpu.memory_space<vmem>>, vector<16x512xbf16>
    tpu.vector_store %arg5[%c80, %c0_21], %57 {strides = array<i32>} : memref<144x512xbf16, #tpu.memory_space<vmem>>, vector<16x512xbf16>,
    %c0_22 = arith.constant 0 : index
    %c32_23 = arith.constant 32 : index
    %59 = vector.load %arg0[%c0_22, %c32_23] : memref<16x640xbf16, #tpu.memory_space<vmem>>, vector<16x512xbf16>
    %c96 = arith.constant 96 : index
    %c0_24 = arith.constant 0 : index
    %60 = vector.load %arg5[%c96, %c0_24] : memref<144x512xbf16, #tpu.memory_space<vmem>>, vector<16x512xbf16>
    tpu.vector_store %arg5[%c96, %c0_24], %59 {strides = array<i32>} : memref<144x512xbf16, #tpu.memory_space<vmem>>, vector<16x512xbf16>,
    %c0_25 = arith.constant 0 : index
    %c33 = arith.constant 33 : index
    %61 = vector.load %arg0[%c0_25, %c33] : memref<16x640xbf16, #tpu.memory_space<vmem>>, vector<16x512xbf16>
    %c112 = arith.constant 112 : index
    %c0_26 = arith.constant 0 : index
    %62 = vector.load %arg5[%c112, %c0_26] : memref<144x512xbf16, #tpu.memory_space<vmem>>, vector<16x512xbf16>
    tpu.vector_store %arg5[%c112, %c0_26], %61 {strides = array<i32>} : memref<144x512xbf16, #tpu.memory_space<vmem>>, vector<16x512xbf16>,
    %c0_27 = arith.constant 0 : index
    %c34 = arith.constant 34 : index
    %63 = vector.load %arg0[%c0_27, %c34] : memref<16x640xbf16, #tpu.memory_space<vmem>>, vector<16x512xbf16>
    %c128 = arith.constant 128 : index
    %c0_28 = arith.constant 0 : index
    %64 = vector.load %arg5[%c128, %c0_28] : memref<144x512xbf16, #tpu.memory_space<vmem>>, vector<16x512xbf16>
    tpu.vector_store %arg5[%c128, %c0_28], %63 {strides = array<i32>} : memref<144x512xbf16, #tpu.memory_space<vmem>>, vector<16x512xbf16>,
    %c0_29 = arith.constant 0 : index
    %c0_30 = arith.constant 0 : index
    %65 = vector.load %arg1[%c0_29, %c0_30] : memref<16x144xbf16, #tpu.memory_space<vmem>>, vector<16x144xbf16>
    %c0_31 = arith.constant 0 : index
    %c0_32 = arith.constant 0 : index
    %66 = vector.load %arg5[%c0_31, %c0_32] : memref<144x512xbf16, #tpu.memory_space<vmem>>, vector<144x512xbf16>
    %cst = arith.constant dense<0.000000e+00> : vector<16x512xf32>
    %67 = tpu.matmul %65, %66, %cst {dimension_numbers = #tpu.dot_dimension_numbers<[1], [0], [0], [1], [0, 0, 1, 1], [], []>} : vector<16x144xbf16>, vector<144x512xbf16>, vector<16x512xf32> -> vector<16x512xf32>
    %cst_33 = arith.constant 0.000000e+00 : f32
    %68 = vector.shape_cast %40 : vector<1x512xi1> to vector<1x512xi1>
    %69 = vector.broadcast %68 : vector<1x512xi1> to vector<16x512xi1>
    %70 = vector.broadcast %cst_33 : f32 to vector<16x512xf32>
    %71 = arith.select %69, %67, %70 : vector<16x512xi1>, vector<16x512xf32>
    %cst_34 = arith.constant dense<0.000000e+00> : vector<16xf32>
    %72 = vector.multi_reduction <add>, %71, %cst_34 [1] : vector<16x512xf32> to vector<16xf32>
    %73 = vector.shape_cast %72 : vector<16xf32> to vector<16x1xf32>
    %cst_35 = arith.constant 0.00255102036 : f32
    %74 = vector.broadcast %cst_35 : f32 to vector<16x1xf32>
    %75 = arith.mulf %73, %74 : vector<16x1xf32>
    %76 = arith.mulf %71, %71 : vector<16x512xf32>
    %cst_36 = arith.constant dense<0.000000e+00> : vector<16xf32>
    %77 = vector.multi_reduction <add>, %76, %cst_36 [1] : vector<16x512xf32> to vector<16xf32>
    %78 = vector.shape_cast %77 : vector<16xf32> to vector<16x1xf32>
    %cst_37 = arith.constant 0.00255102036 : f32
    %79 = vector.broadcast %cst_37 : f32 to vector<16x1xf32>
    %80 = arith.mulf %78, %79 : vector<16x1xf32>
    %81 = arith.mulf %75, %75 : vector<16x1xf32>
    %82 = arith.subf %80, %81 : vector<16x1xf32>
    %c0_38 = arith.constant 0 : index
    %c0_39 = arith.constant 0 : index
    %c0_40 = arith.constant 0 : index
    %83 = vector.load %arg3[%c0_38, %c0_39, %c0_40] : memref<4x16x1xf32, #tpu.memory_space<vmem>>, vector<1x16x1xf32>
    %84 = vector.shape_cast %83 : vector<1x16x1xf32> to vector<16x1xf32>
    %85 = vector.broadcast %75 : vector<16x1xf32> to vector<16x512xf32>
    %86 = arith.subf %67, %85 : vector<16x512xf32>
    %87 = vector.broadcast %84 : vector<16x1xf32> to vector<16x512xf32>
    %88 = arith.mulf %87, %86 : vector<16x512xf32>
    %cst_41 = arith.constant 9.99999974E-6 : f32
    %89 = vector.broadcast %cst_41 : f32 to vector<16x1xf32>
    %90 = arith.addf %82, %89 : vector<16x1xf32>
    %91 = math.rsqrt %90 : vector<16x1xf32>
    %92 = vector.broadcast %91 : vector<16x1xf32> to vector<16x512xf32>
    %93 = arith.mulf %88, %92 : vector<16x512xf32>
    %c1_42 = arith.constant 1 : index
    %c0_43 = arith.constant 0 : index
    %c0_44 = arith.constant 0 : index
    %94 = vector.load %arg3[%c1_42, %c0_43, %c0_44] : memref<4x16x1xf32, #tpu.memory_space<vmem>>, vector<1x16x1xf32>
    %95 = vector.shape_cast %94 : vector<1x16x1xf32> to vector<16x1xf32>
    %96 = vector.broadcast %95 : vector<16x1xf32> to vector<16x512xf32>
    %97 = arith.addf %93, %96 : vector<16x512xf32>
    %cst_45 = arith.constant 0.000000e+00 : f32
    %98 = vector.broadcast %cst_45 : f32 to vector<16x512xf32>
    %99 = arith.maximumf %97, %98 : vector<16x512xf32>
    %cst_46 = arith.constant 0.000000e+00 : f32
    %100 = vector.shape_cast %40 : vector<1x512xi1> to vector<1x512xi1>
    %101 = vector.broadcast %100 : vector<1x512xi1> to vector<16x512xi1>
    %102 = vector.broadcast %cst_46 : f32 to vector<16x512xf32>
    %103 = arith.select %101, %99, %102 : vector<16x512xi1>, vector<16x512xf32>
    %cst_47 = arith.constant 0.000000e+00 : bf16
    %104 = vector.broadcast %cst_47 : bf16 to vector<16x128xbf16>
    %c0_48 = arith.constant 0 : index
    %c0_49 = arith.constant 0 : index
    %105 = vector.load %arg6[%c0_48, %c0_49] : memref<16x768xbf16, #tpu.memory_space<vmem>>, vector<16x128xbf16>
    tpu.vector_store %arg6[%c0_48, %c0_49], %104 {strides = array<i32>} : memref<16x768xbf16, #tpu.memory_space<vmem>>, vector<16x128xbf16>,
    %cst_50 = arith.constant 0.000000e+00 : bf16
    %106 = vector.broadcast %cst_50 : bf16 to vector<16x128xbf16>
    %c0_51 = arith.constant 0 : index
    %c640 = arith.constant 640 : index
    %107 = vector.load %arg6[%c0_51, %c640] : memref<16x768xbf16, #tpu.memory_space<vmem>>, vector<16x128xbf16>
    tpu.vector_store %arg6[%c0_51, %c640], %106 {strides = array<i32>} : memref<16x768xbf16, #tpu.memory_space<vmem>>, vector<16x128xbf16>,
    %108 = arith.truncf %103 : vector<16x512xf32> to vector<16x512xbf16>
    %c0_52 = arith.constant 0 : index
    %c128_53 = arith.constant 128 : index
    %109 = vector.load %arg6[%c0_52, %c128_53] : memref<16x768xbf16, #tpu.memory_space<vmem>>, vector<16x512xbf16>
    tpu.vector_store %arg6[%c0_52, %c128_53], %108 {strides = array<i32>} : memref<16x768xbf16, #tpu.memory_space<vmem>>, vector<16x512xbf16>,
    %c0_54 = arith.constant 0 : index
    %c128_55 = arith.constant 128 : index
    %110 = vector.load %arg6[%c0_54, %c128_55] : memref<16x768xbf16, #tpu.memory_space<vmem>>, vector<16x512xbf16>
    %c0_56 = arith.constant 0 : index
    %c0_57 = arith.constant 0 : index
    %111 = vector.load %arg5[%c0_56, %c0_57] : memref<144x512xbf16, #tpu.memory_space<vmem>>, vector<16x512xbf16>
    tpu.vector_store %arg5[%c0_56, %c0_57], %110 {strides = array<i32>} : memref<144x512xbf16, #tpu.memory_space<vmem>>, vector<16x512xbf16>,
    %c0_58 = arith.constant 0 : index
    %c129 = arith.constant 129 : index
    %112 = vector.load %arg6[%c0_58, %c129] : memref<16x768xbf16, #tpu.memory_space<vmem>>, vector<16x512xbf16>
    %c16_59 = arith.constant 16 : index
    %c0_60 = arith.constant 0 : index
    %113 = vector.load %arg5[%c16_59, %c0_60] : memref<144x512xbf16, #tpu.memory_space<vmem>>, vector<16x512xbf16>
    tpu.vector_store %arg5[%c16_59, %c0_60], %112 {strides = array<i32>} : memref<144x512xbf16, #tpu.memory_space<vmem>>, vector<16x512xbf16>,
    %c0_61 = arith.constant 0 : index
    %c130 = arith.constant 130 : index
    %114 = vector.load %arg6[%c0_61, %c130] : memref<16x768xbf16, #tpu.memory_space<vmem>>, vector<16x512xbf16>
    %c32_62 = arith.constant 32 : index
    %c0_63 = arith.constant 0 : index
    %115 = vector.load %arg5[%c32_62, %c0_63] : memref<144x512xbf16, #tpu.memory_space<vmem>>, vector<16x512xbf16>
    tpu.vector_store %arg5[%c32_62, %c0_63], %114 {strides = array<i32>} : memref<144x512xbf16, #tpu.memory_space<vmem>>, vector<16x512xbf16>,
    %c0_64 = arith.constant 0 : index
    %c144 = arith.constant 144 : index
    %116 = vector.load %arg6[%c0_64, %c144] : memref<16x768xbf16, #tpu.memory_space<vmem>>, vector<16x512xbf16>
    %c48_65 = arith.constant 48 : index
    %c0_66 = arith.constant 0 : index
    %117 = vector.load %arg5[%c48_65, %c0_66] : memref<144x512xbf16, #tpu.memory_space<vmem>>, vector<16x512xbf16>
    tpu.vector_store %arg5[%c48_65, %c0_66], %116 {strides = array<i32>} : memref<144x512xbf16, #tpu.memory_space<vmem>>, vector<16x512xbf16>,
    %c0_67 = arith.constant 0 : index
    %c145 = arith.constant 145 : index
    %118 = vector.load %arg6[%c0_67, %c145] : memref<16x768xbf16, #tpu.memory_space<vmem>>, vector<16x512xbf16>
    %c64_68 = arith.constant 64 : index
    %c0_69 = arith.constant 0 : index
    %119 = vector.load %arg5[%c64_68, %c0_69] : memref<144x512xbf16, #tpu.memory_space<vmem>>, vector<16x512xbf16>
    tpu.vector_store %arg5[%c64_68, %c0_69], %118 {strides = array<i32>} : memref<144x512xbf16, #tpu.memory_space<vmem>>, vector<16x512xbf16>,
    %c0_70 = arith.constant 0 : index
    %c146 = arith.constant 146 : index
    %120 = vector.load %arg6[%c0_70, %c146] : memref<16x768xbf16, #tpu.memory_space<vmem>>, vector<16x512xbf16>
    %c80_71 = arith.constant 80 : index
    %c0_72 = arith.constant 0 : index
    %121 = vector.load %arg5[%c80_71, %c0_72] : memref<144x512xbf16, #tpu.memory_space<vmem>>, vector<16x512xbf16>
    tpu.vector_store %arg5[%c80_71, %c0_72], %120 {strides = array<i32>} : memref<144x512xbf16, #tpu.memory_space<vmem>>, vector<16x512xbf16>,
    %c0_73 = arith.constant 0 : index
    %c160 = arith.constant 160 : index
    %122 = vector.load %arg6[%c0_73, %c160] : memref<16x768xbf16, #tpu.memory_space<vmem>>, vector<16x512xbf16>
    %c96_74 = arith.constant 96 : index
    %c0_75 = arith.constant 0 : index
    %123 = vector.load %arg5[%c96_74, %c0_75] : memref<144x512xbf16, #tpu.memory_space<vmem>>, vector<16x512xbf16>
    tpu.vector_store %arg5[%c96_74, %c0_75], %122 {strides = array<i32>} : memref<144x512xbf16, #tpu.memory_space<vmem>>, vector<16x512xbf16>,
    %c0_76 = arith.constant 0 : index
    %c161 = arith.constant 161 : index
    %124 = vector.load %arg6[%c0_76, %c161] : memref<16x768xbf16, #tpu.memory_space<vmem>>, vector<16x512xbf16>
    %c112_77 = arith.constant 112 : index
    %c0_78 = arith.constant 0 : index
    %125 = vector.load %arg5[%c112_77, %c0_78] : memref<144x512xbf16, #tpu.memory_space<vmem>>, vector<16x512xbf16>
    tpu.vector_store %arg5[%c112_77, %c0_78], %124 {strides = array<i32>} : memref<144x512xbf16, #tpu.memory_space<vmem>>, vector<16x512xbf16>,
    %c0_79 = arith.constant 0 : index
    %c162 = arith.constant 162 : index
    %126 = vector.load %arg6[%c0_79, %c162] : memref<16x768xbf16, #tpu.memory_space<vmem>>, vector<16x512xbf16>
    %c128_80 = arith.constant 128 : index
    %c0_81 = arith.constant 0 : index
    %127 = vector.load %arg5[%c128_80, %c0_81] : memref<144x512xbf16, #tpu.memory_space<vmem>>, vector<16x512xbf16>
    tpu.vector_store %arg5[%c128_80, %c0_81], %126 {strides = array<i32>} : memref<144x512xbf16, #tpu.memory_space<vmem>>, vector<16x512xbf16>,
    %c0_82 = arith.constant 0 : index
    %c0_83 = arith.constant 0 : index
    %128 = vector.load %arg2[%c0_82, %c0_83] : memref<16x144xbf16, #tpu.memory_space<vmem>>, vector<16x144xbf16>
    %c0_84 = arith.constant 0 : index
    %c0_85 = arith.constant 0 : index
    %129 = vector.load %arg5[%c0_84, %c0_85] : memref<144x512xbf16, #tpu.memory_space<vmem>>, vector<144x512xbf16>
    %cst_86 = arith.constant dense<0.000000e+00> : vector<16x512xf32>
    %130 = tpu.matmul %128, %129, %cst_86 {dimension_numbers = #tpu.dot_dimension_numbers<[1], [0], [0], [1], [0, 0, 1, 1], [], []>} : vector<16x144xbf16>, vector<144x512xbf16>, vector<16x512xf32> -> vector<16x512xf32>
    %cst_87 = arith.constant 0.000000e+00 : f32
    %131 = vector.shape_cast %46 : vector<1x512xi1> to vector<1x512xi1>
    %132 = vector.broadcast %131 : vector<1x512xi1> to vector<16x512xi1>
    %133 = vector.broadcast %cst_87 : f32 to vector<16x512xf32>
    %134 = arith.select %132, %130, %133 : vector<16x512xi1>, vector<16x512xf32>
    %cst_88 = arith.constant dense<0.000000e+00> : vector<16xf32>
    %135 = vector.multi_reduction <add>, %134, %cst_88 [1] : vector<16x512xf32> to vector<16xf32>
    %136 = vector.shape_cast %135 : vector<16xf32> to vector<16x1xf32>
    %cst_89 = arith.constant 0.00347222225 : f32
    %137 = vector.broadcast %cst_89 : f32 to vector<16x1xf32>
    %138 = arith.mulf %136, %137 : vector<16x1xf32>
    %139 = arith.mulf %134, %134 : vector<16x512xf32>
    %cst_90 = arith.constant dense<0.000000e+00> : vector<16xf32>
    %140 = vector.multi_reduction <add>, %139, %cst_90 [1] : vector<16x512xf32> to vector<16xf32>
    %141 = vector.shape_cast %140 : vector<16xf32> to vector<16x1xf32>
    %cst_91 = arith.constant 0.00347222225 : f32
    %142 = vector.broadcast %cst_91 : f32 to vector<16x1xf32>
    %143 = arith.mulf %141, %142 : vector<16x1xf32>
    %144 = arith.mulf %138, %138 : vector<16x1xf32>
    %145 = arith.subf %143, %144 : vector<16x1xf32>
    %c2_92 = arith.constant 2 : index
    %c0_93 = arith.constant 0 : index
    %c0_94 = arith.constant 0 : index
    %146 = vector.load %arg3[%c2_92, %c0_93, %c0_94] : memref<4x16x1xf32, #tpu.memory_space<vmem>>, vector<1x16x1xf32>
    %147 = vector.shape_cast %146 : vector<1x16x1xf32> to vector<16x1xf32>
    %148 = vector.broadcast %138 : vector<16x1xf32> to vector<16x512xf32>
    %149 = arith.subf %130, %148 : vector<16x512xf32>
    %150 = vector.broadcast %147 : vector<16x1xf32> to vector<16x512xf32>
    %151 = arith.mulf %150, %149 : vector<16x512xf32>
    %cst_95 = arith.constant 9.99999974E-6 : f32
    %152 = vector.broadcast %cst_95 : f32 to vector<16x1xf32>
    %153 = arith.addf %145, %152 : vector<16x1xf32>
    %154 = math.rsqrt %153 : vector<16x1xf32>
    %155 = vector.broadcast %154 : vector<16x1xf32> to vector<16x512xf32>
    %156 = arith.mulf %151, %155 : vector<16x512xf32>
    %c3 = arith.constant 3 : index
    %c0_96 = arith.constant 0 : index
    %c0_97 = arith.constant 0 : index
    %157 = vector.load %arg3[%c3, %c0_96, %c0_97] : memref<4x16x1xf32, #tpu.memory_space<vmem>>, vector<1x16x1xf32>
    %158 = vector.shape_cast %157 : vector<1x16x1xf32> to vector<16x1xf32>
    %159 = vector.broadcast %158 : vector<16x1xf32> to vector<16x512xf32>
    %160 = arith.addf %156, %159 : vector<16x512xf32>
    %cst_98 = arith.constant 0.000000e+00 : f32
    %161 = vector.broadcast %cst_98 : f32 to vector<16x512xf32>
    %162 = arith.maximumf %160, %161 : vector<16x512xf32>
    %c0_99 = arith.constant 0 : index
    %c0_100 = arith.constant 0 : index
    %163 = vector.load %arg4[%c0_99, %c0_100] : memref<16x512xf32, #tpu.memory_space<vmem>>, vector<16x512xf32>
    tpu.vector_store %arg4[%c0_99, %c0_100], %162 {strides = array<i32>} : memref<16x512xf32, #tpu.memory_space<vmem>>, vector<16x512xf32>,
    return
  }
}

module attributes {stable_mosaic.version = 11 : i64} {
  func.func @kernel(%arg0: memref<16x256xbf16, #tpu.memory_space<vmem>>, %arg1: memref<16x144xbf16, #tpu.memory_space<vmem>>, %arg2: memref<16x144xbf16, #tpu.memory_space<vmem>>, %arg3: memref<4x16x1xf32, #tpu.memory_space<vmem>>, %arg4: memref<16x128xf32, #tpu.memory_space<vmem>>, %arg5: memref<144x128xbf16, #tpu.memory_space<vmem>>, %arg6: memref<16x384xbf16, #tpu.memory_space<vmem>>) attributes {dimension_semantics = [], scalar_prefetch = 0 : i64, scratch_operands = 2 : i64, tpu.core_type = #tpu.core_type<tc>} {
    %0 = tpu.iota {dimensions = array<i32: 1>} : vector<1x128xi32>
    %c6_i32 = arith.constant 6 : i32
    %c0_i32 = arith.constant 0 : i32
    %1 = arith.cmpi eq, %c6_i32, %c0_i32 : i32
    %c1_i32 = arith.constant 1 : i32
    %2 = arith.select %1, %c1_i32, %c6_i32 : i32
    %3 = vector.broadcast %2 : i32 to vector<1x128xi32>
    %4 = arith.remsi %0, %3 : vector<1x128xi32>
    %c0_i32_0 = arith.constant 0 : i32
    %5 = vector.broadcast %c0_i32_0 : i32 to vector<1x128xi32>
    %6 = arith.cmpi ne, %4, %5 : vector<1x128xi32>
    %c0_i32_1 = arith.constant 0 : i32
    %7 = vector.broadcast %c0_i32_1 : i32 to vector<1x128xi32>
    %8 = arith.cmpi slt, %4, %7 : vector<1x128xi32>
    %c0_i32_2 = arith.constant 0 : i32
    %9 = arith.cmpi slt, %2, %c0_i32_2 : i32
    %10 = vector.broadcast %9 : i1 to vector<1x128xi1>
    %11 = vector.broadcast %10 : vector<1x128xi1> to vector<1x128xi1>
    %12 = arith.xori %8, %11 : vector<1x128xi1>
    %13 = arith.andi %12, %6 : vector<1x128xi1>
    %14 = vector.broadcast %2 : i32 to vector<1x128xi32>
    %15 = arith.addi %4, %14 : vector<1x128xi32>
    %16 = arith.select %13, %15, %4 : vector<1x128xi1>, vector<1x128xi32>
    %c36_i32 = arith.constant 36 : i32
    %c0_i32_3 = arith.constant 0 : i32
    %17 = arith.cmpi eq, %c36_i32, %c0_i32_3 : i32
    %c1_i32_4 = arith.constant 1 : i32
    %18 = arith.select %17, %c1_i32_4, %c36_i32 : i32
    %19 = vector.broadcast %18 : i32 to vector<1x128xi32>
    %20 = arith.remsi %0, %19 : vector<1x128xi32>
    %c0_i32_5 = arith.constant 0 : i32
    %21 = vector.broadcast %c0_i32_5 : i32 to vector<1x128xi32>
    %22 = arith.cmpi ne, %20, %21 : vector<1x128xi32>
    %c0_i32_6 = arith.constant 0 : i32
    %23 = vector.broadcast %c0_i32_6 : i32 to vector<1x128xi32>
    %24 = arith.cmpi slt, %20, %23 : vector<1x128xi32>
    %c0_i32_7 = arith.constant 0 : i32
    %25 = arith.cmpi slt, %18, %c0_i32_7 : i32
    %26 = vector.broadcast %25 : i1 to vector<1x128xi1>
    %27 = vector.broadcast %26 : vector<1x128xi1> to vector<1x128xi1>
    %28 = arith.xori %24, %27 : vector<1x128xi1>
    %29 = arith.andi %28, %22 : vector<1x128xi1>
    %30 = vector.broadcast %18 : i32 to vector<1x128xi32>
    %31 = arith.addi %20, %30 : vector<1x128xi32>
    %32 = arith.select %29, %31, %20 : vector<1x128xi1>, vector<1x128xi32>
    %c72_i32 = arith.constant 72 : i32
    %33 = vector.broadcast %c72_i32 : i32 to vector<1x128xi32>
    %34 = arith.cmpi slt, %0, %33 : vector<1x128xi32>
    %c4_i32 = arith.constant 4 : i32
    %35 = vector.broadcast %c4_i32 : i32 to vector<1x128xi32>
    %36 = arith.cmpi slt, %16, %35 : vector<1x128xi32>
    %37 = arith.andi %34, %36 : vector<1x128xi1>
    %c24_i32 = arith.constant 24 : i32
    %38 = vector.broadcast %c24_i32 : i32 to vector<1x128xi32>
    %39 = arith.cmpi slt, %32, %38 : vector<1x128xi32>
    %40 = arith.andi %37, %39 : vector<1x128xi1>
    %c2_i32 = arith.constant 2 : i32
    %41 = vector.broadcast %c2_i32 : i32 to vector<1x128xi32>
    %42 = arith.cmpi slt, %16, %41 : vector<1x128xi32>
    %43 = arith.andi %34, %42 : vector<1x128xi1>
    %c12_i32 = arith.constant 12 : i32
    %44 = vector.broadcast %c12_i32 : i32 to vector<1x128xi32>
    %45 = arith.cmpi slt, %32, %44 : vector<1x128xi32>
    %46 = arith.andi %43, %45 : vector<1x128xi1>
    %c0 = arith.constant 0 : index
    %c0_8 = arith.constant 0 : index
    %47 = vector.load %arg0[%c0, %c0_8] : memref<16x256xbf16, #tpu.memory_space<vmem>>, vector<16x128xbf16>
    %c0_9 = arith.constant 0 : index
    %c0_10 = arith.constant 0 : index
    %48 = vector.load %arg5[%c0_9, %c0_10] : memref<144x128xbf16, #tpu.memory_space<vmem>>, vector<16x128xbf16>
    tpu.vector_store %arg5[%c0_9, %c0_10], %47 {strides = array<i32>} : memref<144x128xbf16, #tpu.memory_space<vmem>>, vector<16x128xbf16>,
    %c0_11 = arith.constant 0 : index
    %c1 = arith.constant 1 : index
    %49 = vector.load %arg0[%c0_11, %c1] : memref<16x256xbf16, #tpu.memory_space<vmem>>, vector<16x128xbf16>
    %c16 = arith.constant 16 : index
    %c0_12 = arith.constant 0 : index
    %50 = vector.load %arg5[%c16, %c0_12] : memref<144x128xbf16, #tpu.memory_space<vmem>>, vector<16x128xbf16>
    tpu.vector_store %arg5[%c16, %c0_12], %49 {strides = array<i32>} : memref<144x128xbf16, #tpu.memory_space<vmem>>, vector<16x128xbf16>,
    %c0_13 = arith.constant 0 : index
    %c2 = arith.constant 2 : index
    %51 = vector.load %arg0[%c0_13, %c2] : memref<16x256xbf16, #tpu.memory_space<vmem>>, vector<16x128xbf16>
    %c32 = arith.constant 32 : index
    %c0_14 = arith.constant 0 : index
    %52 = vector.load %arg5[%c32, %c0_14] : memref<144x128xbf16, #tpu.memory_space<vmem>>, vector<16x128xbf16>
    tpu.vector_store %arg5[%c32, %c0_14], %51 {strides = array<i32>} : memref<144x128xbf16, #tpu.memory_space<vmem>>, vector<16x128xbf16>,
    %c0_15 = arith.constant 0 : index
    %c6 = arith.constant 6 : index
    %53 = vector.load %arg0[%c0_15, %c6] : memref<16x256xbf16, #tpu.memory_space<vmem>>, vector<16x128xbf16>
    %c48 = arith.constant 48 : index
    %c0_16 = arith.constant 0 : index
    %54 = vector.load %arg5[%c48, %c0_16] : memref<144x128xbf16, #tpu.memory_space<vmem>>, vector<16x128xbf16>
    tpu.vector_store %arg5[%c48, %c0_16], %53 {strides = array<i32>} : memref<144x128xbf16, #tpu.memory_space<vmem>>, vector<16x128xbf16>,
    %c0_17 = arith.constant 0 : index
    %c7 = arith.constant 7 : index
    %55 = vector.load %arg0[%c0_17, %c7] : memref<16x256xbf16, #tpu.memory_space<vmem>>, vector<16x128xbf16>
    %c64 = arith.constant 64 : index
    %c0_18 = arith.constant 0 : index
    %56 = vector.load %arg5[%c64, %c0_18] : memref<144x128xbf16, #tpu.memory_space<vmem>>, vector<16x128xbf16>
    tpu.vector_store %arg5[%c64, %c0_18], %55 {strides = array<i32>} : memref<144x128xbf16, #tpu.memory_space<vmem>>, vector<16x128xbf16>,
    %c0_19 = arith.constant 0 : index
    %c8 = arith.constant 8 : index
    %57 = vector.load %arg0[%c0_19, %c8] : memref<16x256xbf16, #tpu.memory_space<vmem>>, vector<16x128xbf16>
    %c80 = arith.constant 80 : index
    %c0_20 = arith.constant 0 : index
    %58 = vector.load %arg5[%c80, %c0_20] : memref<144x128xbf16, #tpu.memory_space<vmem>>, vector<16x128xbf16>
    tpu.vector_store %arg5[%c80, %c0_20], %57 {strides = array<i32>} : memref<144x128xbf16, #tpu.memory_space<vmem>>, vector<16x128xbf16>,
    %c0_21 = arith.constant 0 : index
    %c12 = arith.constant 12 : index
    %59 = vector.load %arg0[%c0_21, %c12] : memref<16x256xbf16, #tpu.memory_space<vmem>>, vector<16x128xbf16>
    %c96 = arith.constant 96 : index
    %c0_22 = arith.constant 0 : index
    %60 = vector.load %arg5[%c96, %c0_22] : memref<144x128xbf16, #tpu.memory_space<vmem>>, vector<16x128xbf16>
    tpu.vector_store %arg5[%c96, %c0_22], %59 {strides = array<i32>} : memref<144x128xbf16, #tpu.memory_space<vmem>>, vector<16x128xbf16>,
    %c0_23 = arith.constant 0 : index
    %c13 = arith.constant 13 : index
    %61 = vector.load %arg0[%c0_23, %c13] : memref<16x256xbf16, #tpu.memory_space<vmem>>, vector<16x128xbf16>
    %c112 = arith.constant 112 : index
    %c0_24 = arith.constant 0 : index
    %62 = vector.load %arg5[%c112, %c0_24] : memref<144x128xbf16, #tpu.memory_space<vmem>>, vector<16x128xbf16>
    tpu.vector_store %arg5[%c112, %c0_24], %61 {strides = array<i32>} : memref<144x128xbf16, #tpu.memory_space<vmem>>, vector<16x128xbf16>,
    %c0_25 = arith.constant 0 : index
    %c14 = arith.constant 14 : index
    %63 = vector.load %arg0[%c0_25, %c14] : memref<16x256xbf16, #tpu.memory_space<vmem>>, vector<16x128xbf16>
    %c128 = arith.constant 128 : index
    %c0_26 = arith.constant 0 : index
    %64 = vector.load %arg5[%c128, %c0_26] : memref<144x128xbf16, #tpu.memory_space<vmem>>, vector<16x128xbf16>
    tpu.vector_store %arg5[%c128, %c0_26], %63 {strides = array<i32>} : memref<144x128xbf16, #tpu.memory_space<vmem>>, vector<16x128xbf16>,
    %c0_27 = arith.constant 0 : index
    %c0_28 = arith.constant 0 : index
    %65 = vector.load %arg1[%c0_27, %c0_28] : memref<16x144xbf16, #tpu.memory_space<vmem>>, vector<16x144xbf16>
    %c0_29 = arith.constant 0 : index
    %c0_30 = arith.constant 0 : index
    %66 = vector.load %arg5[%c0_29, %c0_30] : memref<144x128xbf16, #tpu.memory_space<vmem>>, vector<144x128xbf16>
    %cst = arith.constant dense<0.000000e+00> : vector<16x128xf32>
    %67 = tpu.matmul %65, %66, %cst {dimension_numbers = #tpu.dot_dimension_numbers<[1], [0], [0], [1], [0, 0, 1, 1], [], []>} : vector<16x144xbf16>, vector<144x128xbf16>, vector<16x128xf32> -> vector<16x128xf32>
    %cst_31 = arith.constant 0.000000e+00 : f32
    %68 = vector.shape_cast %40 : vector<1x128xi1> to vector<1x128xi1>
    %69 = vector.broadcast %68 : vector<1x128xi1> to vector<16x128xi1>
    %70 = vector.broadcast %cst_31 : f32 to vector<16x128xf32>
    %71 = arith.select %69, %67, %70 : vector<16x128xi1>, vector<16x128xf32>
    %cst_32 = arith.constant dense<0.000000e+00> : vector<16xf32>
    %72 = vector.multi_reduction <add>, %71, %cst_32 [1] : vector<16x128xf32> to vector<16xf32>
    %73 = vector.shape_cast %72 : vector<16xf32> to vector<16x1xf32>
    %cst_33 = arith.constant 3.125000e-02 : f32
    %74 = vector.broadcast %cst_33 : f32 to vector<16x1xf32>
    %75 = arith.mulf %73, %74 : vector<16x1xf32>
    %76 = arith.mulf %71, %71 : vector<16x128xf32>
    %cst_34 = arith.constant dense<0.000000e+00> : vector<16xf32>
    %77 = vector.multi_reduction <add>, %76, %cst_34 [1] : vector<16x128xf32> to vector<16xf32>
    %78 = vector.shape_cast %77 : vector<16xf32> to vector<16x1xf32>
    %cst_35 = arith.constant 3.125000e-02 : f32
    %79 = vector.broadcast %cst_35 : f32 to vector<16x1xf32>
    %80 = arith.mulf %78, %79 : vector<16x1xf32>
    %81 = arith.mulf %75, %75 : vector<16x1xf32>
    %82 = arith.subf %80, %81 : vector<16x1xf32>
    %c0_36 = arith.constant 0 : index
    %c0_37 = arith.constant 0 : index
    %c0_38 = arith.constant 0 : index
    %83 = vector.load %arg3[%c0_36, %c0_37, %c0_38] : memref<4x16x1xf32, #tpu.memory_space<vmem>>, vector<1x16x1xf32>
    %84 = vector.shape_cast %83 : vector<1x16x1xf32> to vector<16x1xf32>
    %85 = vector.broadcast %75 : vector<16x1xf32> to vector<16x128xf32>
    %86 = arith.subf %67, %85 : vector<16x128xf32>
    %87 = vector.broadcast %84 : vector<16x1xf32> to vector<16x128xf32>
    %88 = arith.mulf %87, %86 : vector<16x128xf32>
    %cst_39 = arith.constant 9.99999974E-6 : f32
    %89 = vector.broadcast %cst_39 : f32 to vector<16x1xf32>
    %90 = arith.addf %82, %89 : vector<16x1xf32>
    %91 = math.rsqrt %90 : vector<16x1xf32>
    %92 = vector.broadcast %91 : vector<16x1xf32> to vector<16x128xf32>
    %93 = arith.mulf %88, %92 : vector<16x128xf32>
    %c1_40 = arith.constant 1 : index
    %c0_41 = arith.constant 0 : index
    %c0_42 = arith.constant 0 : index
    %94 = vector.load %arg3[%c1_40, %c0_41, %c0_42] : memref<4x16x1xf32, #tpu.memory_space<vmem>>, vector<1x16x1xf32>
    %95 = vector.shape_cast %94 : vector<1x16x1xf32> to vector<16x1xf32>
    %96 = vector.broadcast %95 : vector<16x1xf32> to vector<16x128xf32>
    %97 = arith.addf %93, %96 : vector<16x128xf32>
    %cst_43 = arith.constant 0.000000e+00 : f32
    %98 = vector.broadcast %cst_43 : f32 to vector<16x128xf32>
    %99 = arith.maximumf %97, %98 : vector<16x128xf32>
    %cst_44 = arith.constant 0.000000e+00 : f32
    %100 = vector.shape_cast %40 : vector<1x128xi1> to vector<1x128xi1>
    %101 = vector.broadcast %100 : vector<1x128xi1> to vector<16x128xi1>
    %102 = vector.broadcast %cst_44 : f32 to vector<16x128xf32>
    %103 = arith.select %101, %99, %102 : vector<16x128xi1>, vector<16x128xf32>
    %cst_45 = arith.constant 0.000000e+00 : bf16
    %104 = vector.broadcast %cst_45 : bf16 to vector<16x128xbf16>
    %c0_46 = arith.constant 0 : index
    %c0_47 = arith.constant 0 : index
    %105 = vector.load %arg6[%c0_46, %c0_47] : memref<16x384xbf16, #tpu.memory_space<vmem>>, vector<16x128xbf16>
    tpu.vector_store %arg6[%c0_46, %c0_47], %104 {strides = array<i32>} : memref<16x384xbf16, #tpu.memory_space<vmem>>, vector<16x128xbf16>,
    %cst_48 = arith.constant 0.000000e+00 : bf16
    %106 = vector.broadcast %cst_48 : bf16 to vector<16x128xbf16>
    %c0_49 = arith.constant 0 : index
    %c256 = arith.constant 256 : index
    %107 = vector.load %arg6[%c0_49, %c256] : memref<16x384xbf16, #tpu.memory_space<vmem>>, vector<16x128xbf16>
    tpu.vector_store %arg6[%c0_49, %c256], %106 {strides = array<i32>} : memref<16x384xbf16, #tpu.memory_space<vmem>>, vector<16x128xbf16>,
    %108 = arith.truncf %103 : vector<16x128xf32> to vector<16x128xbf16>
    %c0_50 = arith.constant 0 : index
    %c128_51 = arith.constant 128 : index
    %109 = vector.load %arg6[%c0_50, %c128_51] : memref<16x384xbf16, #tpu.memory_space<vmem>>, vector<16x128xbf16>
    tpu.vector_store %arg6[%c0_50, %c128_51], %108 {strides = array<i32>} : memref<16x384xbf16, #tpu.memory_space<vmem>>, vector<16x128xbf16>,
    %c0_52 = arith.constant 0 : index
    %c128_53 = arith.constant 128 : index
    %110 = vector.load %arg6[%c0_52, %c128_53] : memref<16x384xbf16, #tpu.memory_space<vmem>>, vector<16x128xbf16>
    %c0_54 = arith.constant 0 : index
    %c0_55 = arith.constant 0 : index
    %111 = vector.load %arg5[%c0_54, %c0_55] : memref<144x128xbf16, #tpu.memory_space<vmem>>, vector<16x128xbf16>
    tpu.vector_store %arg5[%c0_54, %c0_55], %110 {strides = array<i32>} : memref<144x128xbf16, #tpu.memory_space<vmem>>, vector<16x128xbf16>,
    %c0_56 = arith.constant 0 : index
    %c129 = arith.constant 129 : index
    %112 = vector.load %arg6[%c0_56, %c129] : memref<16x384xbf16, #tpu.memory_space<vmem>>, vector<16x128xbf16>
    %c16_57 = arith.constant 16 : index
    %c0_58 = arith.constant 0 : index
    %113 = vector.load %arg5[%c16_57, %c0_58] : memref<144x128xbf16, #tpu.memory_space<vmem>>, vector<16x128xbf16>
    tpu.vector_store %arg5[%c16_57, %c0_58], %112 {strides = array<i32>} : memref<144x128xbf16, #tpu.memory_space<vmem>>, vector<16x128xbf16>,
    %c0_59 = arith.constant 0 : index
    %c130 = arith.constant 130 : index
    %114 = vector.load %arg6[%c0_59, %c130] : memref<16x384xbf16, #tpu.memory_space<vmem>>, vector<16x128xbf16>
    %c32_60 = arith.constant 32 : index
    %c0_61 = arith.constant 0 : index
    %115 = vector.load %arg5[%c32_60, %c0_61] : memref<144x128xbf16, #tpu.memory_space<vmem>>, vector<16x128xbf16>
    tpu.vector_store %arg5[%c32_60, %c0_61], %114 {strides = array<i32>} : memref<144x128xbf16, #tpu.memory_space<vmem>>, vector<16x128xbf16>,
    %c0_62 = arith.constant 0 : index
    %c134 = arith.constant 134 : index
    %116 = vector.load %arg6[%c0_62, %c134] : memref<16x384xbf16, #tpu.memory_space<vmem>>, vector<16x128xbf16>
    %c48_63 = arith.constant 48 : index
    %c0_64 = arith.constant 0 : index
    %117 = vector.load %arg5[%c48_63, %c0_64] : memref<144x128xbf16, #tpu.memory_space<vmem>>, vector<16x128xbf16>
    tpu.vector_store %arg5[%c48_63, %c0_64], %116 {strides = array<i32>} : memref<144x128xbf16, #tpu.memory_space<vmem>>, vector<16x128xbf16>,
    %c0_65 = arith.constant 0 : index
    %c135 = arith.constant 135 : index
    %118 = vector.load %arg6[%c0_65, %c135] : memref<16x384xbf16, #tpu.memory_space<vmem>>, vector<16x128xbf16>
    %c64_66 = arith.constant 64 : index
    %c0_67 = arith.constant 0 : index
    %119 = vector.load %arg5[%c64_66, %c0_67] : memref<144x128xbf16, #tpu.memory_space<vmem>>, vector<16x128xbf16>
    tpu.vector_store %arg5[%c64_66, %c0_67], %118 {strides = array<i32>} : memref<144x128xbf16, #tpu.memory_space<vmem>>, vector<16x128xbf16>,
    %c0_68 = arith.constant 0 : index
    %c136 = arith.constant 136 : index
    %120 = vector.load %arg6[%c0_68, %c136] : memref<16x384xbf16, #tpu.memory_space<vmem>>, vector<16x128xbf16>
    %c80_69 = arith.constant 80 : index
    %c0_70 = arith.constant 0 : index
    %121 = vector.load %arg5[%c80_69, %c0_70] : memref<144x128xbf16, #tpu.memory_space<vmem>>, vector<16x128xbf16>
    tpu.vector_store %arg5[%c80_69, %c0_70], %120 {strides = array<i32>} : memref<144x128xbf16, #tpu.memory_space<vmem>>, vector<16x128xbf16>,
    %c0_71 = arith.constant 0 : index
    %c140 = arith.constant 140 : index
    %122 = vector.load %arg6[%c0_71, %c140] : memref<16x384xbf16, #tpu.memory_space<vmem>>, vector<16x128xbf16>
    %c96_72 = arith.constant 96 : index
    %c0_73 = arith.constant 0 : index
    %123 = vector.load %arg5[%c96_72, %c0_73] : memref<144x128xbf16, #tpu.memory_space<vmem>>, vector<16x128xbf16>
    tpu.vector_store %arg5[%c96_72, %c0_73], %122 {strides = array<i32>} : memref<144x128xbf16, #tpu.memory_space<vmem>>, vector<16x128xbf16>,
    %c0_74 = arith.constant 0 : index
    %c141 = arith.constant 141 : index
    %124 = vector.load %arg6[%c0_74, %c141] : memref<16x384xbf16, #tpu.memory_space<vmem>>, vector<16x128xbf16>
    %c112_75 = arith.constant 112 : index
    %c0_76 = arith.constant 0 : index
    %125 = vector.load %arg5[%c112_75, %c0_76] : memref<144x128xbf16, #tpu.memory_space<vmem>>, vector<16x128xbf16>
    tpu.vector_store %arg5[%c112_75, %c0_76], %124 {strides = array<i32>} : memref<144x128xbf16, #tpu.memory_space<vmem>>, vector<16x128xbf16>,
    %c0_77 = arith.constant 0 : index
    %c142 = arith.constant 142 : index
    %126 = vector.load %arg6[%c0_77, %c142] : memref<16x384xbf16, #tpu.memory_space<vmem>>, vector<16x128xbf16>
    %c128_78 = arith.constant 128 : index
    %c0_79 = arith.constant 0 : index
    %127 = vector.load %arg5[%c128_78, %c0_79] : memref<144x128xbf16, #tpu.memory_space<vmem>>, vector<16x128xbf16>
    tpu.vector_store %arg5[%c128_78, %c0_79], %126 {strides = array<i32>} : memref<144x128xbf16, #tpu.memory_space<vmem>>, vector<16x128xbf16>,
    %c0_80 = arith.constant 0 : index
    %c0_81 = arith.constant 0 : index
    %128 = vector.load %arg2[%c0_80, %c0_81] : memref<16x144xbf16, #tpu.memory_space<vmem>>, vector<16x144xbf16>
    %c0_82 = arith.constant 0 : index
    %c0_83 = arith.constant 0 : index
    %129 = vector.load %arg5[%c0_82, %c0_83] : memref<144x128xbf16, #tpu.memory_space<vmem>>, vector<144x128xbf16>
    %cst_84 = arith.constant dense<0.000000e+00> : vector<16x128xf32>
    %130 = tpu.matmul %128, %129, %cst_84 {dimension_numbers = #tpu.dot_dimension_numbers<[1], [0], [0], [1], [0, 0, 1, 1], [], []>} : vector<16x144xbf16>, vector<144x128xbf16>, vector<16x128xf32> -> vector<16x128xf32>
    %cst_85 = arith.constant 0.000000e+00 : f32
    %131 = vector.shape_cast %46 : vector<1x128xi1> to vector<1x128xi1>
    %132 = vector.broadcast %131 : vector<1x128xi1> to vector<16x128xi1>
    %133 = vector.broadcast %cst_85 : f32 to vector<16x128xf32>
    %134 = arith.select %132, %130, %133 : vector<16x128xi1>, vector<16x128xf32>
    %cst_86 = arith.constant dense<0.000000e+00> : vector<16xf32>
    %135 = vector.multi_reduction <add>, %134, %cst_86 [1] : vector<16x128xf32> to vector<16xf32>
    %136 = vector.shape_cast %135 : vector<16xf32> to vector<16x1xf32>
    %cst_87 = arith.constant 1.250000e-01 : f32
    %137 = vector.broadcast %cst_87 : f32 to vector<16x1xf32>
    %138 = arith.mulf %136, %137 : vector<16x1xf32>
    %139 = arith.mulf %134, %134 : vector<16x128xf32>
    %cst_88 = arith.constant dense<0.000000e+00> : vector<16xf32>
    %140 = vector.multi_reduction <add>, %139, %cst_88 [1] : vector<16x128xf32> to vector<16xf32>
    %141 = vector.shape_cast %140 : vector<16xf32> to vector<16x1xf32>
    %cst_89 = arith.constant 1.250000e-01 : f32
    %142 = vector.broadcast %cst_89 : f32 to vector<16x1xf32>
    %143 = arith.mulf %141, %142 : vector<16x1xf32>
    %144 = arith.mulf %138, %138 : vector<16x1xf32>
    %145 = arith.subf %143, %144 : vector<16x1xf32>
    %c2_90 = arith.constant 2 : index
    %c0_91 = arith.constant 0 : index
    %c0_92 = arith.constant 0 : index
    %146 = vector.load %arg3[%c2_90, %c0_91, %c0_92] : memref<4x16x1xf32, #tpu.memory_space<vmem>>, vector<1x16x1xf32>
    %147 = vector.shape_cast %146 : vector<1x16x1xf32> to vector<16x1xf32>
    %148 = vector.broadcast %138 : vector<16x1xf32> to vector<16x128xf32>
    %149 = arith.subf %130, %148 : vector<16x128xf32>
    %150 = vector.broadcast %147 : vector<16x1xf32> to vector<16x128xf32>
    %151 = arith.mulf %150, %149 : vector<16x128xf32>
    %cst_93 = arith.constant 9.99999974E-6 : f32
    %152 = vector.broadcast %cst_93 : f32 to vector<16x1xf32>
    %153 = arith.addf %145, %152 : vector<16x1xf32>
    %154 = math.rsqrt %153 : vector<16x1xf32>
    %155 = vector.broadcast %154 : vector<16x1xf32> to vector<16x128xf32>
    %156 = arith.mulf %151, %155 : vector<16x128xf32>
    %c3 = arith.constant 3 : index
    %c0_94 = arith.constant 0 : index
    %c0_95 = arith.constant 0 : index
    %157 = vector.load %arg3[%c3, %c0_94, %c0_95] : memref<4x16x1xf32, #tpu.memory_space<vmem>>, vector<1x16x1xf32>
    %158 = vector.shape_cast %157 : vector<1x16x1xf32> to vector<16x1xf32>
    %159 = vector.broadcast %158 : vector<16x1xf32> to vector<16x128xf32>
    %160 = arith.addf %156, %159 : vector<16x128xf32>
    %cst_96 = arith.constant 0.000000e+00 : f32
    %161 = vector.broadcast %cst_96 : f32 to vector<16x128xf32>
    %162 = arith.maximumf %160, %161 : vector<16x128xf32>
    %c0_97 = arith.constant 0 : index
    %c0_98 = arith.constant 0 : index
    %163 = vector.load %arg4[%c0_97, %c0_98] : memref<16x128xf32, #tpu.memory_space<vmem>>, vector<16x128xf32>
    tpu.vector_store %arg4[%c0_97, %c0_98], %162 {strides = array<i32>} : memref<16x128xf32, #tpu.memory_space<vmem>>, vector<16x128xf32>,
    return
  }
}

module attributes {stable_mosaic.version = 11 : i64} {
  func.func @_dense_bias_kernel(%arg0: memref<32x16xbf16, #tpu.memory_space<vmem>>, %arg1: memref<16x128xbf16, #tpu.memory_space<vmem>>, %arg2: memref<32x1xf32, #tpu.memory_space<vmem>>, %arg3: memref<32x128xf32, #tpu.memory_space<vmem>>) attributes {dimension_semantics = [], scalar_prefetch = 0 : i64, scratch_operands = 0 : i64, tpu.core_type = #tpu.core_type<tc>} {
    %c0 = arith.constant 0 : index
    %c0_0 = arith.constant 0 : index
    %0 = vector.load %arg0[%c0, %c0_0] : memref<32x16xbf16, #tpu.memory_space<vmem>>, vector<32x16xbf16>
    %c0_1 = arith.constant 0 : index
    %c0_2 = arith.constant 0 : index
    %1 = vector.load %arg1[%c0_1, %c0_2] : memref<16x128xbf16, #tpu.memory_space<vmem>>, vector<16x128xbf16>
    %cst = arith.constant dense<0.000000e+00> : vector<32x128xf32>
    %2 = tpu.matmul %0, %1, %cst {dimension_numbers = #tpu.dot_dimension_numbers<[1], [0], [0], [1], [0, 0, 1, 1], [], []>} : vector<32x16xbf16>, vector<16x128xbf16>, vector<32x128xf32> -> vector<32x128xf32>
    %c0_3 = arith.constant 0 : index
    %c0_4 = arith.constant 0 : index
    %3 = vector.load %arg2[%c0_3, %c0_4] : memref<32x1xf32, #tpu.memory_space<vmem>>, vector<32x1xf32>
    %4 = vector.broadcast %3 : vector<32x1xf32> to vector<32x128xf32>
    %5 = arith.addf %2, %4 : vector<32x128xf32>
    %c0_5 = arith.constant 0 : index
    %c0_6 = arith.constant 0 : index
    %6 = vector.load %arg3[%c0_5, %c0_6] : memref<32x128xf32, #tpu.memory_space<vmem>>, vector<32x128xf32>
    tpu.vector_store %arg3[%c0_5, %c0_6], %5 {strides = array<i32>} : memref<32x128xf32, #tpu.memory_space<vmem>>, vector<32x128xf32>,
    return
  }
}

module attributes {stable_mosaic.version = 11 : i64} {
  func.func @kernel(%arg0: memref<16x256xbf16, #tpu.memory_space<vmem>>, %arg1: memref<16x144xbf16, #tpu.memory_space<vmem>>, %arg2: memref<16x144xbf16, #tpu.memory_space<vmem>>, %arg3: memref<4x16x1xf32, #tpu.memory_space<vmem>>, %arg4: memref<16x128xf32, #tpu.memory_space<vmem>>, %arg5: memref<144x128xbf16, #tpu.memory_space<vmem>>, %arg6: memref<16x384xbf16, #tpu.memory_space<vmem>>) attributes {dimension_semantics = [], scalar_prefetch = 0 : i64, scratch_operands = 2 : i64, tpu.core_type = #tpu.core_type<tc>} {
    %0 = tpu.iota {dimensions = array<i32: 1>} : vector<1x128xi32>
    %c6_i32 = arith.constant 6 : i32
    %c0_i32 = arith.constant 0 : i32
    %1 = arith.cmpi eq, %c6_i32, %c0_i32 : i32
    %c1_i32 = arith.constant 1 : i32
    %2 = arith.select %1, %c1_i32, %c6_i32 : i32
    %3 = vector.broadcast %2 : i32 to vector<1x128xi32>
    %4 = arith.remsi %0, %3 : vector<1x128xi32>
    %c0_i32_0 = arith.constant 0 : i32
    %5 = vector.broadcast %c0_i32_0 : i32 to vector<1x128xi32>
    %6 = arith.cmpi ne, %4, %5 : vector<1x128xi32>
    %c0_i32_1 = arith.constant 0 : i32
    %7 = vector.broadcast %c0_i32_1 : i32 to vector<1x128xi32>
    %8 = arith.cmpi slt, %4, %7 : vector<1x128xi32>
    %c0_i32_2 = arith.constant 0 : i32
    %9 = arith.cmpi slt, %2, %c0_i32_2 : i32
    %10 = vector.broadcast %9 : i1 to vector<1x128xi1>
    %11 = vector.broadcast %10 : vector<1x128xi1> to vector<1x128xi1>
    %12 = arith.xori %8, %11 : vector<1x128xi1>
    %13 = arith.andi %12, %6 : vector<1x128xi1>
    %14 = vector.broadcast %2 : i32 to vector<1x128xi32>
    %15 = arith.addi %4, %14 : vector<1x128xi32>
    %16 = arith.select %13, %15, %4 : vector<1x128xi1>, vector<1x128xi32>
    %c36_i32 = arith.constant 36 : i32
    %c0_i32_3 = arith.constant 0 : i32
    %17 = arith.cmpi eq, %c36_i32, %c0_i32_3 : i32
    %c1_i32_4 = arith.constant 1 : i32
    %18 = arith.select %17, %c1_i32_4, %c36_i32 : i32
    %19 = vector.broadcast %18 : i32 to vector<1x128xi32>
    %20 = arith.remsi %0, %19 : vector<1x128xi32>
    %c0_i32_5 = arith.constant 0 : i32
    %21 = vector.broadcast %c0_i32_5 : i32 to vector<1x128xi32>
    %22 = arith.cmpi ne, %20, %21 : vector<1x128xi32>
    %c0_i32_6 = arith.constant 0 : i32
    %23 = vector.broadcast %c0_i32_6 : i32 to vector<1x128xi32>
    %24 = arith.cmpi slt, %20, %23 : vector<1x128xi32>
    %c0_i32_7 = arith.constant 0 : i32
    %25 = arith.cmpi slt, %18, %c0_i32_7 : i32
    %26 = vector.broadcast %25 : i1 to vector<1x128xi1>
    %27 = vector.broadcast %26 : vector<1x128xi1> to vector<1x128xi1>
    %28 = arith.xori %24, %27 : vector<1x128xi1>
    %29 = arith.andi %28, %22 : vector<1x128xi1>
    %30 = vector.broadcast %18 : i32 to vector<1x128xi32>
    %31 = arith.addi %20, %30 : vector<1x128xi32>
    %32 = arith.select %29, %31, %20 : vector<1x128xi1>, vector<1x128xi32>
    %c72_i32 = arith.constant 72 : i32
    %33 = vector.broadcast %c72_i32 : i32 to vector<1x128xi32>
    %34 = arith.cmpi slt, %0, %33 : vector<1x128xi32>
    %c4_i32 = arith.constant 4 : i32
    %35 = vector.broadcast %c4_i32 : i32 to vector<1x128xi32>
    %36 = arith.cmpi slt, %16, %35 : vector<1x128xi32>
    %37 = arith.andi %34, %36 : vector<1x128xi1>
    %c24_i32 = arith.constant 24 : i32
    %38 = vector.broadcast %c24_i32 : i32 to vector<1x128xi32>
    %39 = arith.cmpi slt, %32, %38 : vector<1x128xi32>
    %40 = arith.andi %37, %39 : vector<1x128xi1>
    %c4_i32_8 = arith.constant 4 : i32
    %41 = vector.broadcast %c4_i32_8 : i32 to vector<1x128xi32>
    %42 = arith.cmpi slt, %16, %41 : vector<1x128xi32>
    %43 = arith.andi %34, %42 : vector<1x128xi1>
    %c24_i32_9 = arith.constant 24 : i32
    %44 = vector.broadcast %c24_i32_9 : i32 to vector<1x128xi32>
    %45 = arith.cmpi slt, %32, %44 : vector<1x128xi32>
    %46 = arith.andi %43, %45 : vector<1x128xi1>
    %c0 = arith.constant 0 : index
    %c0_10 = arith.constant 0 : index
    %47 = vector.load %arg0[%c0, %c0_10] : memref<16x256xbf16, #tpu.memory_space<vmem>>, vector<16x128xbf16>
    %c0_11 = arith.constant 0 : index
    %c0_12 = arith.constant 0 : index
    %48 = vector.load %arg5[%c0_11, %c0_12] : memref<144x128xbf16, #tpu.memory_space<vmem>>, vector<16x128xbf16>
    tpu.vector_store %arg5[%c0_11, %c0_12], %47 {strides = array<i32>} : memref<144x128xbf16, #tpu.memory_space<vmem>>, vector<16x128xbf16>,
    %c0_13 = arith.constant 0 : index
    %c1 = arith.constant 1 : index
    %49 = vector.load %arg0[%c0_13, %c1] : memref<16x256xbf16, #tpu.memory_space<vmem>>, vector<16x128xbf16>
    %c16 = arith.constant 16 : index
    %c0_14 = arith.constant 0 : index
    %50 = vector.load %arg5[%c16, %c0_14] : memref<144x128xbf16, #tpu.memory_space<vmem>>, vector<16x128xbf16>
    tpu.vector_store %arg5[%c16, %c0_14], %49 {strides = array<i32>} : memref<144x128xbf16, #tpu.memory_space<vmem>>, vector<16x128xbf16>,
    %c0_15 = arith.constant 0 : index
    %c2 = arith.constant 2 : index
    %51 = vector.load %arg0[%c0_15, %c2] : memref<16x256xbf16, #tpu.memory_space<vmem>>, vector<16x128xbf16>
    %c32 = arith.constant 32 : index
    %c0_16 = arith.constant 0 : index
    %52 = vector.load %arg5[%c32, %c0_16] : memref<144x128xbf16, #tpu.memory_space<vmem>>, vector<16x128xbf16>
    tpu.vector_store %arg5[%c32, %c0_16], %51 {strides = array<i32>} : memref<144x128xbf16, #tpu.memory_space<vmem>>, vector<16x128xbf16>,
    %c0_17 = arith.constant 0 : index
    %c6 = arith.constant 6 : index
    %53 = vector.load %arg0[%c0_17, %c6] : memref<16x256xbf16, #tpu.memory_space<vmem>>, vector<16x128xbf16>
    %c48 = arith.constant 48 : index
    %c0_18 = arith.constant 0 : index
    %54 = vector.load %arg5[%c48, %c0_18] : memref<144x128xbf16, #tpu.memory_space<vmem>>, vector<16x128xbf16>
    tpu.vector_store %arg5[%c48, %c0_18], %53 {strides = array<i32>} : memref<144x128xbf16, #tpu.memory_space<vmem>>, vector<16x128xbf16>,
    %c0_19 = arith.constant 0 : index
    %c7 = arith.constant 7 : index
    %55 = vector.load %arg0[%c0_19, %c7] : memref<16x256xbf16, #tpu.memory_space<vmem>>, vector<16x128xbf16>
    %c64 = arith.constant 64 : index
    %c0_20 = arith.constant 0 : index
    %56 = vector.load %arg5[%c64, %c0_20] : memref<144x128xbf16, #tpu.memory_space<vmem>>, vector<16x128xbf16>
    tpu.vector_store %arg5[%c64, %c0_20], %55 {strides = array<i32>} : memref<144x128xbf16, #tpu.memory_space<vmem>>, vector<16x128xbf16>,
    %c0_21 = arith.constant 0 : index
    %c8 = arith.constant 8 : index
    %57 = vector.load %arg0[%c0_21, %c8] : memref<16x256xbf16, #tpu.memory_space<vmem>>, vector<16x128xbf16>
    %c80 = arith.constant 80 : index
    %c0_22 = arith.constant 0 : index
    %58 = vector.load %arg5[%c80, %c0_22] : memref<144x128xbf16, #tpu.memory_space<vmem>>, vector<16x128xbf16>
    tpu.vector_store %arg5[%c80, %c0_22], %57 {strides = array<i32>} : memref<144x128xbf16, #tpu.memory_space<vmem>>, vector<16x128xbf16>,
    %c0_23 = arith.constant 0 : index
    %c12 = arith.constant 12 : index
    %59 = vector.load %arg0[%c0_23, %c12] : memref<16x256xbf16, #tpu.memory_space<vmem>>, vector<16x128xbf16>
    %c96 = arith.constant 96 : index
    %c0_24 = arith.constant 0 : index
    %60 = vector.load %arg5[%c96, %c0_24] : memref<144x128xbf16, #tpu.memory_space<vmem>>, vector<16x128xbf16>
    tpu.vector_store %arg5[%c96, %c0_24], %59 {strides = array<i32>} : memref<144x128xbf16, #tpu.memory_space<vmem>>, vector<16x128xbf16>,
    %c0_25 = arith.constant 0 : index
    %c13 = arith.constant 13 : index
    %61 = vector.load %arg0[%c0_25, %c13] : memref<16x256xbf16, #tpu.memory_space<vmem>>, vector<16x128xbf16>
    %c112 = arith.constant 112 : index
    %c0_26 = arith.constant 0 : index
    %62 = vector.load %arg5[%c112, %c0_26] : memref<144x128xbf16, #tpu.memory_space<vmem>>, vector<16x128xbf16>
    tpu.vector_store %arg5[%c112, %c0_26], %61 {strides = array<i32>} : memref<144x128xbf16, #tpu.memory_space<vmem>>, vector<16x128xbf16>,
    %c0_27 = arith.constant 0 : index
    %c14 = arith.constant 14 : index
    %63 = vector.load %arg0[%c0_27, %c14] : memref<16x256xbf16, #tpu.memory_space<vmem>>, vector<16x128xbf16>
    %c128 = arith.constant 128 : index
    %c0_28 = arith.constant 0 : index
    %64 = vector.load %arg5[%c128, %c0_28] : memref<144x128xbf16, #tpu.memory_space<vmem>>, vector<16x128xbf16>
    tpu.vector_store %arg5[%c128, %c0_28], %63 {strides = array<i32>} : memref<144x128xbf16, #tpu.memory_space<vmem>>, vector<16x128xbf16>,
    %c0_29 = arith.constant 0 : index
    %c0_30 = arith.constant 0 : index
    %65 = vector.load %arg1[%c0_29, %c0_30] : memref<16x144xbf16, #tpu.memory_space<vmem>>, vector<16x144xbf16>
    %c0_31 = arith.constant 0 : index
    %c0_32 = arith.constant 0 : index
    %66 = vector.load %arg5[%c0_31, %c0_32] : memref<144x128xbf16, #tpu.memory_space<vmem>>, vector<144x128xbf16>
    %cst = arith.constant dense<0.000000e+00> : vector<16x128xf32>
    %67 = tpu.matmul %65, %66, %cst {dimension_numbers = #tpu.dot_dimension_numbers<[1], [0], [0], [1], [0, 0, 1, 1], [], []>} : vector<16x144xbf16>, vector<144x128xbf16>, vector<16x128xf32> -> vector<16x128xf32>
    %cst_33 = arith.constant 0.000000e+00 : f32
    %68 = vector.shape_cast %40 : vector<1x128xi1> to vector<1x128xi1>
    %69 = vector.broadcast %68 : vector<1x128xi1> to vector<16x128xi1>
    %70 = vector.broadcast %cst_33 : f32 to vector<16x128xf32>
    %71 = arith.select %69, %67, %70 : vector<16x128xi1>, vector<16x128xf32>
    %cst_34 = arith.constant dense<0.000000e+00> : vector<16xf32>
    %72 = vector.multi_reduction <add>, %71, %cst_34 [1] : vector<16x128xf32> to vector<16xf32>
    %73 = vector.shape_cast %72 : vector<16xf32> to vector<16x1xf32>
    %cst_35 = arith.constant 3.125000e-02 : f32
    %74 = vector.broadcast %cst_35 : f32 to vector<16x1xf32>
    %75 = arith.mulf %73, %74 : vector<16x1xf32>
    %76 = arith.mulf %71, %71 : vector<16x128xf32>
    %cst_36 = arith.constant dense<0.000000e+00> : vector<16xf32>
    %77 = vector.multi_reduction <add>, %76, %cst_36 [1] : vector<16x128xf32> to vector<16xf32>
    %78 = vector.shape_cast %77 : vector<16xf32> to vector<16x1xf32>
    %cst_37 = arith.constant 3.125000e-02 : f32
    %79 = vector.broadcast %cst_37 : f32 to vector<16x1xf32>
    %80 = arith.mulf %78, %79 : vector<16x1xf32>
    %81 = arith.mulf %75, %75 : vector<16x1xf32>
    %82 = arith.subf %80, %81 : vector<16x1xf32>
    %c0_38 = arith.constant 0 : index
    %c0_39 = arith.constant 0 : index
    %c0_40 = arith.constant 0 : index
    %83 = vector.load %arg3[%c0_38, %c0_39, %c0_40] : memref<4x16x1xf32, #tpu.memory_space<vmem>>, vector<1x16x1xf32>
    %84 = vector.shape_cast %83 : vector<1x16x1xf32> to vector<16x1xf32>
    %85 = vector.broadcast %75 : vector<16x1xf32> to vector<16x128xf32>
    %86 = arith.subf %67, %85 : vector<16x128xf32>
    %87 = vector.broadcast %84 : vector<16x1xf32> to vector<16x128xf32>
    %88 = arith.mulf %87, %86 : vector<16x128xf32>
    %cst_41 = arith.constant 9.99999974E-6 : f32
    %89 = vector.broadcast %cst_41 : f32 to vector<16x1xf32>
    %90 = arith.addf %82, %89 : vector<16x1xf32>
    %91 = math.rsqrt %90 : vector<16x1xf32>
    %92 = vector.broadcast %91 : vector<16x1xf32> to vector<16x128xf32>
    %93 = arith.mulf %88, %92 : vector<16x128xf32>
    %c1_42 = arith.constant 1 : index
    %c0_43 = arith.constant 0 : index
    %c0_44 = arith.constant 0 : index
    %94 = vector.load %arg3[%c1_42, %c0_43, %c0_44] : memref<4x16x1xf32, #tpu.memory_space<vmem>>, vector<1x16x1xf32>
    %95 = vector.shape_cast %94 : vector<1x16x1xf32> to vector<16x1xf32>
    %96 = vector.broadcast %95 : vector<16x1xf32> to vector<16x128xf32>
    %97 = arith.addf %93, %96 : vector<16x128xf32>
    %cst_45 = arith.constant 0.000000e+00 : f32
    %98 = vector.broadcast %cst_45 : f32 to vector<16x128xf32>
    %99 = arith.maximumf %97, %98 : vector<16x128xf32>
    %cst_46 = arith.constant 0.000000e+00 : f32
    %100 = vector.shape_cast %40 : vector<1x128xi1> to vector<1x128xi1>
    %101 = vector.broadcast %100 : vector<1x128xi1> to vector<16x128xi1>
    %102 = vector.broadcast %cst_46 : f32 to vector<16x128xf32>
    %103 = arith.select %101, %99, %102 : vector<16x128xi1>, vector<16x128xf32>
    %cst_47 = arith.constant 0.000000e+00 : bf16
    %104 = vector.broadcast %cst_47 : bf16 to vector<16x128xbf16>
    %c0_48 = arith.constant 0 : index
    %c0_49 = arith.constant 0 : index
    %105 = vector.load %arg6[%c0_48, %c0_49] : memref<16x384xbf16, #tpu.memory_space<vmem>>, vector<16x128xbf16>
    tpu.vector_store %arg6[%c0_48, %c0_49], %104 {strides = array<i32>} : memref<16x384xbf16, #tpu.memory_space<vmem>>, vector<16x128xbf16>,
    %cst_50 = arith.constant 0.000000e+00 : bf16
    %106 = vector.broadcast %cst_50 : bf16 to vector<16x128xbf16>
    %c0_51 = arith.constant 0 : index
    %c256 = arith.constant 256 : index
    %107 = vector.load %arg6[%c0_51, %c256] : memref<16x384xbf16, #tpu.memory_space<vmem>>, vector<16x128xbf16>
    tpu.vector_store %arg6[%c0_51, %c256], %106 {strides = array<i32>} : memref<16x384xbf16, #tpu.memory_space<vmem>>, vector<16x128xbf16>,
    %108 = arith.truncf %103 : vector<16x128xf32> to vector<16x128xbf16>
    %c0_52 = arith.constant 0 : index
    %c128_53 = arith.constant 128 : index
    %109 = vector.load %arg6[%c0_52, %c128_53] : memref<16x384xbf16, #tpu.memory_space<vmem>>, vector<16x128xbf16>
    tpu.vector_store %arg6[%c0_52, %c128_53], %108 {strides = array<i32>} : memref<16x384xbf16, #tpu.memory_space<vmem>>, vector<16x128xbf16>,
    %c0_54 = arith.constant 0 : index
    %c121 = arith.constant 121 : index
    %110 = vector.load %arg6[%c0_54, %c121] : memref<16x384xbf16, #tpu.memory_space<vmem>>, vector<16x128xbf16>
    %c0_55 = arith.constant 0 : index
    %c0_56 = arith.constant 0 : index
    %111 = vector.load %arg5[%c0_55, %c0_56] : memref<144x128xbf16, #tpu.memory_space<vmem>>, vector<16x128xbf16>
    tpu.vector_store %arg5[%c0_55, %c0_56], %110 {strides = array<i32>} : memref<144x128xbf16, #tpu.memory_space<vmem>>, vector<16x128xbf16>,
    %c0_57 = arith.constant 0 : index
    %c122 = arith.constant 122 : index
    %112 = vector.load %arg6[%c0_57, %c122] : memref<16x384xbf16, #tpu.memory_space<vmem>>, vector<16x128xbf16>
    %c16_58 = arith.constant 16 : index
    %c0_59 = arith.constant 0 : index
    %113 = vector.load %arg5[%c16_58, %c0_59] : memref<144x128xbf16, #tpu.memory_space<vmem>>, vector<16x128xbf16>
    tpu.vector_store %arg5[%c16_58, %c0_59], %112 {strides = array<i32>} : memref<144x128xbf16, #tpu.memory_space<vmem>>, vector<16x128xbf16>,
    %c0_60 = arith.constant 0 : index
    %c123 = arith.constant 123 : index
    %114 = vector.load %arg6[%c0_60, %c123] : memref<16x384xbf16, #tpu.memory_space<vmem>>, vector<16x128xbf16>
    %c32_61 = arith.constant 32 : index
    %c0_62 = arith.constant 0 : index
    %115 = vector.load %arg5[%c32_61, %c0_62] : memref<144x128xbf16, #tpu.memory_space<vmem>>, vector<16x128xbf16>
    tpu.vector_store %arg5[%c32_61, %c0_62], %114 {strides = array<i32>} : memref<144x128xbf16, #tpu.memory_space<vmem>>, vector<16x128xbf16>,
    %c0_63 = arith.constant 0 : index
    %c127 = arith.constant 127 : index
    %116 = vector.load %arg6[%c0_63, %c127] : memref<16x384xbf16, #tpu.memory_space<vmem>>, vector<16x128xbf16>
    %c48_64 = arith.constant 48 : index
    %c0_65 = arith.constant 0 : index
    %117 = vector.load %arg5[%c48_64, %c0_65] : memref<144x128xbf16, #tpu.memory_space<vmem>>, vector<16x128xbf16>
    tpu.vector_store %arg5[%c48_64, %c0_65], %116 {strides = array<i32>} : memref<144x128xbf16, #tpu.memory_space<vmem>>, vector<16x128xbf16>,
    %c0_66 = arith.constant 0 : index
    %c128_67 = arith.constant 128 : index
    %118 = vector.load %arg6[%c0_66, %c128_67] : memref<16x384xbf16, #tpu.memory_space<vmem>>, vector<16x128xbf16>
    %c64_68 = arith.constant 64 : index
    %c0_69 = arith.constant 0 : index
    %119 = vector.load %arg5[%c64_68, %c0_69] : memref<144x128xbf16, #tpu.memory_space<vmem>>, vector<16x128xbf16>
    tpu.vector_store %arg5[%c64_68, %c0_69], %118 {strides = array<i32>} : memref<144x128xbf16, #tpu.memory_space<vmem>>, vector<16x128xbf16>,
    %c0_70 = arith.constant 0 : index
    %c129 = arith.constant 129 : index
    %120 = vector.load %arg6[%c0_70, %c129] : memref<16x384xbf16, #tpu.memory_space<vmem>>, vector<16x128xbf16>
    %c80_71 = arith.constant 80 : index
    %c0_72 = arith.constant 0 : index
    %121 = vector.load %arg5[%c80_71, %c0_72] : memref<144x128xbf16, #tpu.memory_space<vmem>>, vector<16x128xbf16>
    tpu.vector_store %arg5[%c80_71, %c0_72], %120 {strides = array<i32>} : memref<144x128xbf16, #tpu.memory_space<vmem>>, vector<16x128xbf16>,
    %c0_73 = arith.constant 0 : index
    %c133 = arith.constant 133 : index
    %122 = vector.load %arg6[%c0_73, %c133] : memref<16x384xbf16, #tpu.memory_space<vmem>>, vector<16x128xbf16>
    %c96_74 = arith.constant 96 : index
    %c0_75 = arith.constant 0 : index
    %123 = vector.load %arg5[%c96_74, %c0_75] : memref<144x128xbf16, #tpu.memory_space<vmem>>, vector<16x128xbf16>
    tpu.vector_store %arg5[%c96_74, %c0_75], %122 {strides = array<i32>} : memref<144x128xbf16, #tpu.memory_space<vmem>>, vector<16x128xbf16>,
    %c0_76 = arith.constant 0 : index
    %c134 = arith.constant 134 : index
    %124 = vector.load %arg6[%c0_76, %c134] : memref<16x384xbf16, #tpu.memory_space<vmem>>, vector<16x128xbf16>
    %c112_77 = arith.constant 112 : index
    %c0_78 = arith.constant 0 : index
    %125 = vector.load %arg5[%c112_77, %c0_78] : memref<144x128xbf16, #tpu.memory_space<vmem>>, vector<16x128xbf16>
    tpu.vector_store %arg5[%c112_77, %c0_78], %124 {strides = array<i32>} : memref<144x128xbf16, #tpu.memory_space<vmem>>, vector<16x128xbf16>,
    %c0_79 = arith.constant 0 : index
    %c135 = arith.constant 135 : index
    %126 = vector.load %arg6[%c0_79, %c135] : memref<16x384xbf16, #tpu.memory_space<vmem>>, vector<16x128xbf16>
    %c128_80 = arith.constant 128 : index
    %c0_81 = arith.constant 0 : index
    %127 = vector.load %arg5[%c128_80, %c0_81] : memref<144x128xbf16, #tpu.memory_space<vmem>>, vector<16x128xbf16>
    tpu.vector_store %arg5[%c128_80, %c0_81], %126 {strides = array<i32>} : memref<144x128xbf16, #tpu.memory_space<vmem>>, vector<16x128xbf16>,
    %c0_82 = arith.constant 0 : index
    %c0_83 = arith.constant 0 : index
    %128 = vector.load %arg2[%c0_82, %c0_83] : memref<16x144xbf16, #tpu.memory_space<vmem>>, vector<16x144xbf16>
    %c0_84 = arith.constant 0 : index
    %c0_85 = arith.constant 0 : index
    %129 = vector.load %arg5[%c0_84, %c0_85] : memref<144x128xbf16, #tpu.memory_space<vmem>>, vector<144x128xbf16>
    %cst_86 = arith.constant dense<0.000000e+00> : vector<16x128xf32>
    %130 = tpu.matmul %128, %129, %cst_86 {dimension_numbers = #tpu.dot_dimension_numbers<[1], [0], [0], [1], [0, 0, 1, 1], [], []>} : vector<16x144xbf16>, vector<144x128xbf16>, vector<16x128xf32> -> vector<16x128xf32>
    %cst_87 = arith.constant 0.000000e+00 : f32
    %131 = vector.shape_cast %46 : vector<1x128xi1> to vector<1x128xi1>
    %132 = vector.broadcast %131 : vector<1x128xi1> to vector<16x128xi1>
    %133 = vector.broadcast %cst_87 : f32 to vector<16x128xf32>
    %134 = arith.select %132, %130, %133 : vector<16x128xi1>, vector<16x128xf32>
    %cst_88 = arith.constant dense<0.000000e+00> : vector<16xf32>
    %135 = vector.multi_reduction <add>, %134, %cst_88 [1] : vector<16x128xf32> to vector<16xf32>
    %136 = vector.shape_cast %135 : vector<16xf32> to vector<16x1xf32>
    %cst_89 = arith.constant 3.125000e-02 : f32
    %137 = vector.broadcast %cst_89 : f32 to vector<16x1xf32>
    %138 = arith.mulf %136, %137 : vector<16x1xf32>
    %139 = arith.mulf %134, %134 : vector<16x128xf32>
    %cst_90 = arith.constant dense<0.000000e+00> : vector<16xf32>
    %140 = vector.multi_reduction <add>, %139, %cst_90 [1] : vector<16x128xf32> to vector<16xf32>
    %141 = vector.shape_cast %140 : vector<16xf32> to vector<16x1xf32>
    %cst_91 = arith.constant 3.125000e-02 : f32
    %142 = vector.broadcast %cst_91 : f32 to vector<16x1xf32>
    %143 = arith.mulf %141, %142 : vector<16x1xf32>
    %144 = arith.mulf %138, %138 : vector<16x1xf32>
    %145 = arith.subf %143, %144 : vector<16x1xf32>
    %c2_92 = arith.constant 2 : index
    %c0_93 = arith.constant 0 : index
    %c0_94 = arith.constant 0 : index
    %146 = vector.load %arg3[%c2_92, %c0_93, %c0_94] : memref<4x16x1xf32, #tpu.memory_space<vmem>>, vector<1x16x1xf32>
    %147 = vector.shape_cast %146 : vector<1x16x1xf32> to vector<16x1xf32>
    %148 = vector.broadcast %138 : vector<16x1xf32> to vector<16x128xf32>
    %149 = arith.subf %130, %148 : vector<16x128xf32>
    %150 = vector.broadcast %147 : vector<16x1xf32> to vector<16x128xf32>
    %151 = arith.mulf %150, %149 : vector<16x128xf32>
    %cst_95 = arith.constant 9.99999974E-6 : f32
    %152 = vector.broadcast %cst_95 : f32 to vector<16x1xf32>
    %153 = arith.addf %145, %152 : vector<16x1xf32>
    %154 = math.rsqrt %153 : vector<16x1xf32>
    %155 = vector.broadcast %154 : vector<16x1xf32> to vector<16x128xf32>
    %156 = arith.mulf %151, %155 : vector<16x128xf32>
    %c3 = arith.constant 3 : index
    %c0_96 = arith.constant 0 : index
    %c0_97 = arith.constant 0 : index
    %157 = vector.load %arg3[%c3, %c0_96, %c0_97] : memref<4x16x1xf32, #tpu.memory_space<vmem>>, vector<1x16x1xf32>
    %158 = vector.shape_cast %157 : vector<1x16x1xf32> to vector<16x1xf32>
    %159 = vector.broadcast %158 : vector<16x1xf32> to vector<16x128xf32>
    %160 = arith.addf %156, %159 : vector<16x128xf32>
    %cst_98 = arith.constant 0.000000e+00 : f32
    %161 = vector.broadcast %cst_98 : f32 to vector<16x128xf32>
    %162 = arith.maximumf %160, %161 : vector<16x128xf32>
    %c0_99 = arith.constant 0 : index
    %c0_100 = arith.constant 0 : index
    %163 = vector.load %arg4[%c0_99, %c0_100] : memref<16x128xf32, #tpu.memory_space<vmem>>, vector<16x128xf32>
    tpu.vector_store %arg4[%c0_99, %c0_100], %162 {strides = array<i32>} : memref<16x128xf32, #tpu.memory_space<vmem>>, vector<16x128xf32>,
    return
  }
}

module attributes {stable_mosaic.version = 11 : i64} {
  func.func @_dense_bias_kernel(%arg0: memref<16x16xbf16, #tpu.memory_space<vmem>>, %arg1: memref<16x128xbf16, #tpu.memory_space<vmem>>, %arg2: memref<16x1xf32, #tpu.memory_space<vmem>>, %arg3: memref<16x128xf32, #tpu.memory_space<vmem>>) attributes {dimension_semantics = [], scalar_prefetch = 0 : i64, scratch_operands = 0 : i64, tpu.core_type = #tpu.core_type<tc>} {
    %c0 = arith.constant 0 : index
    %c0_0 = arith.constant 0 : index
    %0 = vector.load %arg0[%c0, %c0_0] : memref<16x16xbf16, #tpu.memory_space<vmem>>, vector<16x16xbf16>
    %c0_1 = arith.constant 0 : index
    %c0_2 = arith.constant 0 : index
    %1 = vector.load %arg1[%c0_1, %c0_2] : memref<16x128xbf16, #tpu.memory_space<vmem>>, vector<16x128xbf16>
    %cst = arith.constant dense<0.000000e+00> : vector<16x128xf32>
    %2 = tpu.matmul %0, %1, %cst {dimension_numbers = #tpu.dot_dimension_numbers<[1], [0], [0], [1], [0, 0, 1, 1], [], []>} : vector<16x16xbf16>, vector<16x128xbf16>, vector<16x128xf32> -> vector<16x128xf32>
    %c0_3 = arith.constant 0 : index
    %c0_4 = arith.constant 0 : index
    %3 = vector.load %arg2[%c0_3, %c0_4] : memref<16x1xf32, #tpu.memory_space<vmem>>, vector<16x1xf32>
    %4 = vector.broadcast %3 : vector<16x1xf32> to vector<16x128xf32>
    %5 = arith.addf %2, %4 : vector<16x128xf32>
    %c0_5 = arith.constant 0 : index
    %c0_6 = arith.constant 0 : index
    %6 = vector.load %arg3[%c0_5, %c0_6] : memref<16x128xf32, #tpu.memory_space<vmem>>, vector<16x128xf32>
    tpu.vector_store %arg3[%c0_5, %c0_6], %5 {strides = array<i32>} : memref<16x128xf32, #tpu.memory_space<vmem>>, vector<16x128xf32>,
    return
  }
}

</mosaic_0001>

<bundles_post_ra>
// kernel: tile.8
= control target key start
LH: loop header
LB: loop body
LE: loop exit
PB: predicated region body
PF: predicated region fallthrough
CT: control target
= control target key end

     0   :  { %s22_s0 = inlined_call_operand.vmem [shape: f32[8], index: 0, kind: input, shape index: {}]   ;;  %s23_s1 = inlined_call_operand.vmem [shape: f32[4,8], index: 1, kind: output, shape index: {}]  }
   0x1   :  { %v4_v0 = vld [vmem:[%s22_s0] ss:$0 sm:$0xff] }
   0x2   :  { %5 = vst [vmem:[%s23_s1] sm:$0xf] %v4_v0 }

// kernel: unet_forward.7
= control target key start
LH: loop header
LB: loop body
LE: loop exit
PB: predicated region body
PF: predicated region fallthrough
CT: control target
= control target key end

     0   :  { %vm61_vm0 = vcmask 130048   ;;  %v145_v1 = vmov 0   ;;  %s201_s1 = inlined_call_operand.vmem [shape: bf16[16,128], index: 1, kind: input, shape index: {}]   ;;  %s202_s0 = inlined_call_operand.vmem [shape: bf16[32,16], index: 0, kind: input, shape index: {}]   ;;  %s203_s2 = inlined_call_operand.vmem [shape: f32[32,1], index: 2, kind: input, shape index: {}]   ;;  %s204_s3 = inlined_call_operand.vmem [shape: f32[32,128], index: 3, kind: output, shape index: {}]  }
   0x1   :  { %v142_v0 = vld [vmem:[%s201_s1] sm:$0xff]   ;;  %141 = vset.pattern.permute.xlu1 %v145_v1  ;;  %140 = vset.pattern.permute.xlu0 %v145_v1  ;;  %v144_v3 = vld [vmem:[%s202_s0 + $0x8] sm:$0xff]   ;;  %v23_v4 = vld [vmem:[%s203_s2 + $0x10] sm:$0xff] }
   0x2   :  { %v143_v2 = vld [vmem:[%s202_s0] sm:$0xff]   ;;  %133 = vmatprep.subr.bf16.mxu0 %v142_v0  ;;  %37 = vperm.xlu1 %141, %v23_v4   ;;  %v24_v6 = vld [vmem:[%s203_s2 + $0x18] sm:$0xff]  ;;  %v22_v7 = vld [vmem:[%s203_s2 + $0x8] sm:$0xff] }
   0x3   :  { %134 = vmatpush3.bf16.msra.mxu0 %v142_v0  ;;  %135 = vmatprep.mubr.msk.bf16.mxu0 %vm61_vm0, %v143_v2  ;;  %v21_v5 = vld [vmem:[%s203_s2] sm:$0xff] }
   0x4   :  { %27 = vperm.xlu0 %140, %v21_v5  }
   0x6   :  { %136 = vmatmul.mubr.msk.bf16.vlgmr.msra.gmra.mrb[0].mxu0 %vm61_vm0, %v144_v3  ;;  %42 = vperm.xlu1 %141, %v24_v6  }
   0x8   :  { %32 = vperm.xlu0 %140, %v22_v7  }
  0x81   :  { %v38_v8 = vpop.permute.xlu1 %37 }
  0x83   :  { %v28_v9 = vpop.permute.xlu0 %27 }
  0x85   :  { %v43_v13 = vpop.permute.xlu1 %42 }
  0x87   :  { %v33_v16 = vpop.permute.xlu0 %32 }
  0xd9   :  { %v137_v10 = vpop.f32.mrb[0].mxu0 }
  0xda   :  { %v111_v11 = vadd.f32 %v137_v10, %v38_v8  ;;  %v102_v12 = vpop.f32.mrb[1].mxu0 }
  0xdb   :  { %v103_v14 = vadd.f32 %v102_v12, %v28_v9  ;;  %v138_v15 = vpop.f32.mrb[2].mxu0 }
  0xdc   :  { %119 = vst [vmem:[%s204_s3 + $0x10] sm:$0xff] %v111_v11  ;;  %v114_v17 = vadd.f32 %v138_v15, %v43_v13  ;;  %v105_v18 = vpop.f32.mrb[3].mxu0 }
  0xdd   :  { %117 = vst [vmem:[%s204_s3] sm:$0xff] %v103_v14  ;;  %v106_v19 = vadd.f32 %v105_v18, %v33_v16 }
  0xde   :  { %120 = vst [vmem:[%s204_s3 + $0x18] sm:$0xff] %v114_v17 }
  0xdf   :  { %118 = vst [vmem:[%s204_s3 + $0x8] sm:$0xff] %v106_v19 }

// kernel: unet_forward.6
= control target key start
LH: loop header
LB: loop body
LE: loop exit
PB: predicated region body
PF: predicated region fallthrough
CT: control target
= control target key end

     0   :  { %v633_v1 = vmov 0   ;;  %s634_s19 = smov 126   ;;  %s635_s20 = smov 127   ;;  %vm234_vm0 = vcmask 130048   ;;  %vm84_vm1 = vcmask 1039360   ;;  %vm102_vm2 = vcmask 1031168   ;;  %s838_s0 = inlined_call_operand.vmem [shape: bf16[16,256], index: 0, kind: input, shape index: {}]   ;;  %s839_s1 = inlined_call_operand.vmem [shape: bf16[16,144], index: 1, kind: input, shape index: {}]   ;;  %s840_s3 = inlined_call_operand.vmem [shape: f32[4,16,1], index: 3, kind: input, shape index: {}]   ;;  %s841_s2 = inlined_call_operand.vmem [shape: bf16[16,144], index: 2, kind: input, shape index: {}]   ;;  %s842_s4 = inlined_call_operand.vmem [shape: f32[16,128], index: 4, kind: output, shape index: {}]  }
   0x1   :  { %v615_v0 = vld [vmem:[%s838_s0] ss:$8 sps:$4 sm:$0xff]   ;;  %238 = vmatprep.subr.bf16.mxu0 %v633_v1  ;;  %613 = vset.pattern.permute.xlu1 %v633_v1  ;;  %v617_v2 = vld [vmem:[%s838_s0 + $0x4] ss:$8 sps:$4 sm:$0xff]   ;;  %s636_s23 = smov 122   ;;  %s637_s24 = smov 121   ;;  %v18_v31 = vlaneseq }
   0x2   :  { %614 = vset.pattern.permute.xlu0 %v633_v1  ;;  %459 = vmatprep.subr.bf16.mxu1 %v633_v1  ;;  %v618_v3 = vld [vmem:[%s838_s0] ss:$8 sps:$4 sm:$0xff]   ;;  %s638_s25 = smov 120   ;;  %s639_s0 = smov 116   ;;  %v621_v4 = vld [vmem:[%s839_s1 + $0x4] ss:$8 sps:$4 sm:$0xff]  }
   0x3   :  { %98 = vrot.lane.b32.xlu1 %v615_v0, %s634_s19  ;;  %80 = vrot.lane.b32.xlu0 %v615_v0, %s635_s20  ;;  %s640_s28 = smov 115   ;;  %s641_s29 = smov 114   ;;  %v301_v5 = vld [vmem:[%s840_s3] sm:$0xff]  ;;  %vm120_vm3 = vcmask 998400   ;;  %vm138_vm4 = vcmask 990208   ;;  %vm846_vm5 = vcmask 982016  }
   0x4   :  { %239 = vmatpush1.bf16.msra.mxu0 %v618_v3  ;;  %587 = vmatprep.mubr.msk.bf16.mxu0 %vm234_vm0, %v621_v4  ;;  %vm845_vm6 = vcmask 949248   ;;  %vm844_vm7 = vcmask 941056   ;;  %vm843_vm8 = vcmask 932864   ;;  %v619_v30 = vld [vmem:[%s839_s1] ss:$8 sps:$4 sm:$0xff]   ;;  %v722_v32 = vand.u32 127, %v18_v31 }
   0x5   :  { %240 = vmatprep.subr.bf16.mxu0 %v633_v1  ;;  %v588_v56 = vld [vmem:[%s840_s3 + $0x10] sm:$0xff]  ;;  %v589_v57 = vld [vmem:[%s840_s3 + $0x18] sm:$0xff]  ;;  %v302_v58 = vld [vmem:[%s840_s3 + $0x8] sm:$0xff] }
   0x6   :  { %v725_v33 = vmul.u32.u64.low 2863311531, %v722_v32  ;;  %v726_v34 = vmul.u32.u64.high 2863311531, %v722_v32, %v725_v33  ;;  %v729_v35 = vmul.u32.u64.low 3817748708, %v722_v32  ;;  %v730_v36 = vmul.u32.u64.high 3817748708, %v722_v32, %v729_v35  ;;  %v593_v31 = vld [vmem:[%s840_s3 + $0x20] sm:$0xff] }
   0x7   :  { %100 = vrot.lane.b32.xlu1 %v617_v2, %s634_s19  ;;  %82 = vrot.lane.b32.xlu0 %v617_v2, %s635_s20  ;;  %vm52_vm15 = vcmp.lt.s32.totalorder %v722_v32, 72 }
   0x8   :  { %v26_v37 = vshrl.u32 %v726_v34, 2  ;;  %v42_v38 = vshrl.u32 %v730_v36, 5 }
   0xa   :  { %v27_v39 = vmul.u32 6, %v26_v37  ;;  %v43_v40 = vmul.u32 36, %v42_v38 }
   0xb   :  { %118 = vrot.lane.b32.xlu1 %v617_v2, %s636_s23  ;;  %116 = vrot.lane.b32.xlu0 %v615_v0, %s636_s23 }
   0xc   :  { %v28_v41 = vsub.s32 %v722_v32, %v27_v39  ;;  %v44_v42 = vsub.s32 %v722_v32, %v43_v40  ;;  %v595_v32 = vld [vmem:[%s840_s3 + $0x30] sm:$0xff] }
   0xe   :  { %vm31_vm9 = vcmp.ne.s32.totalorder %v28_v41, 0  ;;  %vm32_vm10 = vcmp.lt.s32.totalorder %v28_v41, 0  ;;  %v34_v43 = vadd.s32 6, %v28_v41  ;;  %vm47_vm12 = vcmp.ne.s32.totalorder %v44_v42, 0 }
   0xf   :  { %136 = vrot.lane.b32.xlu1 %v617_v2, %s637_s24  ;;  %134 = vrot.lane.b32.xlu0 %v615_v0, %s637_s24  ;;  %vm33_vm11 = vmand %vm32_vm10, %vm31_vm9  ;;  %vm48_vm13 = vcmp.lt.s32.totalorder %v44_v42, 0  ;;  %v50_v44 = vadd.s32 36, %v44_v42 }
  0x10   :  { %v736_v45 = vsel %vm33_vm11, %v34_v43, %v28_v41  ;;  %vm49_vm14 = vmand %vm48_vm13, %vm47_vm12 }
  0x11   :  { %v738_v46 = vsel %vm49_vm14, %v50_v44, %v44_v42 }
  0x13   :  { %154 = vrot.lane.b32.xlu1 %v617_v2, %s638_s25  ;;  %152 = vrot.lane.b32.xlu0 %v615_v0, %s638_s25 }
  0x17   :  { %172 = vrot.lane.b32.xlu1 %v617_v2, %s639_s0  ;;  %170 = vrot.lane.b32.xlu0 %v615_v0, %s639_s0 }
  0x1b   :  { %190 = vrot.lane.b32.xlu1 %v617_v2, %s640_s28  ;;  %188 = vrot.lane.b32.xlu0 %v615_v0, %s640_s28 }
  0x1f   :  { %208 = vrot.lane.b32.xlu1 %v617_v2, %s641_s29  ;;  %206 = vrot.lane.b32.xlu0 %v615_v0, %s641_s29 }
  0x23   :  { %307 = vperm.xlu1 %613, %v301_v5  }
  0x75   :  { %v99_v6 = vpop.permute.xlu1 %98  ;;  %v81_v7 = vpop.permute.xlu0 %80 }
  0x79   :  { %v101_v8 = vpop.permute.xlu1 %100  ;;  %v83_v9 = vpop.permute.xlu0 %82 }
  0x7a   :  { %v85_v10 = vsel %vm84_vm1, %v81_v7, %v83_v9  ;;  %v103_v13 = vsel %vm102_vm2, %v99_v6, %v101_v8 }
  0x7b   :  { %241 = vmatpush1.bf16.msra.mxu0 %v85_v10 }
  0x7c   :  { %242 = vmatprep.subr.bf16.mxu0 %v633_v1 }
  0x7d   :  { %v119_v11 = vpop.permute.xlu1 %118  ;;  %v117_v12 = vpop.permute.xlu0 %116 }
  0x7e   :  { %v121_v14 = vsel %vm120_vm3, %v117_v12, %v119_v11 }
  0x7f   :  { %243 = vmatpush1.bf16.msra.mxu0 %v103_v13 }
  0x80   :  { %244 = vmatprep.subr.bf16.mxu0 %v633_v1 }
  0x81   :  { %v137_v15 = vpop.permute.xlu1 %136  ;;  %v135_v16 = vpop.permute.xlu0 %134 }
  0x82   :  { %v139_v17 = vsel %vm138_vm4, %v135_v16, %v137_v15 }
  0x83   :  { %245 = vmatpush1.bf16.msra.mxu0 %v121_v14 }
  0x84   :  { %246 = vmatprep.subr.bf16.mxu0 %v633_v1 }
  0x85   :  { %v155_v18 = vpop.permute.xlu1 %154  ;;  %v153_v19 = vpop.permute.xlu0 %152 }
  0x86   :  { %v157_v20 = vsel %vm846_vm5, %v153_v19, %v155_v18 }
  0x87   :  { %247 = vmatpush1.bf16.msra.mxu0 %v139_v17 }
  0x88   :  { %248 = vmatprep.subr.bf16.mxu0 %v633_v1 }
  0x89   :  { %v173_v21 = vpop.permute.xlu1 %172  ;;  %v171_v22 = vpop.permute.xlu0 %170 }
  0x8a   :  { %v175_v23 = vsel %vm845_vm6, %v171_v22, %v173_v21  ;;  %vm55_vm6 = vcmp.lt.s32.totalorder %v738_v46, 24 }
  0x8b   :  { %249 = vmatpush1.bf16.msra.mxu0 %v157_v20 }
  0x8c   :  { %250 = vmatprep.subr.bf16.mxu0 %v633_v1 }
  0x8d   :  { %v191_v24 = vpop.permute.xlu1 %190  ;;  %v189_v25 = vpop.permute.xlu0 %188 }
  0x8e   :  { %v193_v26 = vsel %vm844_vm7, %v189_v25, %v191_v24 }
  0x8f   :  { %251 = vmatpush1.bf16.msra.mxu0 %v175_v23 }
  0x90   :  { %252 = vmatprep.subr.bf16.mxu0 %v633_v1 }
  0x91   :  { %v209_v27 = vpop.permute.xlu1 %208  ;;  %v207_v28 = vpop.permute.xlu0 %206 }
  0x92   :  { %v211_v29 = vsel %vm843_vm8, %v207_v28, %v209_v27  ;;  %vm53_vm8 = vcmp.lt.s32.totalorder %v736_v45, 4 }
  0x93   :  { %253 = vmatpush1.bf16.msra.mxu0 %v193_v26  ;;  %vm54_vm7 = vmand %vm52_vm15, %vm53_vm8 }
  0x94   :  { %254 = vmatprep.subr.bf16.mxu0 %v633_v1  ;;  %vm745_vm5 = vmand %vm54_vm7, %vm55_vm6  ;;  %vm59_vm7 = vcmp.lt.s32.totalorder %v738_v46, 12  ;;  %v594_v46 = vld [vmem:[%s840_s3 + $0x28] sm:$0xff] }
  0x95   :  { %vm597_vm6 = vmpackc.low %vm745_vm5, %vm745_vm5 }
  0x97   :  { %255 = vmatpush1.bf16.msra.mxu0 %v211_v29 }
  0x9a   :  { %271 = vmatmul.mubr.bf16.vlgmr.msra.gmra.mrb[0].mxu0 %v619_v30  ;;  %v624_v30 = vld [vmem:[%s841_s2 + $0x4] ss:$8 sps:$4 sm:$0xff]  }
  0x9b   :  { %592 = vmatprep.mubr.msk.bf16.mxu1 %vm234_vm0, %v624_v30  ;;  %vm849_vm0 = vcmask 982016  }
  0xa2   :  { %v308_v59 = vpop.permute.xlu1 %307 }
 0x16d   :  { %v272_v48 = vpop.f32.mrb[0].mxu0 }
 0x16e   :  { %v274_v49 = vpop.f32.mrb[1].mxu0  ;;  %v281_v50 = vsel %vm745_vm5, %v272_v48, 0.0 }
 0x16f   :  { %283 = vadd.xlane.f32.xlu0 %v281_v50  ;;  %v275_v51 = vpop.f32.mrb[2].mxu0  ;;  %v289_v54 = vmul.f32 %v281_v50, %v281_v50 }
 0x170   :  { %v277_v52 = vpop.f32.mrb[3].mxu0  ;;  %v282_v53 = vsel %vm745_vm5, %v275_v51, 0.0 }
 0x171   :  { %285 = vadd.xlane.f32.xlu1 %v282_v53  ;;  %v290_v55 = vmul.f32 %v282_v53, %v282_v53 }
 0x173   :  { %291 = vadd.xlane.f32.xlu0 %v289_v54 }
 0x177   :  { %293 = vadd.xlane.f32.xlu0 %v290_v55 }
 0x182   :  { %328 = vperm.xlu1 %613, %v588_v56  }
 0x186   :  { %333 = vperm.xlu1 %613, %v589_v57  }
 0x18a   :  { %354 = vrot.lane.b32.xlu1 %v633_v1, %s635_s20 }
 0x18d   :  { %312 = vperm.xlu0 %614, %v302_v58  }
 0x18e   :  { %365 = vrot.lane.b32.xlu1 %v633_v1, %s634_s19 }
 0x192   :  { %376 = vrot.lane.b32.xlu1 %v633_v1, %s636_s23 }
 0x1fc   :  { %v284_v60 = vpop.xlane.xlu0 %283 }
 0x1fd   :  { %v287_v61 = vmul.f32 0.03125, %v284_v60 }
 0x1fe   :  { %v286_v62 = vpop.xlane.xlu1 %285 }
 0x1ff   :  { %v297_v0 = vmul.f32 %v287_v61, %v287_v61  ;;  %v288_v2 = vmul.f32 0.03125, %v286_v62  ;;  %v303_v11 = vsub.f32 %v272_v48, %v287_v61 }
 0x200   :  { %v292_v63 = vpop.xlane.xlu0 %291 }
 0x201   :  { %v295_v3 = vmul.f32 0.03125, %v292_v63  ;;  %v298_v6 = vmul.f32 %v288_v2, %v288_v2  ;;  %v315_v12 = vmul.f32 %v308_v59, %v303_v11  ;;  %v304_v17 = vsub.f32 %v275_v51, %v288_v2  ;;  %v622_v59 = vld [vmem:[%s841_s2] ss:$8 sps:$4 sm:$0xff]  }
 0x202   :  { %v329_v14 = vpop.permute.xlu1 %328 }
 0x203   :  { %v299_v4 = vsub.f32 %v295_v3, %v297_v0 }
 0x204   :  { %v294_v5 = vpop.xlane.xlu0 %293 }
 0x205   :  { %v317_v7 = vadd.f32 1e-05, %v299_v4  ;;  %v296_v8 = vmul.f32 0.03125, %v294_v5 }
 0x206   :  { %v334_v22 = vpop.permute.xlu1 %333 }
 0x207   :  { %625 = vrsqrt.f32 %v317_v7  ;;  %v300_v9 = vsub.f32 %v296_v8, %v298_v6 }
 0x209   :  { %v318_v10 = vadd.f32 1e-05, %v300_v9 }
 0x20a   :  { %v355_v33 = vpop.permute.xlu1 %354 }
 0x20b   :  { %627 = vrsqrt.f32 %v318_v10 }
 0x20c   :  { %v313_v15 = vpop.permute.xlu0 %312 }
 0x20d   :  { %v316_v19 = vmul.f32 %v313_v15, %v304_v17 }
 0x20e   :  { %v366_v34 = vpop.permute.xlu1 %365 }
 0x211   :  { %v626_v13 = vpop.eup %625 }
 0x212   :  { %v321_v16 = vmul.f32 %v626_v13, %v315_v12  ;;  %v377_v35 = vpop.permute.xlu1 %376 }
 0x214   :  { %v336_v18 = vadd.f32 %v329_v14, %v321_v16 }
 0x215   :  { %v628_v20 = vpop.eup %627 }
 0x216   :  { %v322_v21 = vmul.f32 %v628_v20, %v316_v19  ;;  %v338_v23 = vmax.f32 %v336_v18, 0.0 }
 0x218   :  { %v337_v24 = vadd.f32 %v334_v22, %v322_v21  ;;  %v340_v26 = vsel %vm745_vm5, %v338_v23, 0.0 }
 0x21a   :  { %v339_v25 = vmax.f32 %v337_v24, 0.0 }
 0x21c   :  { %v341_v27 = vsel %vm745_vm5, %v339_v25, 0.0  ;;  %v598_v28 = vpack.c.bf16 %v339_v25, %v338_v23 }
 0x21d   :  { %v344_v29 = vpack.c.bf16 %v341_v27, %v340_v26 }
 0x21e   :  { %599 = vmatpush1.bf16.msk.msra.mxu1 %vm597_vm6, %v598_v28 }
 0x21f   :  { %385 = vrot.lane.b32.xlu0 %v344_v29, %s637_s24  ;;  %352 = vrot.lane.b32.xlu1 %v344_v29, %s635_s20 }
 0x220   :  { %461 = vmatprep.subr.bf16.mxu1 %v633_v1 }
 0x223   :  { %396 = vrot.lane.b32.xlu0 %v344_v29, %s638_s25  ;;  %363 = vrot.lane.b32.xlu1 %v344_v29, %s634_s19 }
 0x227   :  { %407 = vrot.lane.b32.xlu0 %v344_v29, %s639_s0  ;;  %374 = vrot.lane.b32.xlu1 %v344_v29, %s636_s23 }
 0x22b   :  { %418 = vrot.lane.b32.xlu0 %v344_v29, %s640_s28  ;;  %387 = vrot.lane.b32.xlu1 %v633_v1, %s637_s24 }
 0x22f   :  { %429 = vrot.lane.b32.xlu0 %v344_v29, %s641_s29  ;;  %398 = vrot.lane.b32.xlu1 %v633_v1, %s638_s25 }
 0x233   :  { %409 = vrot.lane.b32.xlu1 %v633_v1, %s639_s0 }
 0x237   :  { %420 = vrot.lane.b32.xlu1 %v633_v1, %s640_s28 }
 0x23b   :  { %431 = vrot.lane.b32.xlu1 %v633_v1, %s641_s29 }
 0x23f   :  { %529 = vperm.xlu1 %613, %v593_v31  }
 0x291   :  { %v353_v36 = vpop.permute.xlu1 %352  ;;  %v386_v38 = vpop.permute.xlu0 %385 }
 0x292   :  { %v356_v37 = vsel %vm84_vm1, %v353_v36, %v355_v33  ;;  %vm850_vm1 = vcmask 949248  }
 0x293   :  { %462 = vmatpush1.bf16.msra.mxu1 %v356_v37 }
 0x294   :  { %463 = vmatprep.subr.bf16.mxu1 %v633_v1 }
 0x295   :  { %v364_v39 = vpop.permute.xlu1 %363  ;;  %v397_v43 = vpop.permute.xlu0 %396 }
 0x296   :  { %v367_v40 = vsel %vm102_vm2, %v364_v39, %v366_v34  ;;  %vm851_vm2 = vcmask 941056  }
 0x297   :  { %464 = vmatpush1.bf16.msra.mxu1 %v367_v40 }
 0x298   :  { %465 = vmatprep.subr.bf16.mxu1 %v633_v1 }
 0x299   :  { %v375_v41 = vpop.permute.xlu1 %374  ;;  %v408_v48 = vpop.permute.xlu0 %407 }
 0x29a   :  { %v378_v42 = vsel %vm120_vm3, %v375_v41, %v377_v35  ;;  %vm852_vm3 = vcmask 932864  }
 0x29b   :  { %466 = vmatpush1.bf16.msra.mxu1 %v378_v42 }
 0x29c   :  { %467 = vmatprep.subr.bf16.mxu1 %v633_v1 }
 0x29d   :  { %v388_v44 = vpop.permute.xlu1 %387  ;;  %v419_v53 = vpop.permute.xlu0 %418 }
 0x29e   :  { %v389_v47 = vsel %vm138_vm4, %v386_v38, %v388_v44  ;;  %vm57_vm4 = vcmp.lt.s32.totalorder %v736_v45, 2  ;;  %v596_v45 = vld [vmem:[%s840_s3 + $0x38] sm:$0xff] }
 0x29f   :  { %468 = vmatpush1.bf16.msra.mxu1 %v389_v47  ;;  %vm58_vm5 = vmand %vm52_vm15, %vm57_vm4 }
 0x2a0   :  { %469 = vmatprep.subr.bf16.mxu1 %v633_v1  ;;  %vm60_vm8 = vmand %vm58_vm5, %vm59_vm7 }
 0x2a1   :  { %v399_v49 = vpop.permute.xlu1 %398  ;;  %v430_v56 = vpop.permute.xlu0 %429 }
 0x2a2   :  { %v400_v50 = vsel %vm849_vm0, %v397_v43, %v399_v49 }
 0x2a3   :  { %470 = vmatpush1.bf16.msra.mxu1 %v400_v50 }
 0x2a4   :  { %471 = vmatprep.subr.bf16.mxu1 %v633_v1 }
 0x2a5   :  { %v410_v51 = vpop.permute.xlu1 %409 }
 0x2a6   :  { %v411_v52 = vsel %vm850_vm1, %v408_v48, %v410_v51 }
 0x2a7   :  { %472 = vmatpush1.bf16.msra.mxu1 %v411_v52 }
 0x2a8   :  { %473 = vmatprep.subr.bf16.mxu1 %v633_v1 }
 0x2a9   :  { %v421_v54 = vpop.permute.xlu1 %420 }
 0x2aa   :  { %v422_v55 = vsel %vm851_vm2, %v419_v53, %v421_v54 }
 0x2ab   :  { %474 = vmatpush1.bf16.msra.mxu1 %v422_v55 }
 0x2ac   :  { %475 = vmatprep.subr.bf16.mxu1 %v633_v1 }
 0x2ad   :  { %v432_v57 = vpop.permute.xlu1 %431 }
 0x2ae   :  { %v433_v58 = vsel %vm852_vm3, %v430_v56, %v432_v57 }
 0x2af   :  { %476 = vmatpush1.bf16.msra.mxu1 %v433_v58 }
 0x2b2   :  { %492 = vmatmul.mubr.bf16.vlgmr.msra.gmra.mrb[0].mxu1 %v622_v59 }
 0x2be   :  { %v530_v4 = vpop.permute.xlu1 %529 }
 0x385   :  { %v493_v60 = vpop.f32.mrb[0].mxu1 }
 0x386   :  { %v495_v1 = vpop.f32.mrb[1].mxu1  ;;  %v502_v61 = vsel %vm60_vm8, %v493_v60, 0.0 }
 0x387   :  { %504 = vadd.xlane.f32.xlu0 %v502_v61  ;;  %v496_v62 = vpop.f32.mrb[2].mxu1  ;;  %v510_v2 = vmul.f32 %v502_v61, %v502_v61 }
 0x388   :  { %v498_v63 = vpop.f32.mrb[3].mxu1  ;;  %v503_v0 = vsel %vm60_vm8, %v496_v62, 0.0 }
 0x389   :  { %506 = vadd.xlane.f32.xlu1 %v503_v0  ;;  %v511_v3 = vmul.f32 %v503_v0, %v503_v0 }
 0x38b   :  { %512 = vadd.xlane.f32.xlu0 %v510_v2 }
 0x38f   :  { %514 = vadd.xlane.f32.xlu0 %v511_v3 }
 0x39a   :  { %550 = vperm.xlu1 %613, %v595_v32  }
 0x39e   :  { %555 = vperm.xlu1 %613, %v596_v45  }
 0x3a5   :  { %534 = vperm.xlu0 %614, %v594_v46  }
 0x414   :  { %v505_v5 = vpop.xlane.xlu0 %504 }
 0x415   :  { %v508_v6 = vmul.f32 0.125, %v505_v5 }
 0x416   :  { %v507_v7 = vpop.xlane.xlu1 %506 }
 0x417   :  { %v518_v9 = vmul.f32 %v508_v6, %v508_v6  ;;  %v509_v10 = vmul.f32 0.125, %v507_v7  ;;  %v525_v19 = vsub.f32 %v493_v60, %v508_v6 }
 0x418   :  { %v513_v8 = vpop.xlane.xlu0 %512 }
 0x419   :  { %v516_v11 = vmul.f32 0.125, %v513_v8  ;;  %v519_v14 = vmul.f32 %v509_v10, %v509_v10  ;;  %v537_v20 = vmul.f32 %v530_v4, %v525_v19  ;;  %v526_v25 = vsub.f32 %v496_v62, %v509_v10 }
 0x41a   :  { %v551_v22 = vpop.permute.xlu1 %550 }
 0x41b   :  { %v520_v12 = vsub.f32 %v516_v11, %v518_v9 }
 0x41c   :  { %v515_v13 = vpop.xlane.xlu0 %514 }
 0x41d   :  { %v539_v15 = vadd.f32 1e-05, %v520_v12  ;;  %v517_v16 = vmul.f32 0.125, %v515_v13 }
 0x41e   :  { %v556_v31 = vpop.permute.xlu1 %555 }
 0x41f   :  { %629 = vrsqrt.f32 %v539_v15  ;;  %v521_v17 = vsub.f32 %v517_v16, %v519_v14 }
 0x421   :  { %v540_v18 = vadd.f32 1e-05, %v521_v17 }
 0x423   :  { %631 = vrsqrt.f32 %v540_v18 }
 0x424   :  { %v535_v23 = vpop.permute.xlu0 %534 }
 0x425   :  { %v538_v27 = vmul.f32 %v535_v23, %v526_v25 }
 0x429   :  { %v630_v21 = vpop.eup %629 }
 0x42a   :  { %v543_v24 = vmul.f32 %v630_v21, %v537_v20 }
 0x42c   :  { %v558_v26 = vadd.f32 %v551_v22, %v543_v24 }
 0x42d   :  { %v632_v28 = vpop.eup %631 }
 0x42e   :  { %v560_v29 = vmax.f32 %v558_v26, 0.0  ;;  %v544_v30 = vmul.f32 %v632_v28, %v538_v27 }
 0x430   :  { %562 = vst [vmem:[%s842_s4] sm:$0xff] %v560_v29  ;;  %v559_v33 = vadd.f32 %v556_v31, %v544_v30 }
 0x432   :  { %v561_v34 = vmax.f32 %v559_v33, 0.0 }
 0x434   :  { %563 = vst [vmem:[%s842_s4 + $0x8] sm:$0xff] %v561_v34 }

// kernel: unet_forward.5
= control target key start
LH: loop header
LB: loop body
LE: loop exit
PB: predicated region body
PF: predicated region fallthrough
CT: control target
= control target key end

     0   :  { %s1502_s19 = smov 127   ;;  %s1503_s26 = smov 126   ;;  %vm630_vm0 = vcmask 130048   ;;  %v1510_v12 = vmov 0   ;;  %vm220_vm1 = vcmask 1039360   ;;  %vm270_vm2 = vcmask 1031168   ;;  %s2004_s0 = inlined_call_operand.vmem [shape: bf16[16,640], index: 0, kind: input, shape index: {}]   ;;  %s2005_s1 = inlined_call_operand.vmem [shape: bf16[16,144], index: 1, kind: input, shape index: {}]   ;;  %s2006_s3 = inlined_call_operand.vmem [shape: f32[4,16,1], index: 3, kind: input, shape index: {}]   ;;  %s2007_s2 = inlined_call_operand.vmem [shape: bf16[16,144], index: 2, kind: input, shape index: {}]   ;;  %s2008_s4 = inlined_call_operand.vmem [shape: f32[16,512], index: 4, kind: output, shape index: {}]  }
   0x1   :  { %v1474_v0 = vld [vmem:[%s2004_s0 + $0x4] ss:$20 sps:$4 sm:$0xff]   ;;  %v1542_v1 = vld [vmem:[%s2004_s0] ss:$20 sps:$4 sm:$0xff]   ;;  %v1477_v2 = vld [vmem:[%s2004_s0 + $0x8] ss:$20 sps:$4 sm:$0xff]   ;;  %1472 = vset.pattern.permute.xlu1 %v1510_v12  ;;  %1473 = vset.pattern.permute.xlu0 %v1510_v12 }
   0x2   :  { %212 = vrot.lane.b32.xlu0 %v1474_v0, %s1502_s19  ;;  %v1551_v3 = vld [vmem:[%s2004_s0 + $0xc] ss:$20 sps:$4 sm:$0xff]   ;;  %634 = vmatprep.subr.bf16.mxu0 %v1474_v0  ;;  %v1480_v4 = vld [vmem:[%s2004_s0 + $0x10] ss:$20 sps:$4 sm:$0xff]   ;;  %s1504_s29 = smov 112   ;;  %s1505_s6 = smov 111  }
   0x3   :  { %210 = vrot.lane.b32.xlu1 %v1542_v1, %s1502_s19  ;;  %635 = vmatpush1.bf16.msra.mxu0 %v1542_v1  ;;  %v1481_v5 = vld [vmem:[%s2004_s0 + $0x10] ss:$20 sps:$4 sm:$0xff]   ;;  %s1506_s9 = smov 110   ;;  %s1507_s12 = smov 96   ;;  %vm320_vm3 = vcmask 916480   ;;  %vm370_vm4 = vcmask 908288  }
   0x4   :  { %677 = vmatprep.subr.bf16.mxu1 %v1551_v3  ;;  %v1482_v6 = vld [vmem:[%s2004_s0 + $0x10] ss:$20 sps:$4 sm:$0xff]   ;;  %s1508_s15 = smov 95   ;;  %s1509_s21 = smov 94   ;;  %vm420_vm5 = vcmask 900096   ;;  %vm470_vm6 = vcmask 785408  }
   0x5   :  { %678 = vmatpush1.bf16.msra.mxu1 %v1477_v2  ;;  %v1483_v7 = vld [vmem:[%s2004_s0 + $0x10] ss:$20 sps:$4 sm:$0xff]   ;;  %vm520_vm7 = vcmask 777216   ;;  %vm570_vm8 = vcmask 769024  }
   0x6   :  { %214 = vrot.lane.b32.xlu0 %v1477_v2, %s1502_s19  ;;  %v1484_v8 = vld [vmem:[%s2004_s0 + $0x10] ss:$20 sps:$4 sm:$0xff]  }
   0x7   :  { %216 = vrot.lane.b32.xlu1 %v1551_v3, %s1502_s19  ;;  %v1485_v9 = vld [vmem:[%s2004_s0 + $0x10] ss:$20 sps:$4 sm:$0xff]  }
   0x8   :  { %v1490_v10 = vld [vmem:[%s2005_s1 + $0x4] ss:$8 sps:$4 sm:$0xff]  }
   0x9   :  { %v1486_v11 = vld [vmem:[%s2004_s0 + $0x10] ss:$20 sps:$4 sm:$0xff]   ;;  %1439 = vmatprep.mubr.msk.bf16.mxu0 %vm630_vm0, %v1490_v10  ;;  %1440 = vmatprep.mubr.msk.bf16.mxu1 %vm630_vm0, %v1490_v10 }
   0xa   :  { %218 = vrot.lane.b32.xlu0 %v1480_v4, %s1502_s19  ;;  %v1487_v13 = vld [vmem:[%s2004_s0 + $0x10] ss:$20 sps:$4 sm:$0xff]  }
   0xb   :  { %262 = vrot.lane.b32.xlu1 %v1474_v0, %s1503_s26  ;;  %v772_v14 = vld [vmem:[%s2006_s3] sm:$0xff] }
   0xe   :  { %264 = vrot.lane.b32.xlu0 %v1477_v2, %s1503_s26 }
   0xf   :  { %260 = vrot.lane.b32.xlu1 %v1542_v1, %s1503_s26 }
  0x12   :  { %266 = vrot.lane.b32.xlu0 %v1551_v3, %s1503_s26 }
  0x13   :  { %268 = vrot.lane.b32.xlu1 %v1481_v5, %s1503_s26 }
  0x16   :  { %312 = vrot.lane.b32.xlu0 %v1474_v0, %s1504_s29 }
  0x17   :  { %314 = vrot.lane.b32.xlu1 %v1477_v2, %s1504_s29 }
  0x1a   :  { %310 = vrot.lane.b32.xlu0 %v1542_v1, %s1504_s29 }
  0x1b   :  { %316 = vrot.lane.b32.xlu1 %v1551_v3, %s1504_s29 }
  0x1e   :  { %318 = vrot.lane.b32.xlu0 %v1482_v6, %s1504_s29 }
  0x1f   :  { %362 = vrot.lane.b32.xlu1 %v1474_v0, %s1505_s6 }
  0x22   :  { %364 = vrot.lane.b32.xlu0 %v1477_v2, %s1505_s6 }
  0x23   :  { %360 = vrot.lane.b32.xlu1 %v1542_v1, %s1505_s6 }
  0x26   :  { %366 = vrot.lane.b32.xlu0 %v1551_v3, %s1505_s6 }
  0x27   :  { %368 = vrot.lane.b32.xlu1 %v1483_v7, %s1505_s6 }
  0x2a   :  { %412 = vrot.lane.b32.xlu0 %v1474_v0, %s1506_s9 }
  0x2b   :  { %414 = vrot.lane.b32.xlu1 %v1477_v2, %s1506_s9 }
  0x2e   :  { %410 = vrot.lane.b32.xlu0 %v1542_v1, %s1506_s9 }
  0x2f   :  { %416 = vrot.lane.b32.xlu1 %v1551_v3, %s1506_s9 }
  0x32   :  { %418 = vrot.lane.b32.xlu0 %v1484_v8, %s1506_s9 }
  0x33   :  { %462 = vrot.lane.b32.xlu1 %v1474_v0, %s1507_s12 }
  0x36   :  { %464 = vrot.lane.b32.xlu0 %v1477_v2, %s1507_s12 }
  0x37   :  { %460 = vrot.lane.b32.xlu1 %v1542_v1, %s1507_s12 }
  0x3a   :  { %466 = vrot.lane.b32.xlu0 %v1551_v3, %s1507_s12 }
  0x3b   :  { %468 = vrot.lane.b32.xlu1 %v1485_v9, %s1507_s12 }
  0x3e   :  { %512 = vrot.lane.b32.xlu0 %v1474_v0, %s1508_s15 }
  0x3f   :  { %514 = vrot.lane.b32.xlu1 %v1477_v2, %s1508_s15 }
  0x42   :  { %510 = vrot.lane.b32.xlu0 %v1542_v1, %s1508_s15 }
  0x43   :  { %516 = vrot.lane.b32.xlu1 %v1551_v3, %s1508_s15 }
  0x46   :  { %518 = vrot.lane.b32.xlu0 %v1486_v11, %s1508_s15 }
  0x47   :  { %562 = vrot.lane.b32.xlu1 %v1474_v0, %s1509_s21 }
  0x4a   :  { %564 = vrot.lane.b32.xlu0 %v1477_v2, %s1509_s21 }
  0x4b   :  { %560 = vrot.lane.b32.xlu1 %v1542_v1, %s1509_s21 }
  0x4e   :  { %566 = vrot.lane.b32.xlu0 %v1551_v3, %s1509_s21 }
  0x4f   :  { %568 = vrot.lane.b32.xlu1 %v1487_v13, %s1509_s21 }
  0x53   :  { %784 = vperm.xlu1 %1472, %v772_v14  }
  0x74   :  { %v213_v15 = vpop.permute.xlu0 %212 }
  0x75   :  { %v211_v16 = vpop.permute.xlu1 %210 }
  0x76   :  { %v221_v20 = vsel %vm220_vm1, %v211_v16, %v213_v15 }
  0x78   :  { %v215_v17 = vpop.permute.xlu0 %214 }
  0x79   :  { %v217_v18 = vpop.permute.xlu1 %216  ;;  %v222_v19 = vsel %vm220_vm1, %v213_v15, %v215_v17 }
  0x7a   :  { %636 = vmatprep.subr.bf16.mxu0 %v222_v19  ;;  %v223_v24 = vsel %vm220_vm1, %v215_v17, %v217_v18 }
  0x7b   :  { %637 = vmatpush1.bf16.msra.mxu0 %v221_v20  ;;  %v1488_v20 = vld [vmem:[%s2005_s1] ss:$8 sps:$4 sm:$0xff]  }
  0x7c   :  { %v219_v21 = vpop.permute.xlu0 %218 }
  0x7d   :  { %v263_v22 = vpop.permute.xlu1 %262  ;;  %v224_v23 = vsel %vm220_vm1, %v217_v18, %v219_v21 }
  0x7e   :  { %679 = vmatprep.subr.bf16.mxu1 %v224_v23 }
  0x7f   :  { %680 = vmatpush1.bf16.msra.mxu1 %v223_v24 }
  0x80   :  { %v265_v25 = vpop.permute.xlu0 %264 }
  0x81   :  { %v261_v26 = vpop.permute.xlu1 %260  ;;  %v272_v27 = vsel %vm270_vm2, %v263_v22, %v265_v25 }
  0x82   :  { %638 = vmatprep.subr.bf16.mxu0 %v272_v27  ;;  %v271_v28 = vsel %vm270_vm2, %v261_v26, %v263_v22 }
  0x83   :  { %639 = vmatpush1.bf16.msra.mxu0 %v271_v28 }
  0x84   :  { %v267_v29 = vpop.permute.xlu0 %266 }
  0x85   :  { %v269_v30 = vpop.permute.xlu1 %268  ;;  %v273_v31 = vsel %vm270_vm2, %v265_v25, %v267_v29  ;;  %v18_v25 = vlaneseq }
  0x86   :  { %v274_v32 = vsel %vm270_vm2, %v267_v29, %v269_v30 }
  0x87   :  { %681 = vmatprep.subr.bf16.mxu1 %v274_v32  ;;  %v1679_v26 = vand.u32 127, %v18_v25 }
  0x88   :  { %682 = vmatpush1.bf16.msra.mxu1 %v273_v31  ;;  %v313_v33 = vpop.permute.xlu0 %312 }
  0x89   :  { %v315_v34 = vpop.permute.xlu1 %314  ;;  %v1682_v27 = vadd.s32 128, %v1679_v26  ;;  %v1687_v30 = vadd.s32 384, %v1679_v26  ;;  %v27_v31 = vand.u32 15, %v1679_v26  ;;  %v1691_v32 = vadd.s32 256, %v1679_v26 }
  0x8a   :  { %v322_v35 = vsel %vm320_vm3, %v313_v33, %v315_v34 }
  0x8b   :  { %640 = vmatprep.subr.bf16.mxu0 %v322_v35  ;;  %v34_v28 = vand.u32 15, %v1682_v27  ;;  %v82_v29 = vand.u32 255, %v1682_v27  ;;  %vm1701_vm11 = vcmp.lt.s32.totalorder %v27_v31, 14  ;;  %v1491_v35 = vld [vmem:[%s2007_s2 + $0x4] ss:$8 sps:$4 sm:$0xff]  }
  0x8c   :  { %v311_v36 = vpop.permute.xlu0 %310 }
  0x8d   :  { %v317_v37 = vpop.permute.xlu1 %316  ;;  %v321_v38 = vsel %vm320_vm3, %v311_v36, %v313_v33  ;;  %vm124_vm9 = vcmp.lt.s32.totalorder %v34_v28, 14  ;;  %vm132_vm10 = vcmp.lt.s32.totalorder %v82_v29, 224  ;;  %v48_v33 = vand.u32 15, %v1687_v30 }
  0x8e   :  { %641 = vmatpush1.bf16.msra.mxu0 %v321_v38  ;;  %v323_v42 = vsel %vm320_vm3, %v315_v34, %v317_v37  ;;  %v96_v34 = vand.u32 255, %v1687_v30  ;;  %vm1705_vm12 = vmand %vm124_vm9, %vm132_vm10 }
  0x8f   :  { %vm126_vm13 = vcmp.lt.s32.totalorder %v48_v33, 14  ;;  %vm1451_vm10 = vmpackc.low %vm1705_vm12, %vm1705_vm12 }
  0x90   :  { %v319_v39 = vpop.permute.xlu0 %318  ;;  %vm134_vm14 = vcmp.lt.s32.totalorder %v96_v34, 224 }
  0x91   :  { %v363_v40 = vpop.permute.xlu1 %362  ;;  %v324_v41 = vsel %vm320_vm3, %v317_v37, %v319_v39  ;;  %v41_v37 = vand.u32 15, %v1691_v32  ;;  %vm1740_vm9 = vmand %vm126_vm13, %vm134_vm14 }
  0x92   :  { %683 = vmatprep.subr.bf16.mxu1 %v324_v41  ;;  %vm1457_vm13 = vmpackc.low %vm1740_vm9, %vm1740_vm9 }
  0x93   :  { %684 = vmatpush1.bf16.msra.mxu1 %v323_v42  ;;  %vm1733_vm15 = vcmp.lt.s32.totalorder %v41_v37, 14  ;;  %vm1454_vm14 = vmpackc.low %vm1701_vm11, %vm1701_vm11 }
  0x94   :  { %v365_v43 = vpop.permute.xlu0 %364 }
  0x95   :  { %v361_v44 = vpop.permute.xlu1 %360  ;;  %v372_v45 = vsel %vm370_vm4, %v363_v40, %v365_v43 }
  0x96   :  { %642 = vmatprep.subr.bf16.mxu0 %v372_v45  ;;  %v371_v46 = vsel %vm370_vm4, %v361_v44, %v363_v40 }
  0x97   :  { %643 = vmatpush1.bf16.msra.mxu0 %v371_v46 }
  0x98   :  { %v367_v47 = vpop.permute.xlu0 %366 }
  0x99   :  { %v369_v48 = vpop.permute.xlu1 %368  ;;  %v373_v49 = vsel %vm370_vm4, %v365_v43, %v367_v47 }
  0x9a   :  { %v374_v50 = vsel %vm370_vm4, %v367_v47, %v369_v48  ;;  %v1447_v48 = vld [vmem:[%s2006_s3 + $0x20] sm:$0xff] }
  0x9b   :  { %685 = vmatprep.subr.bf16.mxu1 %v374_v50 }
  0x9c   :  { %686 = vmatpush1.bf16.msra.mxu1 %v373_v49  ;;  %v413_v51 = vpop.permute.xlu0 %412 }
  0x9d   :  { %v415_v52 = vpop.permute.xlu1 %414 }
  0x9e   :  { %v422_v53 = vsel %vm420_vm5, %v413_v51, %v415_v52 }
  0x9f   :  { %644 = vmatprep.subr.bf16.mxu0 %v422_v53 }
  0xa0   :  { %v411_v54 = vpop.permute.xlu0 %410 }
  0xa1   :  { %v417_v55 = vpop.permute.xlu1 %416  ;;  %v421_v56 = vsel %vm420_vm5, %v411_v54, %v413_v51 }
  0xa2   :  { %645 = vmatpush1.bf16.msra.mxu0 %v421_v56  ;;  %v423_v60 = vsel %vm420_vm5, %v415_v52, %v417_v55 }
  0xa4   :  { %v419_v57 = vpop.permute.xlu0 %418 }
  0xa5   :  { %v463_v58 = vpop.permute.xlu1 %462  ;;  %v424_v59 = vsel %vm420_vm5, %v417_v55, %v419_v57 }
  0xa6   :  { %687 = vmatprep.subr.bf16.mxu1 %v424_v59 }
  0xa7   :  { %688 = vmatpush1.bf16.msra.mxu1 %v423_v60 }
  0xa8   :  { %v465_v61 = vpop.permute.xlu0 %464 }
  0xa9   :  { %v461_v62 = vpop.permute.xlu1 %460  ;;  %v472_v63 = vsel %vm470_vm6, %v463_v58, %v465_v61 }
  0xaa   :  { %646 = vmatprep.subr.bf16.mxu0 %v472_v63  ;;  %v471_v0 = vsel %vm470_vm6, %v461_v62, %v463_v58 }
  0xab   :  { %647 = vmatpush1.bf16.msra.mxu0 %v471_v0 }
  0xac   :  { %v467_v1 = vpop.permute.xlu0 %466 }
  0xad   :  { %v469_v2 = vpop.permute.xlu1 %468  ;;  %v473_v3 = vsel %vm470_vm6, %v465_v61, %v467_v1 }
  0xae   :  { %v474_v4 = vsel %vm470_vm6, %v467_v1, %v469_v2 }
  0xaf   :  { %689 = vmatprep.subr.bf16.mxu1 %v474_v4 }
  0xb0   :  { %690 = vmatpush1.bf16.msra.mxu1 %v473_v3  ;;  %v513_v5 = vpop.permute.xlu0 %512 }
  0xb1   :  { %v515_v6 = vpop.permute.xlu1 %514 }
  0xb2   :  { %v522_v7 = vsel %vm520_vm7, %v513_v5, %v515_v6 }
  0xb3   :  { %648 = vmatprep.subr.bf16.mxu0 %v522_v7 }
  0xb4   :  { %v511_v8 = vpop.permute.xlu0 %510 }
  0xb5   :  { %v517_v9 = vpop.permute.xlu1 %516  ;;  %v521_v10 = vsel %vm520_vm7, %v511_v8, %v513_v5 }
  0xb6   :  { %649 = vmatpush1.bf16.msra.mxu0 %v521_v10  ;;  %v523_v15 = vsel %vm520_vm7, %v515_v6, %v517_v9 }
  0xb8   :  { %v519_v11 = vpop.permute.xlu0 %518 }
  0xb9   :  { %v563_v13 = vpop.permute.xlu1 %562  ;;  %v524_v14 = vsel %vm520_vm7, %v517_v9, %v519_v11 }
  0xba   :  { %691 = vmatprep.subr.bf16.mxu1 %v524_v14  ;;  %v1442_v14 = vld [vmem:[%s2006_s3 + $0x18] sm:$0xff] }
  0xbb   :  { %692 = vmatpush1.bf16.msra.mxu1 %v523_v15  ;;  %v773_v15 = vld [vmem:[%s2006_s3 + $0x8] sm:$0xff] }
  0xbc   :  { %v565_v16 = vpop.permute.xlu0 %564 }
  0xbd   :  { %v561_v17 = vpop.permute.xlu1 %560  ;;  %v572_v18 = vsel %vm570_vm8, %v563_v13, %v565_v16 }
  0xbe   :  { %650 = vmatprep.subr.bf16.mxu0 %v572_v18  ;;  %v571_v19 = vsel %vm570_vm8, %v561_v17, %v563_v13  ;;  %v1441_v13 = vld [vmem:[%s2006_s3 + $0x10] sm:$0xff] }
  0xbf   :  { %651 = vmatpush1.bf16.msra.mxu0 %v571_v19 }
  0xc0   :  { %v567_v21 = vpop.permute.xlu0 %566 }
  0xc1   :  { %v569_v22 = vpop.permute.xlu1 %568  ;;  %v573_v23 = vsel %vm570_vm8, %v565_v16, %v567_v21 }
  0xc2   :  { %667 = vmatmul.mubr.bf16.vlgmr.msra.gmra.mrb[0].mxu0 %v1488_v20  ;;  %v574_v24 = vsel %vm570_vm8, %v567_v21, %v569_v22 }
  0xc3   :  { %693 = vmatprep.subr.bf16.mxu1 %v574_v24  ;;  %1445 = vmatprep.mubr.msk.bf16.mxu0 %vm630_vm0, %v1491_v35 }
  0xc4   :  { %694 = vmatpush1.bf16.msra.mxu1 %v573_v23 }
  0xc7   :  { %710 = vmatmul.mubr.bf16.vlgmr.msra.gmra.mrb[0].mxu1 %v1488_v20 }
  0xc8   :  { %1446 = vmatprep.mubr.msk.bf16.mxu1 %vm630_vm0, %v1491_v35  ;;  %vm1903_vm0 = vcmp.lt.s32.totalorder %v34_v28, 12 }
  0xd2   :  { %v785_v16 = vpop.permute.xlu1 %784 }
 0x195   :  { %v1710_v38 = vpop.f32.mrb[0].mxu0 }
 0x196   :  { %v728_v39 = vsel %vm1701_vm11, %v1710_v38, 0.0  ;;  %v1715_v40 = vpop.f32.mrb[1].mxu0 }
 0x197   :  { %v748_v41 = vmul.f32 %v728_v39, %v728_v39  ;;  %v729_v42 = vsel %vm1705_vm12, %v1715_v40, 0.0  ;;  %v1724_v43 = vpop.f32.mrb[2].mxu0 }
 0x198   :  { %v736_v44 = vadd.f32 %v729_v42, %v728_v39  ;;  %v749_v45 = vmul.f32 %v729_v42, %v729_v42  ;;  %v732_v46 = vsel %vm1701_vm11, %v1724_v43, 0.0  ;;  %v1729_v47 = vpop.f32.mrb[3].mxu0 }
 0x199   :  { %v752_v49 = vmul.f32 %v732_v46, %v732_v46  ;;  %v733_v50 = vsel %vm1705_vm12, %v1729_v47, 0.0 }
 0x19a   :  { %v756_v52 = vadd.f32 %v749_v45, %v748_v41  ;;  %v741_v53 = vadd.f32 %v733_v50, %v732_v46  ;;  %v753_v54 = vmul.f32 %v733_v50, %v733_v50  ;;  %v711_v55 = vpop.f32.mrb[0].mxu1 }
 0x19b   :  { %v730_v56 = vsel %vm1733_vm15, %v711_v55, 0.0  ;;  %v713_v57 = vpop.f32.mrb[1].mxu1 }
 0x19c   :  { %v761_v58 = vadd.f32 %v753_v54, %v752_v49  ;;  %v737_v59 = vadd.f32 %v736_v44, %v730_v56  ;;  %v750_v60 = vmul.f32 %v730_v56, %v730_v56  ;;  %v731_v61 = vsel %vm1740_vm9, %v713_v57, 0.0  ;;  %v1748_v62 = vpop.f32.mrb[2].mxu1 }
 0x19d   :  { %v751_v63 = vmul.f32 %v731_v61, %v731_v61  ;;  %v734_v0 = vsel %vm1733_vm15, %v1748_v62, 0.0  ;;  %v1753_v1 = vpop.f32.mrb[3].mxu1 }
 0x19e   :  { %v742_v2 = vadd.f32 %v741_v53, %v734_v0  ;;  %v754_v3 = vmul.f32 %v734_v0, %v734_v0  ;;  %v735_v4 = vsel %vm1740_vm9, %v1753_v1, 0.0  ;;  %v738_v5 = vadd.f32 %v737_v59, %v731_v61 }
 0x19f   :  { %v755_v6 = vmul.f32 %v735_v4, %v735_v4  ;;  %v757_v7 = vadd.f32 %v756_v52, %v750_v60 }
 0x1a0   :  { %739 = vadd.xlane.f32.xlu0 %v738_v5  ;;  %v743_v8 = vadd.f32 %v742_v2, %v735_v4  ;;  %v762_v9 = vadd.f32 %v761_v58, %v754_v3 }
 0x1a1   :  { %v758_v10 = vadd.f32 %v757_v7, %v751_v63 }
 0x1a2   :  { %744 = vadd.xlane.f32.xlu1 %v743_v8  ;;  %v763_v11 = vadd.f32 %v762_v9, %v755_v6 }
 0x1a4   :  { %759 = vadd.xlane.f32.xlu0 %v758_v10 }
 0x1a8   :  { %764 = vadd.xlane.f32.xlu0 %v763_v11 }
 0x1b3   :  { %817 = vperm.xlu1 %1472, %v1441_v13  }
 0x1b7   :  { %822 = vperm.xlu1 %1472, %v1442_v14  }
 0x1bb   :  { %885 = vrot.lane.b32.xlu1 %v1510_v12, %s1502_s19 }
 0x1be   :  { %789 = vperm.xlu0 %1473, %v773_v15  }
 0x1bf   :  { %917 = vrot.lane.b32.xlu1 %v1510_v12, %s1503_s26 }
 0x1c2   :  { %949 = vrot.lane.b32.xlu0 %v1510_v12, %s1504_s29 }
 0x1c3   :  { %981 = vrot.lane.b32.xlu1 %v1510_v12, %s1505_s6 }
 0x1c6   :  { %1013 = vrot.lane.b32.xlu0 %v1510_v12, %s1506_s9 }
 0x1c7   :  { %1045 = vrot.lane.b32.xlu1 %v1510_v12, %s1507_s12 }
 0x1ca   :  { %1077 = vrot.lane.b32.xlu0 %v1510_v12, %s1508_s15 }
 0x22d   :  { %v740_v17 = vpop.xlane.xlu0 %739 }
 0x22e   :  { %v746_v18 = vmul.f32 0.0025510204, %v740_v17 }
 0x22f   :  { %v745_v19 = vpop.xlane.xlu1 %744 }
 0x230   :  { %v747_v21 = vmul.f32 0.0025510204, %v745_v19  ;;  %v768_v22 = vmul.f32 %v746_v18, %v746_v18  ;;  %v774_v46 = vsub.f32 %v1710_v38, %v746_v18  ;;  %v775_v49 = vsub.f32 %v1715_v40, %v746_v18 }
 0x231   :  { %v760_v20 = vpop.xlane.xlu0 %759  ;;  %v776_v50 = vsub.f32 %v711_v55, %v746_v18  ;;  %v777_v52 = vsub.f32 %v713_v57, %v746_v18 }
 0x232   :  { %v766_v23 = vmul.f32 0.0025510204, %v760_v20  ;;  %v769_v42 = vmul.f32 %v747_v21, %v747_v21  ;;  %v792_v53 = vmul.f32 %v785_v16, %v774_v46  ;;  %v793_v54 = vmul.f32 %v785_v16, %v775_v49 }
 0x233   :  { %v794_v56 = vmul.f32 %v785_v16, %v776_v50  ;;  %v795_v58 = vmul.f32 %v785_v16, %v777_v52  ;;  %v818_v2 = vpop.permute.xlu1 %817  ;;  %v778_v4 = vsub.f32 %v1724_v43, %v747_v21  ;;  %v779_v5 = vsub.f32 %v1729_v47, %v747_v21 }
 0x234   :  { %v770_v24 = vsub.f32 %v766_v23, %v768_v22  ;;  %v780_v38 = vsub.f32 %v1748_v62, %v747_v21  ;;  %v781_v40 = vsub.f32 %v1753_v1, %v747_v21 }
 0x235   :  { %v765_v25 = vpop.xlane.xlu0 %764 }
 0x236   :  { %v800_v39 = vadd.f32 1e-05, %v770_v24  ;;  %v767_v41 = vmul.f32 0.0025510204, %v765_v25 }
 0x237   :  { %v823_v62 = vpop.permute.xlu1 %822 }
 0x238   :  { %1494 = vrsqrt.f32 %v800_v39  ;;  %v771_v44 = vsub.f32 %v767_v41, %v769_v42 }
 0x23a   :  { %v801_v45 = vadd.f32 1e-05, %v771_v44 }
 0x23b   :  { %v886_v51 = vpop.permute.xlu1 %885 }
 0x23c   :  { %1496 = vrsqrt.f32 %v801_v45 }
 0x23d   :  { %v790_v3 = vpop.permute.xlu0 %789 }
 0x23e   :  { %v796_v9 = vmul.f32 %v790_v3, %v778_v4  ;;  %v797_v10 = vmul.f32 %v790_v3, %v779_v5  ;;  %v798_v11 = vmul.f32 %v790_v3, %v780_v38  ;;  %v799_v13 = vmul.f32 %v790_v3, %v781_v40 }
 0x242   :  { %v1495_v59 = vpop.eup %1494 }
 0x243   :  { %v804_v60 = vmul.f32 %v1495_v59, %v792_v53  ;;  %v805_v61 = vmul.f32 %v1495_v59, %v793_v54  ;;  %v806_v63 = vmul.f32 %v1495_v59, %v794_v56  ;;  %v807_v0 = vmul.f32 %v1495_v59, %v795_v58 }
 0x245   :  { %v825_v55 = vadd.f32 %v818_v2, %v804_v60  ;;  %v826_v57 = vadd.f32 %v818_v2, %v805_v61  ;;  %v827_v6 = vadd.f32 %v818_v2, %v806_v63  ;;  %v828_v7 = vadd.f32 %v818_v2, %v807_v0  ;;  %v950_v63 = vpop.permute.xlu0 %949  ;;  %v918_v0 = vpop.permute.xlu1 %917 }
 0x246   :  { %v1497_v8 = vpop.eup %1496 }
 0x247   :  { %v808_v14 = vmul.f32 %v1497_v8, %v796_v9  ;;  %v809_v15 = vmul.f32 %v1497_v8, %v797_v10  ;;  %v810_v16 = vmul.f32 %v1497_v8, %v798_v11  ;;  %v811_v17 = vmul.f32 %v1497_v8, %v799_v13 }
 0x248   :  { %v833_v43 = vmax.f32 %v825_v55, 0.0  ;;  %v834_v18 = vmax.f32 %v826_v57, 0.0  ;;  %v835_v47 = vmax.f32 %v827_v6, 0.0  ;;  %v836_v19 = vmax.f32 %v828_v7, 0.0 }
 0x249   :  { %v829_v20 = vadd.f32 %v823_v62, %v808_v14  ;;  %v830_v1 = vadd.f32 %v823_v62, %v809_v15  ;;  %v831_v21 = vadd.f32 %v823_v62, %v810_v16  ;;  %v832_v22 = vadd.f32 %v823_v62, %v811_v17  ;;  %v1857_v2 = vpop.permute.xlu0 %1013  ;;  %v982_v3 = vpop.permute.xlu1 %981 }
 0x24a   :  { %v841_v41 = vsel %vm1701_vm11, %v833_v43, 0.0  ;;  %v842_v42 = vsel %vm1705_vm12, %v834_v18, 0.0  ;;  %v843_v44 = vsel %vm1733_vm15, %v835_v47, 0.0  ;;  %v844_v45 = vsel %vm1740_vm9, %v836_v19, 0.0 }
 0x24b   :  { %v837_v23 = vmax.f32 %v829_v20, 0.0  ;;  %v839_v24 = vmax.f32 %v831_v21, 0.0  ;;  %v838_v25 = vmax.f32 %v830_v1, 0.0  ;;  %v840_v39 = vmax.f32 %v832_v22, 0.0 }
 0x24d   :  { %v845_v46 = vsel %vm1701_vm11, %v837_v23, 0.0  ;;  %v847_v49 = vsel %vm1733_vm15, %v839_v24, 0.0  ;;  %v846_v50 = vsel %vm1705_vm12, %v838_v25, 0.0  ;;  %v1452_v52 = vpack.c.bf16 %v838_v25, %v834_v18  ;;  %vm1460_vm12 = vmpackc.low %vm1733_vm15, %vm1733_vm15  ;;  %v1859_v4 = vpop.permute.xlu0 %1077  ;;  %v1861_v5 = vpop.permute.xlu1 %1045 }
 0x24e   :  { %v851_v53 = vpack.c.bf16 %v845_v46, %v841_v41  ;;  %v853_v54 = vpack.c.bf16 %v847_v49, %v843_v44  ;;  %v852_v56 = vpack.c.bf16 %v846_v50, %v842_v42  ;;  %v848_v58 = vsel %vm1740_vm9, %v840_v39, 0.0 }
 0x24f   :  { %1453 = vmatprep.subr.msk.bf16.mxu0 %vm1451_vm10, %v1452_v52  ;;  %v854_v59 = vpack.c.bf16 %v848_v58, %v844_v45  ;;  %v1458_v60 = vpack.c.bf16 %v840_v39, %v836_v19  ;;  %v1461_v36 = vpack.c.bf16 %v839_v24, %v835_v47  ;;  %v1455_v61 = vpack.c.bf16 %v837_v23, %v833_v43 }
 0x250   :  { %913 = vrot.lane.b32.xlu0 %v853_v54, %s1503_s26  ;;  %879 = vrot.lane.b32.xlu1 %v852_v56, %s1502_s19 }
 0x251   :  { %1459 = vmatprep.subr.msk.bf16.mxu1 %vm1457_vm13, %v1458_v60  ;;  %1456 = vmatpush1.bf16.msk.msra.mxu0 %vm1454_vm14, %v1455_v61 }
 0x252   :  { %1462 = vmatpush1.bf16.msk.msra.mxu1 %vm1460_vm12, %v1461_v36 }
 0x254   :  { %915 = vrot.lane.b32.xlu0 %v854_v59, %s1503_s26  ;;  %881 = vrot.lane.b32.xlu1 %v853_v54, %s1502_s19 }
 0x258   :  { %943 = vrot.lane.b32.xlu0 %v852_v56, %s1504_s29  ;;  %877 = vrot.lane.b32.xlu1 %v851_v53, %s1502_s19 }
 0x25c   :  { %941 = vrot.lane.b32.xlu0 %v851_v53, %s1504_s29  ;;  %883 = vrot.lane.b32.xlu1 %v854_v59, %s1502_s19 }
 0x260   :  { %977 = vrot.lane.b32.xlu0 %v853_v54, %s1505_s6  ;;  %911 = vrot.lane.b32.xlu1 %v852_v56, %s1503_s26 }
 0x264   :  { %979 = vrot.lane.b32.xlu0 %v854_v59, %s1505_s6  ;;  %909 = vrot.lane.b32.xlu1 %v851_v53, %s1503_s26 }
 0x268   :  { %1007 = vrot.lane.b32.xlu0 %v852_v56, %s1506_s9  ;;  %945 = vrot.lane.b32.xlu1 %v853_v54, %s1504_s29 }
 0x26c   :  { %1005 = vrot.lane.b32.xlu0 %v851_v53, %s1506_s9  ;;  %947 = vrot.lane.b32.xlu1 %v854_v59, %s1504_s29 }
 0x270   :  { %1041 = vrot.lane.b32.xlu0 %v853_v54, %s1507_s12  ;;  %975 = vrot.lane.b32.xlu1 %v852_v56, %s1505_s6 }
 0x274   :  { %1043 = vrot.lane.b32.xlu0 %v854_v59, %s1507_s12  ;;  %973 = vrot.lane.b32.xlu1 %v851_v53, %s1505_s6 }
 0x278   :  { %1071 = vrot.lane.b32.xlu0 %v852_v56, %s1508_s15  ;;  %1009 = vrot.lane.b32.xlu1 %v853_v54, %s1506_s9 }
 0x27c   :  { %1069 = vrot.lane.b32.xlu0 %v851_v53, %s1508_s15  ;;  %1011 = vrot.lane.b32.xlu1 %v854_v59, %s1506_s9 }
 0x280   :  { %1105 = vrot.lane.b32.xlu0 %v853_v54, %s1509_s21  ;;  %1039 = vrot.lane.b32.xlu1 %v852_v56, %s1507_s12 }
 0x284   :  { %1107 = vrot.lane.b32.xlu0 %v854_v59, %s1509_s21  ;;  %1037 = vrot.lane.b32.xlu1 %v851_v53, %s1507_s12 }
 0x288   :  { %1073 = vrot.lane.b32.xlu1 %v853_v54, %s1508_s15 }
 0x28c   :  { %1075 = vrot.lane.b32.xlu1 %v854_v59, %s1508_s15 }
 0x290   :  { %1103 = vrot.lane.b32.xlu1 %v852_v56, %s1509_s21 }
 0x294   :  { %1101 = vrot.lane.b32.xlu1 %v851_v53, %s1509_s21 }
 0x298   :  { %1109 = vrot.lane.b32.xlu1 %v1510_v12, %s1509_s21 }
 0x29c   :  { %1324 = vperm.xlu1 %1472, %v1447_v48  }
 0x2c2   :  { %v914_v38 = vpop.permute.xlu0 %913  ;;  %v880_v40 = vpop.permute.xlu1 %879 }
 0x2c6   :  { %v916_v55 = vpop.permute.xlu0 %915  ;;  %v882_v57 = vpop.permute.xlu1 %881 }
 0x2c7   :  { %v888_v12 = vsel %vm220_vm1, %v880_v40, %v882_v57  ;;  %v922_v14 = vsel %vm270_vm2, %v916_v55, %v918_v0  ;;  %v921_v43 = vsel %vm270_vm2, %v914_v38, %v916_v55 }
 0x2c8   :  { %1175 = vmatprep.subr.bf16.mxu0 %v888_v12 }
 0x2ca   :  { %v944_v6 = vpop.permute.xlu0 %943  ;;  %v878_v7 = vpop.permute.xlu1 %877 }
 0x2cb   :  { %v887_v8 = vsel %vm220_vm1, %v878_v7, %v880_v40 }
 0x2cc   :  { %1176 = vmatpush1.bf16.msra.mxu0 %v887_v8 }
 0x2ce   :  { %v942_v9 = vpop.permute.xlu0 %941  ;;  %v884_v10 = vpop.permute.xlu1 %883 }
 0x2cf   :  { %v889_v11 = vsel %vm220_vm1, %v882_v57, %v884_v10  ;;  %v890_v13 = vsel %vm220_vm1, %v884_v10, %v886_v51  ;;  %v951_v21 = vsel %vm320_vm3, %v942_v9, %v944_v6  ;;  %v1493_v9 = vld [vmem:[%s2007_s2] ss:$8 sps:$4 sm:$0xff]   ;;  %vm1909_vm1 = vcmp.lt.s32.totalorder %v82_v29, 192 }
 0x2d0   :  { %1218 = vmatprep.subr.bf16.mxu1 %v890_v13 }
 0x2d1   :  { %1219 = vmatpush1.bf16.msra.mxu1 %v889_v11 }
 0x2d2   :  { %v978_v15 = vpop.permute.xlu0 %977  ;;  %1220 = vmatprep.subr.bf16.mxu1 %v922_v14  ;;  %v912_v16 = vpop.permute.xlu1 %911 }
 0x2d3   :  { %v920_v17 = vsel %vm270_vm2, %v912_v16, %v914_v38 }
 0x2d4   :  { %1177 = vmatprep.subr.bf16.mxu0 %v920_v17 }
 0x2d5   :  { %1221 = vmatpush1.bf16.msra.mxu1 %v921_v43 }
 0x2d6   :  { %v980_v18 = vpop.permute.xlu0 %979  ;;  %v910_v47 = vpop.permute.xlu1 %909 }
 0x2d7   :  { %v919_v19 = vsel %vm270_vm2, %v910_v47, %v912_v16  ;;  %v986_v39 = vsel %vm370_vm4, %v980_v18, %v982_v3  ;;  %v985_v44 = vsel %vm370_vm4, %v978_v15, %v980_v18  ;;  %vm139_vm2 = vcmp.lt.s32.totalorder %v27_v31, 12 }
 0x2d8   :  { %1178 = vmatpush1.bf16.msra.mxu0 %v919_v19 }
 0x2da   :  { %v946_v62 = vpop.permute.xlu1 %945  ;;  %v1008_v20 = vpop.permute.xlu0 %1007 }
 0x2db   :  { %v952_v1 = vsel %vm320_vm3, %v944_v6, %v946_v62 }
 0x2dc   :  { %1179 = vmatprep.subr.bf16.mxu0 %v952_v1 }
 0x2dd   :  { %1180 = vmatpush1.bf16.msra.mxu0 %v951_v21 }
 0x2de   :  { %v948_v22 = vpop.permute.xlu1 %947  ;;  %v1006_v25 = vpop.permute.xlu0 %1005 }
 0x2df   :  { %v953_v23 = vsel %vm320_vm3, %v946_v62, %v948_v22  ;;  %v954_v24 = vsel %vm320_vm3, %v948_v22, %v950_v63  ;;  %v1015_v53 = vsel %vm420_vm5, %v1006_v25, %v1008_v20  ;;  %vm152_vm3 = vmand %vm1903_vm0, %vm1909_vm1 }
 0x2e0   :  { %1222 = vmatprep.subr.bf16.mxu1 %v954_v24 }
 0x2e1   :  { %1223 = vmatpush1.bf16.msra.mxu1 %v953_v23 }
 0x2e2   :  { %1224 = vmatprep.subr.bf16.mxu1 %v986_v39  ;;  %v976_v41 = vpop.permute.xlu1 %975  ;;  %v1042_v46 = vpop.permute.xlu0 %1041 }
 0x2e3   :  { %v984_v42 = vsel %vm370_vm4, %v976_v41, %v978_v15 }
 0x2e4   :  { %1181 = vmatprep.subr.bf16.mxu0 %v984_v42 }
 0x2e5   :  { %1225 = vmatpush1.bf16.msra.mxu1 %v985_v44 }
 0x2e6   :  { %v974_v45 = vpop.permute.xlu1 %973  ;;  %v1044_v54 = vpop.permute.xlu0 %1043 }
 0x2e7   :  { %v983_v49 = vsel %vm370_vm4, %v974_v45, %v976_v41  ;;  %v1050_v60 = vsel %vm470_vm6, %v1044_v54, %v1861_v5  ;;  %v1049_v48 = vsel %vm470_vm6, %v1042_v46, %v1044_v54  ;;  %vm1926_vm4 = vcmp.lt.s32.totalorder %v48_v33, 12 }
 0x2e8   :  { %1182 = vmatpush1.bf16.msra.mxu0 %v983_v49 }
 0x2ea   :  { %v1010_v50 = vpop.permute.xlu1 %1009  ;;  %v1072_v61 = vpop.permute.xlu0 %1071 }
 0x2eb   :  { %v1016_v52 = vsel %vm420_vm5, %v1008_v20, %v1010_v50 }
 0x2ec   :  { %1183 = vmatprep.subr.bf16.mxu0 %v1016_v52 }
 0x2ed   :  { %1184 = vmatpush1.bf16.msra.mxu0 %v1015_v53 }
 0x2ee   :  { %v1012_v56 = vpop.permute.xlu1 %1011  ;;  %v1070_v0 = vpop.permute.xlu0 %1069 }
 0x2ef   :  { %v1017_v58 = vsel %vm420_vm5, %v1010_v50, %v1012_v56  ;;  %v1018_v59 = vsel %vm420_vm5, %v1012_v56, %v1857_v2  ;;  %v1079_v38 = vsel %vm520_vm7, %v1070_v0, %v1072_v61  ;;  %vm1932_vm5 = vcmp.lt.s32.totalorder %v96_v34, 192 }
 0x2f0   :  { %1226 = vmatprep.subr.bf16.mxu1 %v1018_v59 }
 0x2f1   :  { %1227 = vmatpush1.bf16.msra.mxu1 %v1017_v58 }
 0x2f2   :  { %1228 = vmatprep.subr.bf16.mxu1 %v1050_v60  ;;  %v1040_v36 = vpop.permute.xlu1 %1039  ;;  %v1106_v57 = vpop.permute.xlu0 %1105  ;;  %v1449_v60 = vld [vmem:[%s2006_s3 + $0x30] sm:$0xff] }
 0x2f3   :  { %v1048_v35 = vsel %vm470_vm6, %v1040_v36, %v1042_v46 }
 0x2f4   :  { %1185 = vmatprep.subr.bf16.mxu0 %v1048_v35 }
 0x2f5   :  { %1229 = vmatpush1.bf16.msra.mxu1 %v1049_v48 }
 0x2f6   :  { %v1038_v51 = vpop.permute.xlu1 %1037  ;;  %v1108_v10 = vpop.permute.xlu0 %1107 }
 0x2f7   :  { %v1047_v63 = vsel %vm470_vm6, %v1038_v51, %v1040_v36  ;;  %v1113_v13 = vsel %vm570_vm8, %v1106_v57, %v1108_v10  ;;  %vm141_vm6 = vcmp.lt.s32.totalorder %v41_v37, 12  ;;  %v1450_v36 = vld [vmem:[%s2006_s3 + $0x38] sm:$0xff] }
 0x2f8   :  { %1186 = vmatpush1.bf16.msra.mxu0 %v1047_v63 }
 0x2fa   :  { %v1074_v2 = vpop.permute.xlu1 %1073 }
 0x2fb   :  { %v1080_v3 = vsel %vm520_vm7, %v1072_v61, %v1074_v2  ;;  %v1448_v61 = vld [vmem:[%s2006_s3 + $0x28] sm:$0xff] }
 0x2fc   :  { %1187 = vmatprep.subr.bf16.mxu0 %v1080_v3 }
 0x2fd   :  { %1188 = vmatpush1.bf16.msra.mxu0 %v1079_v38 }
 0x2fe   :  { %v1076_v5 = vpop.permute.xlu1 %1075 }
 0x2ff   :  { %v1081_v40 = vsel %vm520_vm7, %v1074_v2, %v1076_v5  ;;  %v1082_v55 = vsel %vm520_vm7, %v1076_v5, %v1859_v4  ;;  %vm154_vm7 = vmand %vm1926_vm4, %vm1932_vm5 }
 0x300   :  { %1230 = vmatprep.subr.bf16.mxu1 %v1082_v55 }
 0x301   :  { %1231 = vmatpush1.bf16.msra.mxu1 %v1081_v40 }
 0x302   :  { %v1104_v12 = vpop.permute.xlu1 %1103 }
 0x303   :  { %v1112_v6 = vsel %vm570_vm8, %v1104_v12, %v1106_v57 }
 0x304   :  { %1189 = vmatprep.subr.bf16.mxu0 %v1112_v6 }
 0x306   :  { %v1102_v7 = vpop.permute.xlu1 %1101 }
 0x307   :  { %v1111_v8 = vsel %vm570_vm8, %v1102_v7, %v1104_v12 }
 0x308   :  { %1190 = vmatpush1.bf16.msra.mxu0 %v1111_v8 }
 0x30a   :  { %v1110_v11 = vpop.permute.xlu1 %1109 }
 0x30b   :  { %1206 = vmatmul.mubr.bf16.vlgmr.msra.gmra.mrb[4].mxu0 %v1493_v9  ;;  %v1114_v4 = vsel %vm570_vm8, %v1108_v10, %v1110_v11 }
 0x30c   :  { %1232 = vmatprep.subr.bf16.mxu1 %v1114_v4 }
 0x30d   :  { %1233 = vmatpush1.bf16.msra.mxu1 %v1113_v13 }
 0x310   :  { %1249 = vmatmul.mubr.bf16.vlgmr.msra.gmra.mrb[4].mxu1 %v1493_v9 }
 0x31b   :  { %v1325_v35 = vpop.permute.xlu1 %1324 }
 0x3de   :  { %v1919_v16 = vpop.f32.mrb[4].mxu0 }
 0x3df   :  { %v1267_v28 = vsel %vm139_vm2, %v1919_v16, 0.0  ;;  %v1922_v17 = vpop.f32.mrb[5].mxu0 }
 0x3e0   :  { %v1287_v29 = vmul.f32 %v1267_v28, %v1267_v28  ;;  %v1936_v31 = vpop.f32.mrb[6].mxu0  ;;  %v1268_v43 = vsel %vm152_vm3, %v1922_v17, 0.0 }
 0x3e1   :  { %v1271_v18 = vsel %vm139_vm2, %v1936_v31, 0.0  ;;  %v1940_v47 = vpop.f32.mrb[7].mxu0  ;;  %v1275_v19 = vadd.f32 %v1268_v43, %v1267_v28  ;;  %v1288_v33 = vmul.f32 %v1268_v43, %v1268_v43 }
 0x3e2   :  { %v1291_v62 = vmul.f32 %v1271_v18, %v1271_v18  ;;  %v1272_v30 = vsel %vm152_vm3, %v1940_v47, 0.0 }
 0x3e3   :  { %v1280_v34 = vadd.f32 %v1272_v30, %v1271_v18  ;;  %v1292_v20 = vmul.f32 %v1272_v30, %v1272_v30  ;;  %v1250_v1 = vpop.f32.mrb[4].mxu1  ;;  %v1295_v21 = vadd.f32 %v1288_v33, %v1287_v29 }
 0x3e4   :  { %v1269_v22 = vsel %vm141_vm6, %v1250_v1, 0.0  ;;  %v1252_v23 = vpop.f32.mrb[5].mxu1 }
 0x3e5   :  { %v1300_v24 = vadd.f32 %v1292_v20, %v1291_v62  ;;  %v1276_v25 = vadd.f32 %v1275_v19, %v1269_v22  ;;  %v1289_v39 = vmul.f32 %v1269_v22, %v1269_v22  ;;  %v1949_v41 = vpop.f32.mrb[6].mxu1  ;;  %v1270_v32 = vsel %vm154_vm7, %v1252_v23, 0.0 }
 0x3e6   :  { %v1273_v37 = vsel %vm141_vm6, %v1949_v41, 0.0  ;;  %v1957_v42 = vpop.f32.mrb[7].mxu1  ;;  %v1290_v44 = vmul.f32 %v1270_v32, %v1270_v32 }
 0x3e7   :  { %v1281_v45 = vadd.f32 %v1280_v34, %v1273_v37  ;;  %v1293_v46 = vmul.f32 %v1273_v37, %v1273_v37  ;;  %v1274_v49 = vsel %vm154_vm7, %v1957_v42, 0.0  ;;  %v1277_v50 = vadd.f32 %v1276_v25, %v1270_v32 }
 0x3e8   :  { %v1294_v52 = vmul.f32 %v1274_v49, %v1274_v49  ;;  %v1296_v53 = vadd.f32 %v1295_v21, %v1289_v39 }
 0x3e9   :  { %1278 = vadd.xlane.f32.xlu0 %v1277_v50  ;;  %v1282_v54 = vadd.f32 %v1281_v45, %v1274_v49  ;;  %v1301_v56 = vadd.f32 %v1300_v24, %v1293_v46 }
 0x3ea   :  { %v1297_v58 = vadd.f32 %v1296_v53, %v1290_v44 }
 0x3eb   :  { %1283 = vadd.xlane.f32.xlu1 %v1282_v54  ;;  %v1302_v59 = vadd.f32 %v1301_v56, %v1294_v52 }
 0x3ed   :  { %1298 = vadd.xlane.f32.xlu0 %v1297_v58 }
 0x3f1   :  { %1303 = vadd.xlane.f32.xlu0 %v1302_v59 }
 0x3fc   :  { %1357 = vperm.xlu1 %1472, %v1449_v60  }
 0x400   :  { %1362 = vperm.xlu1 %1472, %v1450_v36  }
 0x407   :  { %1329 = vperm.xlu0 %1473, %v1448_v61  }
 0x476   :  { %v1279_v48 = vpop.xlane.xlu0 %1278 }
 0x477   :  { %v1285_v51 = vmul.f32 0.0034722222, %v1279_v48 }
 0x478   :  { %v1284_v63 = vpop.xlane.xlu1 %1283 }
 0x479   :  { %v1286_v2 = vmul.f32 0.0034722222, %v1284_v63  ;;  %v1307_v3 = vmul.f32 %v1285_v51, %v1285_v51  ;;  %v1314_v8 = vsub.f32 %v1919_v16, %v1285_v51  ;;  %v1315_v9 = vsub.f32 %v1922_v17, %v1285_v51 }
 0x47a   :  { %v1299_v0 = vpop.xlane.xlu0 %1298  ;;  %v1316_v10 = vsub.f32 %v1250_v1, %v1285_v51  ;;  %v1317_v11 = vsub.f32 %v1252_v23, %v1285_v51 }
 0x47b   :  { %v1305_v38 = vmul.f32 0.0034722222, %v1299_v0  ;;  %v1308_v12 = vmul.f32 %v1286_v2, %v1286_v2  ;;  %v1332_v4 = vmul.f32 %v1325_v35, %v1314_v8  ;;  %v1333_v13 = vmul.f32 %v1325_v35, %v1315_v9 }
 0x47c   :  { %v1334_v14 = vmul.f32 %v1325_v35, %v1316_v10  ;;  %v1335_v15 = vmul.f32 %v1325_v35, %v1317_v11  ;;  %v1358_v18 = vpop.permute.xlu1 %1357  ;;  %v1318_v33 = vsub.f32 %v1936_v31, %v1286_v2  ;;  %v1319_v62 = vsub.f32 %v1940_v47, %v1286_v2 }
 0x47d   :  { %v1309_v5 = vsub.f32 %v1305_v38, %v1307_v3  ;;  %v1320_v16 = vsub.f32 %v1949_v41, %v1286_v2  ;;  %v1321_v17 = vsub.f32 %v1957_v42, %v1286_v2 }
 0x47e   :  { %v1304_v40 = vpop.xlane.xlu0 %1303 }
 0x47f   :  { %v1340_v55 = vadd.f32 1e-05, %v1309_v5  ;;  %v1306_v57 = vmul.f32 0.0034722222, %v1304_v40 }
 0x480   :  { %v1363_v41 = vpop.permute.xlu1 %1362 }
 0x481   :  { %1498 = vrsqrt.f32 %v1340_v55  ;;  %v1310_v6 = vsub.f32 %v1306_v57, %v1308_v12 }
 0x483   :  { %v1341_v7 = vadd.f32 1e-05, %v1310_v6 }
 0x485   :  { %1500 = vrsqrt.f32 %v1341_v7 }
 0x486   :  { %v1330_v19 = vpop.permute.xlu0 %1329 }
 0x487   :  { %v1336_v22 = vmul.f32 %v1330_v19, %v1318_v33  ;;  %v1337_v23 = vmul.f32 %v1330_v19, %v1319_v62  ;;  %v1338_v24 = vmul.f32 %v1330_v19, %v1320_v16  ;;  %v1339_v25 = vmul.f32 %v1330_v19, %v1321_v17 }
 0x48b   :  { %v1499_v28 = vpop.eup %1498 }
 0x48c   :  { %v1344_v27 = vmul.f32 %v1499_v28, %v1332_v4  ;;  %v1345_v26 = vmul.f32 %v1499_v28, %v1333_v13  ;;  %v1346_v29 = vmul.f32 %v1499_v28, %v1334_v14  ;;  %v1347_v43 = vmul.f32 %v1499_v28, %v1335_v15 }
 0x48e   :  { %v1365_v30 = vadd.f32 %v1358_v18, %v1344_v27  ;;  %v1366_v34 = vadd.f32 %v1358_v18, %v1345_v26  ;;  %v1367_v20 = vadd.f32 %v1358_v18, %v1346_v29  ;;  %v1368_v1 = vadd.f32 %v1358_v18, %v1347_v43 }
 0x48f   :  { %v1501_v21 = vpop.eup %1500 }
 0x490   :  { %v1373_v39 = vmax.f32 %v1365_v30, 0.0  ;;  %v1374_v32 = vmax.f32 %v1366_v34, 0.0  ;;  %v1375_v37 = vmax.f32 %v1367_v20, 0.0  ;;  %v1376_v44 = vmax.f32 %v1368_v1, 0.0 }
 0x491   :  { %v1348_v31 = vmul.f32 %v1501_v21, %v1336_v22  ;;  %v1349_v45 = vmul.f32 %v1501_v21, %v1337_v23  ;;  %v1350_v47 = vmul.f32 %v1501_v21, %v1338_v24  ;;  %v1351_v46 = vmul.f32 %v1501_v21, %v1339_v25 }
 0x492   :  { %1381 = vst [vmem:[%s2008_s4] sm:$0xff] %v1373_v39  ;;  %1382 = vst [vmem:[%s2008_s4 + $0x8] sm:$0xff] %v1374_v32 }
 0x493   :  { %1383 = vst [vmem:[%s2008_s4 + $0x10] sm:$0xff] %v1375_v37  ;;  %1384 = vst [vmem:[%s2008_s4 + $0x18] sm:$0xff] %v1376_v44  ;;  %v1369_v42 = vadd.f32 %v1363_v41, %v1348_v31  ;;  %v1370_v49 = vadd.f32 %v1363_v41, %v1349_v45  ;;  %v1371_v50 = vadd.f32 %v1363_v41, %v1350_v47 }
 0x494   :  { %v1372_v52 = vadd.f32 %v1363_v41, %v1351_v46 }
 0x495   :  { %v1377_v53 = vmax.f32 %v1369_v42, 0.0  ;;  %v1378_v54 = vmax.f32 %v1370_v49, 0.0  ;;  %v1379_v56 = vmax.f32 %v1371_v50, 0.0 }
 0x496   :  { %v1380_v58 = vmax.f32 %v1372_v52, 0.0 }
 0x497   :  { %1385 = vst [vmem:[%s2008_s4 + $0x20] sm:$0xff] %v1377_v53  ;;  %1386 = vst [vmem:[%s2008_s4 + $0x28] sm:$0xff] %v1378_v54 }
 0x498   :  { %1387 = vst [vmem:[%s2008_s4 + $0x30] sm:$0xff] %v1379_v56  ;;  %1388 = vst [vmem:[%s2008_s4 + $0x38] sm:$0xff] %v1380_v58 }

// kernel: unet_forward.9
= control target key start
LH: loop header
LB: loop body
LE: loop exit
PB: predicated region body
PF: predicated region fallthrough
CT: control target
= control target key end

     0   :  { %v110_v0 = vmov 0.0   ;;  %vm111_vm0 = vmmov 0   ;;  %v112_v3 = vmov 0   ;;  %vm42_vm1 = vcmask 130048   ;;  %s151_s1 = inlined_call_operand.vmem [shape: bf16[16,128], index: 1, kind: input, shape index: {}]   ;;  %s152_s0 = inlined_call_operand.vmem [shape: bf16[16,16], index: 0, kind: input, shape index: {}]   ;;  %s153_s2 = inlined_call_operand.vmem [shape: f32[16,1], index: 2, kind: input, shape index: {}]   ;;  %s154_s3 = inlined_call_operand.vmem [shape: f32[16,128], index: 3, kind: output, shape index: {}]  }
   0x1   :  { %98 = vmatprep.subr.bf16.mxu0 %v110_v0  ;;  %v108_v1 = vld [vmem:[%s151_s1] sm:$0xff]   ;;  %100 = vmatprep.mubr.msk.bf16.mxu0 %vm111_vm0, %v110_v0  ;;  %v20_v5 = vld [vmem:[%s153_s2 + $0x8] sm:$0xff] }
   0x2   :  { %v109_v2 = vld [vmem:[%s152_s0] sm:$0xff]   ;;  %107 = vset.pattern.permute.xlu0 %v112_v3  ;;  %99 = vmatpush3.bf16.msra.mxu0 %v108_v1 }
   0x3   :  { %v19_v4 = vld [vmem:[%s153_s2] sm:$0xff] }
   0x4   :  { %23 = vperm.xlu0 %107, %v19_v4  }
   0x5   :  { %101 = vmatmul.mubr.msk.bf16.vlgmr.msra.gmra.mrb[0].mxu0 %vm42_vm1, %v109_v2 }
   0x8   :  { %28 = vperm.xlu0 %107, %v20_v5  }
  0x83   :  { %v24_v6 = vpop.permute.xlu0 %23 }
  0x87   :  { %v29_v10 = vpop.permute.xlu0 %28 }
  0xd8   :  { %v80_v7 = vpop.f32.mrb[0].mxu0 }
  0xd9   :  { %v81_v8 = vadd.f32 %v80_v7, %v24_v6  ;;  %v102_v9 = vpop.f32.mrb[1].mxu0 }
  0xda   :  { %v83_v11 = vpop.f32.mrb[2].mxu0 }
  0xdb   :  { %87 = vst [vmem:[%s154_s3] sm:$0xff] %v81_v8  ;;  %v84_v12 = vadd.f32 %v83_v11, %v29_v10  ;;  %v103_v13 = vpop.f32.mrb[3].mxu0 }
  0xdd   :  { %88 = vst [vmem:[%s154_s3 + $0x8] sm:$0xff] %v84_v12 }

// kernel: unet_forward.8
= control target key start
LH: loop header
LB: loop body
LE: loop exit
PB: predicated region body
PF: predicated region fallthrough
CT: control target
= control target key end

     0   :  { %v637_v1 = vmov 0   ;;  %s638_s19 = smov 126   ;;  %s639_s20 = smov 127   ;;  %vm230_vm0 = vcmask 130048   ;;  %vm80_vm1 = vcmask 1039360   ;;  %vm98_vm2 = vcmask 1031168   ;;  %s810_s0 = inlined_call_operand.vmem [shape: bf16[16,256], index: 0, kind: input, shape index: {}]   ;;  %s811_s1 = inlined_call_operand.vmem [shape: bf16[16,144], index: 1, kind: input, shape index: {}]   ;;  %s812_s3 = inlined_call_operand.vmem [shape: f32[4,16,1], index: 3, kind: input, shape index: {}]   ;;  %s813_s2 = inlined_call_operand.vmem [shape: bf16[16,144], index: 2, kind: input, shape index: {}]   ;;  %s814_s4 = inlined_call_operand.vmem [shape: f32[16,128], index: 4, kind: output, shape index: {}]  }
   0x1   :  { %v619_v0 = vld [vmem:[%s810_s0] ss:$8 sps:$4 sm:$0xff]   ;;  %234 = vmatprep.subr.bf16.mxu0 %v637_v1  ;;  %617 = vset.pattern.permute.xlu1 %v637_v1  ;;  %v621_v2 = vld [vmem:[%s810_s0 + $0x4] ss:$8 sps:$4 sm:$0xff]   ;;  %s640_s23 = smov 122   ;;  %s641_s24 = smov 121   ;;  %v18_v31 = vlaneseq }
   0x2   :  { %618 = vset.pattern.permute.xlu0 %v637_v1  ;;  %460 = vmatprep.subr.bf16.mxu1 %v637_v1  ;;  %v622_v3 = vld [vmem:[%s810_s0] ss:$8 sps:$4 sm:$0xff]   ;;  %s642_s25 = smov 120   ;;  %s643_s0 = smov 116   ;;  %v625_v4 = vld [vmem:[%s811_s1 + $0x4] ss:$8 sps:$4 sm:$0xff]  }
   0x3   :  { %94 = vrot.lane.b32.xlu1 %v619_v0, %s638_s19  ;;  %76 = vrot.lane.b32.xlu0 %v619_v0, %s639_s20  ;;  %s644_s28 = smov 115   ;;  %s645_s29 = smov 114   ;;  %v297_v5 = vld [vmem:[%s812_s3] sm:$0xff]  ;;  %vm116_vm3 = vcmask 998400   ;;  %vm134_vm4 = vcmask 990208   ;;  %vm152_vm5 = vcmask 982016  }
   0x4   :  { %235 = vmatpush1.bf16.msra.mxu0 %v622_v3  ;;  %586 = vmatprep.mubr.msk.bf16.mxu0 %vm230_vm0, %v625_v4  ;;  %vm170_vm6 = vcmask 949248   ;;  %vm188_vm7 = vcmask 941056   ;;  %vm206_vm8 = vcmask 932864   ;;  %v623_v30 = vld [vmem:[%s811_s1] ss:$8 sps:$4 sm:$0xff]   ;;  %v19_v32 = vand.u32 127, %v18_v31 }
   0x5   :  { %236 = vmatprep.subr.bf16.mxu0 %v637_v1  ;;  %v587_v56 = vld [vmem:[%s812_s3 + $0x10] sm:$0xff]  ;;  %v588_v57 = vld [vmem:[%s812_s3 + $0x18] sm:$0xff]  ;;  %v298_v58 = vld [vmem:[%s812_s3 + $0x8] sm:$0xff]  ;;  %s646_s13 = smov 7   ;;  %s647_s14 = smov 6  }
   0x6   :  { %v716_v33 = vmul.u32.u64.low 2863311531, %v19_v32  ;;  %v717_v34 = vmul.u32.u64.high 2863311531, %v19_v32, %v716_v33  ;;  %v719_v35 = vmul.u32.u64.low 3817748708, %v19_v32  ;;  %v720_v36 = vmul.u32.u64.high 3817748708, %v19_v32, %v719_v35  ;;  %s648_s15 = smov 5   ;;  %s649_s16 = smov 1  }
   0x7   :  { %96 = vrot.lane.b32.xlu1 %v621_v2, %s638_s19  ;;  %78 = vrot.lane.b32.xlu0 %v621_v2, %s639_s20  ;;  %vm52_vm15 = vcmp.lt.s32.totalorder %v19_v32, 72  ;;  %s650_s17 = smov 123   ;;  %v592_v31 = vld [vmem:[%s812_s3 + $0x20] sm:$0xff]  ;;  %v593_v47 = vld [vmem:[%s812_s3 + $0x28] sm:$0xff] }
   0x8   :  { %v26_v37 = vshrl.u32 %v717_v34, 2  ;;  %v42_v38 = vshrl.u32 %v720_v36, 5 }
   0xa   :  { %v27_v39 = vmul.u32 6, %v26_v37  ;;  %v43_v40 = vmul.u32 36, %v42_v38 }
   0xb   :  { %114 = vrot.lane.b32.xlu1 %v621_v2, %s640_s23  ;;  %112 = vrot.lane.b32.xlu0 %v619_v0, %s640_s23 }
   0xc   :  { %v28_v41 = vsub.s32 %v19_v32, %v27_v39  ;;  %v44_v42 = vsub.s32 %v19_v32, %v43_v40 }
   0xe   :  { %vm31_vm9 = vcmp.ne.s32.totalorder %v28_v41, 0  ;;  %vm32_vm10 = vcmp.lt.s32.totalorder %v28_v41, 0  ;;  %v34_v43 = vadd.s32 6, %v28_v41  ;;  %vm47_vm12 = vcmp.ne.s32.totalorder %v44_v42, 0 }
   0xf   :  { %132 = vrot.lane.b32.xlu1 %v621_v2, %s641_s24  ;;  %130 = vrot.lane.b32.xlu0 %v619_v0, %s641_s24  ;;  %vm33_vm11 = vmand %vm32_vm10, %vm31_vm9  ;;  %vm48_vm13 = vcmp.lt.s32.totalorder %v44_v42, 0  ;;  %v50_v44 = vadd.s32 36, %v44_v42  ;;  %vm362_vm9 = vcmask 48128   ;;  %vm386_vm10 = vcmask 7168  }
  0x10   :  { %v35_v45 = vsel %vm33_vm11, %v34_v43, %v28_v41  ;;  %vm49_vm14 = vmand %vm48_vm13, %vm47_vm12  ;;  %vm411_vm12 = vcmask 1006592  }
  0x11   :  { %v51_v46 = vsel %vm49_vm14, %v50_v44, %v44_v42 }
  0x13   :  { %150 = vrot.lane.b32.xlu1 %v621_v2, %s642_s25  ;;  %148 = vrot.lane.b32.xlu0 %v619_v0, %s642_s25 }
  0x17   :  { %168 = vrot.lane.b32.xlu1 %v621_v2, %s643_s0  ;;  %166 = vrot.lane.b32.xlu0 %v619_v0, %s643_s0 }
  0x1b   :  { %186 = vrot.lane.b32.xlu1 %v621_v2, %s644_s28  ;;  %184 = vrot.lane.b32.xlu0 %v619_v0, %s644_s28 }
  0x1f   :  { %204 = vrot.lane.b32.xlu1 %v621_v2, %s645_s29  ;;  %202 = vrot.lane.b32.xlu0 %v619_v0, %s645_s29 }
  0x23   :  { %303 = vperm.xlu1 %617, %v297_v5  }
  0x75   :  { %v95_v6 = vpop.permute.xlu1 %94  ;;  %v77_v7 = vpop.permute.xlu0 %76 }
  0x79   :  { %v97_v8 = vpop.permute.xlu1 %96  ;;  %v79_v9 = vpop.permute.xlu0 %78 }
  0x7a   :  { %v81_v10 = vsel %vm80_vm1, %v77_v7, %v79_v9  ;;  %v99_v13 = vsel %vm98_vm2, %v95_v6, %v97_v8  ;;  %vm53_vm2 = vcmp.lt.s32.totalorder %v35_v45, 4 }
  0x7b   :  { %237 = vmatpush1.bf16.msra.mxu0 %v81_v10 }
  0x7c   :  { %238 = vmatprep.subr.bf16.mxu0 %v637_v1 }
  0x7d   :  { %v115_v11 = vpop.permute.xlu1 %114  ;;  %v113_v12 = vpop.permute.xlu0 %112 }
  0x7e   :  { %v117_v14 = vsel %vm116_vm3, %v113_v12, %v115_v11 }
  0x7f   :  { %239 = vmatpush1.bf16.msra.mxu0 %v99_v13 }
  0x80   :  { %240 = vmatprep.subr.bf16.mxu0 %v637_v1 }
  0x81   :  { %v133_v15 = vpop.permute.xlu1 %132  ;;  %v131_v16 = vpop.permute.xlu0 %130 }
  0x82   :  { %v135_v17 = vsel %vm134_vm4, %v131_v16, %v133_v15 }
  0x83   :  { %241 = vmatpush1.bf16.msra.mxu0 %v117_v14 }
  0x84   :  { %242 = vmatprep.subr.bf16.mxu0 %v637_v1 }
  0x85   :  { %v151_v18 = vpop.permute.xlu1 %150  ;;  %v149_v19 = vpop.permute.xlu0 %148 }
  0x86   :  { %v153_v20 = vsel %vm152_vm5, %v149_v19, %v151_v18  ;;  %vm54_vm5 = vmand %vm52_vm15, %vm53_vm2 }
  0x87   :  { %243 = vmatpush1.bf16.msra.mxu0 %v135_v17 }
  0x88   :  { %244 = vmatprep.subr.bf16.mxu0 %v637_v1 }
  0x89   :  { %v169_v21 = vpop.permute.xlu1 %168  ;;  %v167_v22 = vpop.permute.xlu0 %166 }
  0x8a   :  { %v171_v23 = vsel %vm170_vm6, %v167_v22, %v169_v21  ;;  %vm55_vm6 = vcmp.lt.s32.totalorder %v51_v46, 24 }
  0x8b   :  { %245 = vmatpush1.bf16.msra.mxu0 %v153_v20 }
  0x8c   :  { %246 = vmatprep.subr.bf16.mxu0 %v637_v1 }
  0x8d   :  { %v187_v24 = vpop.permute.xlu1 %186  ;;  %v185_v25 = vpop.permute.xlu0 %184 }
  0x8e   :  { %v189_v26 = vsel %vm188_vm7, %v185_v25, %v187_v24  ;;  %vm724_vm7 = vmand %vm54_vm5, %vm55_vm6 }
  0x8f   :  { %247 = vmatpush1.bf16.msra.mxu0 %v171_v23  ;;  %vm596_vm11 = vmpackc.low %vm724_vm7, %vm724_vm7 }
  0x90   :  { %248 = vmatprep.subr.bf16.mxu0 %v637_v1 }
  0x91   :  { %v205_v27 = vpop.permute.xlu1 %204  ;;  %v203_v28 = vpop.permute.xlu0 %202 }
  0x92   :  { %v207_v29 = vsel %vm206_vm8, %v203_v28, %v205_v27  ;;  %vm350_vm8 = vcmask 56320  }
  0x93   :  { %249 = vmatpush1.bf16.msra.mxu0 %v189_v26 }
  0x94   :  { %250 = vmatprep.subr.bf16.mxu0 %v637_v1 }
  0x97   :  { %251 = vmatpush1.bf16.msra.mxu0 %v207_v29 }
  0x9a   :  { %267 = vmatmul.mubr.bf16.vlgmr.msra.gmra.mrb[0].mxu0 %v623_v30  ;;  %v628_v30 = vld [vmem:[%s813_s2 + $0x4] ss:$8 sps:$4 sm:$0xff]  }
  0x9b   :  { %591 = vmatprep.mubr.msk.bf16.mxu1 %vm230_vm0, %v628_v30  ;;  %vm374_vm0 = vcmask 39936  }
  0xa2   :  { %v304_v59 = vpop.permute.xlu1 %303 }
 0x16d   :  { %v268_v48 = vpop.f32.mrb[0].mxu0 }
 0x16e   :  { %v270_v49 = vpop.f32.mrb[1].mxu0  ;;  %v277_v50 = vsel %vm724_vm7, %v268_v48, 0.0 }
 0x16f   :  { %279 = vadd.xlane.f32.xlu0 %v277_v50  ;;  %v271_v51 = vpop.f32.mrb[2].mxu0  ;;  %v285_v54 = vmul.f32 %v277_v50, %v277_v50 }
 0x170   :  { %v273_v52 = vpop.f32.mrb[3].mxu0  ;;  %v278_v53 = vsel %vm724_vm7, %v271_v51, 0.0 }
 0x171   :  { %281 = vadd.xlane.f32.xlu1 %v278_v53  ;;  %v286_v55 = vmul.f32 %v278_v53, %v278_v53 }
 0x173   :  { %287 = vadd.xlane.f32.xlu0 %v285_v54 }
 0x177   :  { %289 = vadd.xlane.f32.xlu0 %v286_v55 }
 0x182   :  { %324 = vperm.xlu1 %617, %v587_v56  }
 0x186   :  { %329 = vperm.xlu1 %617, %v588_v57   ;;  %v626_v57 = vld [vmem:[%s813_s2] ss:$8 sps:$4 sm:$0xff]  }
 0x18a   :  { %346 = vrot.lane.b32.xlu1 %v637_v1, %s646_s13 }
 0x18d   :  { %308 = vperm.xlu0 %618, %v298_v58  }
 0x18e   :  { %358 = vrot.lane.b32.xlu1 %v637_v1, %s647_s14 }
 0x191   :  { %382 = vrot.lane.b32.xlu0 %v637_v1, %s649_s16 }
 0x192   :  { %370 = vrot.lane.b32.xlu1 %v637_v1, %s648_s15 }
 0x1fc   :  { %v280_v60 = vpop.xlane.xlu0 %279 }
 0x1fd   :  { %v283_v61 = vmul.f32 0.03125, %v280_v60 }
 0x1fe   :  { %v282_v62 = vpop.xlane.xlu1 %281 }
 0x1ff   :  { %v293_v0 = vmul.f32 %v283_v61, %v283_v61  ;;  %v284_v2 = vmul.f32 0.03125, %v282_v62  ;;  %v299_v11 = vsub.f32 %v268_v48, %v283_v61 }
 0x200   :  { %v288_v63 = vpop.xlane.xlu0 %287 }
 0x201   :  { %v291_v3 = vmul.f32 0.03125, %v288_v63  ;;  %v294_v6 = vmul.f32 %v284_v2, %v284_v2  ;;  %v311_v12 = vmul.f32 %v304_v59, %v299_v11  ;;  %v300_v17 = vsub.f32 %v271_v51, %v284_v2  ;;  %v594_v2 = vld [vmem:[%s812_s3 + $0x30] sm:$0xff] }
 0x202   :  { %v325_v14 = vpop.permute.xlu1 %324 }
 0x203   :  { %v295_v4 = vsub.f32 %v291_v3, %v293_v0  ;;  %v595_v3 = vld [vmem:[%s812_s3 + $0x38] sm:$0xff] }
 0x204   :  { %v290_v5 = vpop.xlane.xlu0 %289 }
 0x205   :  { %v313_v7 = vadd.f32 1e-05, %v295_v4  ;;  %v292_v8 = vmul.f32 0.03125, %v290_v5 }
 0x206   :  { %v330_v22 = vpop.permute.xlu1 %329 }
 0x207   :  { %629 = vrsqrt.f32 %v313_v7  ;;  %v296_v9 = vsub.f32 %v292_v8, %v294_v6 }
 0x209   :  { %v314_v10 = vadd.f32 1e-05, %v296_v9 }
 0x20a   :  { %v347_v32 = vpop.permute.xlu1 %346 }
 0x20b   :  { %631 = vrsqrt.f32 %v314_v10 }
 0x20c   :  { %v309_v15 = vpop.permute.xlu0 %308 }
 0x20d   :  { %v312_v19 = vmul.f32 %v309_v15, %v300_v17 }
 0x20e   :  { %v359_v33 = vpop.permute.xlu1 %358 }
 0x210   :  { %v383_v39 = vpop.permute.xlu0 %382 }
 0x211   :  { %v630_v13 = vpop.eup %629 }
 0x212   :  { %v317_v16 = vmul.f32 %v630_v13, %v311_v12  ;;  %v371_v34 = vpop.permute.xlu1 %370 }
 0x214   :  { %v332_v18 = vadd.f32 %v325_v14, %v317_v16 }
 0x215   :  { %v632_v20 = vpop.eup %631 }
 0x216   :  { %v318_v21 = vmul.f32 %v632_v20, %v312_v19  ;;  %v334_v23 = vmax.f32 %v332_v18, 0.0 }
 0x218   :  { %v333_v24 = vadd.f32 %v330_v22, %v318_v21  ;;  %v336_v26 = vsel %vm724_vm7, %v334_v23, 0.0 }
 0x21a   :  { %v335_v25 = vmax.f32 %v333_v24, 0.0 }
 0x21c   :  { %v337_v27 = vsel %vm724_vm7, %v335_v25, 0.0  ;;  %v597_v28 = vpack.c.bf16 %v335_v25, %v334_v23 }
 0x21d   :  { %v340_v29 = vpack.c.bf16 %v337_v27, %v336_v26 }
 0x21f   :  { %396 = vrot.lane.b32.xlu0 %v340_v29, %s639_s20  ;;  %348 = vrot.lane.b32.xlu1 %v340_v29, %s646_s13 }
 0x223   :  { %407 = vrot.lane.b32.xlu0 %v340_v29, %s650_s17  ;;  %360 = vrot.lane.b32.xlu1 %v340_v29, %s647_s14 }
 0x227   :  { %419 = vrot.lane.b32.xlu0 %v340_v29, %s640_s23  ;;  %372 = vrot.lane.b32.xlu1 %v340_v29, %s648_s15 }
 0x22b   :  { %430 = vrot.lane.b32.xlu0 %v340_v29, %s641_s24  ;;  %384 = vrot.lane.b32.xlu1 %v340_v29, %s649_s16 }
 0x22f   :  { %398 = vrot.lane.b32.xlu1 %v637_v1, %s639_s20 }
 0x233   :  { %409 = vrot.lane.b32.xlu1 %v637_v1, %s650_s17 }
 0x237   :  { %421 = vrot.lane.b32.xlu1 %v637_v1, %s640_s23 }
 0x23b   :  { %432 = vrot.lane.b32.xlu1 %v637_v1, %s641_s24 }
 0x23f   :  { %528 = vperm.xlu1 %617, %v592_v31  }
 0x291   :  { %v349_v35 = vpop.permute.xlu1 %348  ;;  %v397_v44 = vpop.permute.xlu0 %396 }
 0x292   :  { %v351_v36 = vsel %vm350_vm8, %v347_v32, %v349_v35 }
 0x293   :  { %461 = vmatpush1.bf16.msra.mxu1 %v351_v36 }
 0x294   :  { %462 = vmatprep.subr.bf16.mxu1 %v637_v1 }
 0x295   :  { %v361_v37 = vpop.permute.xlu1 %360  ;;  %v408_v46 = vpop.permute.xlu0 %407 }
 0x296   :  { %v363_v38 = vsel %vm362_vm9, %v359_v33, %v361_v37 }
 0x297   :  { %463 = vmatpush1.bf16.msra.mxu1 %v363_v38 }
 0x298   :  { %464 = vmatprep.subr.bf16.mxu1 %v637_v1 }
 0x299   :  { %v373_v40 = vpop.permute.xlu1 %372  ;;  %v420_v52 = vpop.permute.xlu0 %419 }
 0x29a   :  { %v375_v41 = vsel %vm374_vm0, %v371_v34, %v373_v40 }
 0x29b   :  { %465 = vmatpush1.bf16.msra.mxu1 %v375_v41 }
 0x29c   :  { %466 = vmatprep.subr.bf16.mxu1 %v637_v1 }
 0x29d   :  { %v385_v42 = vpop.permute.xlu1 %384  ;;  %v431_v55 = vpop.permute.xlu0 %430 }
 0x29e   :  { %v387_v43 = vsel %vm386_vm10, %v383_v39, %v385_v42 }
 0x29f   :  { %467 = vmatpush1.bf16.msra.mxu1 %v387_v43 }
 0x2a0   :  { %468 = vmatprep.subr.bf16.mxu1 %v637_v1 }
 0x2a1   :  { %v399_v45 = vpop.permute.xlu1 %398 }
 0x2a2   :  { %v400_v49 = vsel %vm80_vm1, %v397_v44, %v399_v45 }
 0x2a3   :  { %598 = vmatpush1.bf16.msk.msra.mxu1 %vm596_vm11, %v597_v28 }
 0x2a4   :  { %470 = vmatprep.subr.bf16.mxu1 %v637_v1 }
 0x2a5   :  { %v410_v48 = vpop.permute.xlu1 %409 }
 0x2a6   :  { %v412_v51 = vsel %vm411_vm12, %v408_v46, %v410_v48 }
 0x2a7   :  { %471 = vmatpush1.bf16.msra.mxu1 %v400_v49 }
 0x2a8   :  { %472 = vmatprep.subr.bf16.mxu1 %v637_v1 }
 0x2a9   :  { %v422_v50 = vpop.permute.xlu1 %421 }
 0x2aa   :  { %v423_v53 = vsel %vm116_vm3, %v420_v52, %v422_v50 }
 0x2ab   :  { %473 = vmatpush1.bf16.msra.mxu1 %v412_v51 }
 0x2ac   :  { %474 = vmatprep.subr.bf16.mxu1 %v637_v1 }
 0x2ad   :  { %v433_v54 = vpop.permute.xlu1 %432 }
 0x2ae   :  { %v434_v56 = vsel %vm134_vm4, %v431_v55, %v433_v54 }
 0x2af   :  { %475 = vmatpush1.bf16.msra.mxu1 %v423_v53 }
 0x2b0   :  { %476 = vmatprep.subr.bf16.mxu1 %v637_v1 }
 0x2b3   :  { %477 = vmatpush1.bf16.msra.mxu1 %v434_v56 }
 0x2b6   :  { %493 = vmatmul.mubr.bf16.vlgmr.msra.gmra.mrb[0].mxu1 %v626_v57 }
 0x2be   :  { %v529_v4 = vpop.permute.xlu1 %528 }
 0x389   :  { %v494_v58 = vpop.f32.mrb[0].mxu1 }
 0x38a   :  { %v496_v59 = vpop.f32.mrb[1].mxu1  ;;  %v501_v60 = vsel %vm724_vm7, %v494_v58, 0.0 }
 0x38b   :  { %503 = vadd.xlane.f32.xlu0 %v501_v60  ;;  %v497_v61 = vpop.f32.mrb[2].mxu1  ;;  %v509_v63 = vmul.f32 %v501_v60, %v501_v60 }
 0x38c   :  { %v499_v62 = vpop.f32.mrb[3].mxu1  ;;  %v502_v1 = vsel %vm724_vm7, %v497_v61, 0.0 }
 0x38d   :  { %505 = vadd.xlane.f32.xlu1 %v502_v1  ;;  %v510_v0 = vmul.f32 %v502_v1, %v502_v1 }
 0x38f   :  { %511 = vadd.xlane.f32.xlu0 %v509_v63 }
 0x393   :  { %513 = vadd.xlane.f32.xlu0 %v510_v0 }
 0x39e   :  { %549 = vperm.xlu1 %617, %v594_v2  }
 0x3a2   :  { %554 = vperm.xlu1 %617, %v595_v3  }
 0x3a9   :  { %533 = vperm.xlu0 %618, %v593_v47  }
 0x418   :  { %v504_v5 = vpop.xlane.xlu0 %503 }
 0x419   :  { %v507_v6 = vmul.f32 0.03125, %v504_v5 }
 0x41a   :  { %v506_v7 = vpop.xlane.xlu1 %505 }
 0x41b   :  { %v517_v9 = vmul.f32 %v507_v6, %v507_v6  ;;  %v508_v10 = vmul.f32 0.03125, %v506_v7  ;;  %v524_v19 = vsub.f32 %v494_v58, %v507_v6 }
 0x41c   :  { %v512_v8 = vpop.xlane.xlu0 %511 }
 0x41d   :  { %v515_v11 = vmul.f32 0.03125, %v512_v8  ;;  %v518_v14 = vmul.f32 %v508_v10, %v508_v10  ;;  %v536_v20 = vmul.f32 %v529_v4, %v524_v19  ;;  %v525_v25 = vsub.f32 %v497_v61, %v508_v10 }
 0x41e   :  { %v550_v22 = vpop.permute.xlu1 %549 }
 0x41f   :  { %v519_v12 = vsub.f32 %v515_v11, %v517_v9 }
 0x420   :  { %v514_v13 = vpop.xlane.xlu0 %513 }
 0x421   :  { %v538_v15 = vadd.f32 1e-05, %v519_v12  ;;  %v516_v16 = vmul.f32 0.03125, %v514_v13 }
 0x422   :  { %v555_v31 = vpop.permute.xlu1 %554 }
 0x423   :  { %633 = vrsqrt.f32 %v538_v15  ;;  %v520_v17 = vsub.f32 %v516_v16, %v518_v14 }
 0x425   :  { %v539_v18 = vadd.f32 1e-05, %v520_v17 }
 0x427   :  { %635 = vrsqrt.f32 %v539_v18 }
 0x428   :  { %v534_v23 = vpop.permute.xlu0 %533 }
 0x429   :  { %v537_v27 = vmul.f32 %v534_v23, %v525_v25 }
 0x42d   :  { %v634_v21 = vpop.eup %633 }
 0x42e   :  { %v542_v24 = vmul.f32 %v634_v21, %v536_v20 }
 0x430   :  { %v557_v26 = vadd.f32 %v550_v22, %v542_v24 }
 0x431   :  { %v636_v28 = vpop.eup %635 }
 0x432   :  { %v559_v29 = vmax.f32 %v557_v26, 0.0  ;;  %v543_v30 = vmul.f32 %v636_v28, %v537_v27 }
 0x434   :  { %561 = vst [vmem:[%s814_s4] sm:$0xff] %v559_v29  ;;  %v558_v32 = vadd.f32 %v555_v31, %v543_v30 }
 0x436   :  { %v560_v33 = vmax.f32 %v558_v32, 0.0 }
 0x438   :  { %562 = vst [vmem:[%s814_s4 + $0x8] sm:$0xff] %v560_v33 }

</bundles_post_ra>
